<compile_context>
chip_gen: v6e
topology: v6e:2x2x1
jax: 0.10.0
libtpu: 0.0.40
codegen_flags: <defaults>
</compile_context>

<pallas_src>
import functools
import math

import jax
import jax.numpy as jnp
from jax.experimental import pallas as pl
from jax.experimental.pallas import tpu as pltpu

EPS = 1e-5                                  # torch nn.LayerNorm default
MXU_DTYPE = jnp.bfloat16                    # matmul operand dtype (f32 accumulate)
NEG_INF = float(jnp.finfo(jnp.float32).min)
Q_TILE = 256                                # attention query-tile rows


def _tpu_vmem_capacity():
    """Physical VMEM bytes of the local TPU (conservative fallback = v7x 64 MiB)."""
    try:
        info = pltpu.get_tpu_info()
        cap = getattr(info, "vmem_capacity_bytes", None)
        if cap:
            return int(cap)
    except Exception:
        pass
    return 64 * 1024 * 1024


_VMEM_CAP = _tpu_vmem_capacity()
VMEM_LIMIT = int(_VMEM_CAP * 3 // 4)                       # headroom below physical VMEM
ROW_TILE_TARGET = 512 if _VMEM_CAP >= 100 * 1024 * 1024 else 256


# ----------------------------------------------------------------------------
# Small helpers
# ----------------------------------------------------------------------------
def _round_up(x, m):
    return (x + m - 1) // m * m


def _choose_row_tile(rows, target=None):
    """Pick a sublane-aligned row tile close to `target` that minimizes padding."""
    if target is None:
        target = ROW_TILE_TARGET
    nt = max(1, -(-rows // target))
    tm = _round_up(-(-rows // nt), 8)
    return tm, nt


def _pad_rows(x2d, rows_p):
    rows = x2d.shape[0]
    if rows_p == rows:
        return x2d
    return jnp.pad(x2d, ((0, rows_p - rows), (0, 0)))


def _cparams(sem):
    return pltpu.CompilerParams(dimension_semantics=sem, vmem_limit_bytes=VMEM_LIMIT)


def _layernorm(x, gamma, beta):
    mu = jnp.mean(x, axis=-1, keepdims=True)
    var = jnp.mean((x - mu) ** 2, axis=-1, keepdims=True)
    return (x - mu) * jax.lax.rsqrt(var + EPS) * gamma + beta


def _mxdot(a, b):
    """MXU matmul with bf16 operands and f32 accumulation."""
    return jnp.dot(a.astype(MXU_DTYPE), b.astype(MXU_DTYPE),
                   preferred_element_type=jnp.float32)


# ----------------------------------------------------------------------------
# Kernel: row-tiled matmul + bias (+ optional ReLU)
# ----------------------------------------------------------------------------
def _matmul_bias_kernel(x_ref, w_ref, b_ref, o_ref, *, relu):
    y = jnp.dot(x_ref[...], w_ref[...], preferred_element_type=jnp.float32) + b_ref[...]
    if relu:
        y = jnp.maximum(y, 0.0)
    o_ref[...] = y.astype(o_ref.dtype)


def matmul_bias(x, w, b, relu=False, out_dtype=jnp.float32):
    M, K = x.shape
    N = w.shape[1]
    tm, nt = _choose_row_tile(M)
    Mp = tm * nt
    xp = _pad_rows(x.astype(MXU_DTYPE), Mp)
    out = pl.pallas_call(
        functools.partial(_matmul_bias_kernel, relu=relu),
        grid=(nt,),
        in_specs=[pl.BlockSpec((tm, K), lambda i: (i, 0)),
                  pl.BlockSpec((K, N), lambda i: (0, 0)),
                  pl.BlockSpec((1, N), lambda i: (0, 0))],
        out_specs=pl.BlockSpec((tm, N), lambda i: (i, 0)),
        out_shape=jax.ShapeDtypeStruct((Mp, N), out_dtype),
        compiler_params=_cparams(("parallel",)),
    )(xp, w.astype(MXU_DTYPE), b.reshape(1, N))
    return out[:M]


# ----------------------------------------------------------------------------
# Kernel: 3x3/stride-2 conv as a 9-tap reduction-grid matmul (no im2col concat in HBM)
# ----------------------------------------------------------------------------
def _tap_matmul_kernel(t_ref, w_ref, b_ref, o_ref, acc_ref, *, relu):
    k = pl.program_id(1)

    @pl.when(k == 0)
    def _():
        acc_ref[...] = jnp.zeros_like(acc_ref)

    acc_ref[...] += jnp.dot(t_ref[...], w_ref[...], preferred_element_type=jnp.float32)

    @pl.when(k == pl.num_programs(1) - 1)
    def _():
        y = acc_ref[...] + b_ref[...]
        if relu:
            y = jnp.maximum(y, 0.0)
        o_ref[...] = y.astype(o_ref.dtype)


def conv_taps_matmul(taps, w, b, relu=True, out_dtype=jnp.float32):
    """taps: (KT, M, C) tap slabs; w: (KT, C, N); accumulate taps on a reduction axis."""
    KT, M, C = taps.shape
    N = w.shape[-1]
    tm, nt = _choose_row_tile(M)
    Mp = tm * nt
    if Mp != M:
        taps = jnp.pad(taps, ((0, 0), (0, Mp - M), (0, 0)))
    out = pl.pallas_call(
        functools.partial(_tap_matmul_kernel, relu=relu),
        grid=(nt, KT),
        in_specs=[pl.BlockSpec((None, tm, C), lambda i, k: (k, i, 0)),
                  pl.BlockSpec((None, C, N), lambda i, k: (k, 0, 0)),
                  pl.BlockSpec((1, N), lambda i, k: (0, 0))],
        out_specs=pl.BlockSpec((tm, N), lambda i, k: (i, 0)),
        out_shape=jax.ShapeDtypeStruct((Mp, N), out_dtype),
        scratch_shapes=[pltpu.VMEM((tm, N), jnp.float32)],
        compiler_params=_cparams(("parallel", "arbitrary")),
    )(taps.astype(MXU_DTYPE), w.astype(MXU_DTYPE), b.reshape(1, N))
    return out[:M]


# ----------------------------------------------------------------------------
# Kernel: FeedForward + residual (+ optional fused trailing LayerNorm)
#   out = [LN2](x + scale * (ReLU(LN1(x)@W1+b1)@W2+b2))
# ----------------------------------------------------------------------------
def _ffn_kernel(*refs, scale, final_ln):
    if final_ln:
        (x_ref, g_ref, bt_ref, w1_ref, b1_ref, w2_ref, b2_ref,
         g2_ref, bt2_ref, o_ref) = refs
    else:
        x_ref, g_ref, bt_ref, w1_ref, b1_ref, w2_ref, b2_ref, o_ref = refs
    x = x_ref[...]
    xn = _layernorm(x, g_ref[...], bt_ref[...])
    h = _mxdot(xn, w1_ref[...]) + b1_ref[...]
    h = jnp.maximum(h, 0.0)
    y = _mxdot(h, w2_ref[...]) + b2_ref[...]
    r = x + scale * y
    if final_ln:
        r = _layernorm(r, g2_ref[...], bt2_ref[...])
    o_ref[...] = r


def ffn_residual(x, p, scale, final_ln_p=None):
    B, T, D = x.shape
    d_ffn = p["w1"].shape[1]
    rows = B * T
    tm, nt = _choose_row_tile(rows)
    Mp = tm * nt
    xp = _pad_rows(x.reshape(rows, D), Mp)

    const = lambda shape: pl.BlockSpec(shape, lambda i: (0, 0))
    in_specs = [pl.BlockSpec((tm, D), lambda i: (i, 0)),
                const((1, D)), const((1, D)),
                const((D, d_ffn)), const((1, d_ffn)),
                const((d_ffn, D)), const((1, D))]
    args = [xp, p["gamma"].reshape(1, D), p["beta"].reshape(1, D),
            p["w1"].astype(MXU_DTYPE), p["b1"].reshape(1, d_ffn),
            p["w2"].astype(MXU_DTYPE), p["b2"].reshape(1, D)]
    final_ln = final_ln_p is not None
    if final_ln:
        in_specs += [const((1, D)), const((1, D))]
        args += [final_ln_p["gamma"].reshape(1, D), final_ln_p["beta"].reshape(1, D)]

    out = pl.pallas_call(
        functools.partial(_ffn_kernel, scale=scale, final_ln=final_ln),
        grid=(nt,),
        in_specs=in_specs,
        out_specs=pl.BlockSpec((tm, D), lambda i: (i, 0)),
        out_shape=jax.ShapeDtypeStruct((Mp, D), jnp.float32),
        compiler_params=_cparams(("parallel",)),
    )(*args)
    return out[:rows].reshape(B, T, D)


# ----------------------------------------------------------------------------
# Kernel: LN + fused QKV projection -> head-major bf16 Q/K/V (q pre-scaled)
# ----------------------------------------------------------------------------
def _qkv_kernel(x_ref, g_ref, bt_ref, w_ref, b_ref, q_ref, k_ref, v_ref,
                *, n_heads, d_k, q_scale):
    D = n_heads * d_k
    xn = _layernorm(x_ref[...], g_ref[...], bt_ref[...])
    qkv = _mxdot(xn, w_ref[...]) + b_ref[...]              # (tm, 3D) f32
    for h in range(n_heads):                               # single bf16 cast, head-major store
        q_ref[h] = (qkv[:, h * d_k:(h + 1) * d_k] * q_scale).astype(q_ref.dtype)
        k_ref[h] = qkv[:, D + h * d_k:D + (h + 1) * d_k].astype(k_ref.dtype)
        v_ref[h] = qkv[:, 2 * D + h * d_k:2 * D + (h + 1) * d_k].astype(v_ref.dtype)


def qkv_project(x2d, p, n_heads, d_k, q_scale):
    rows, D = x2d.shape
    tm, nt = _choose_row_tile(rows)
    Mp = tm * nt
    xp = _pad_rows(x2d, Mp)
    wqkv = jnp.concatenate([p["wq"], p["wk"], p["wv"]], axis=1).astype(MXU_DTYPE)
    bqkv = jnp.concatenate([p["bq"], p["bk"], p["bv"]]).reshape(1, 3 * D)
    const = lambda shape: pl.BlockSpec(shape, lambda i: (0, 0))
    hspec = pl.BlockSpec((n_heads, tm, d_k), lambda i: (0, i, 0))
    q, k, v = pl.pallas_call(
        functools.partial(_qkv_kernel, n_heads=n_heads, d_k=d_k, q_scale=q_scale),
        grid=(nt,),
        in_specs=[pl.BlockSpec((tm, D), lambda i: (i, 0)),
                  const((1, D)), const((1, D)),
                  const((D, 3 * D)), const((1, 3 * D))],
        out_specs=[hspec, hspec, hspec],
        out_shape=[jax.ShapeDtypeStruct((n_heads, Mp, d_k), MXU_DTYPE)] * 3,
        compiler_params=_cparams(("parallel",)),
    )(xp, p["gamma"].reshape(1, D), p["beta"].reshape(1, D), wqkv, bqkv)
    return q[:, :rows], k[:, :rows], v[:, :rows]


# ----------------------------------------------------------------------------
# Kernel: query-tiled MHSA core (rel-pos bias + softmax + fused out-proj + residual)
#   out = x + Wo @ softmax((q k^T + q E[t-s]^T) / sqrt(d_k)) v + bo
# ----------------------------------------------------------------------------
def _attn_kernel(x_ref, q_ref, k_ref, v_ref, mask_ref, tbl_ref, wo_ref, bo_ref, o_ref,
                 *, n_heads, T):
    key_bad = mask_ref[...] == 0.0                         # (1, T), True where key padded
    ctx_heads = []
    for h in range(n_heads):
        qh = q_ref[h]                                      # (tq, d_k) bf16, pre-scaled
        # Content scores A[r, s] = q . k  (contract last dims -> MXU "NT" matmul).
        a = jnp.einsum("qd,kd->qk", qh, k_ref[h], preferred_element_type=jnp.float32)
        # Relative-position bias B[r, s] = q[t] . E[t - s], t = q_start + r:
        #   m[r, c]      = q[r] . tbl[:, c]        (MXU; tbl pre-rotated for this q-tile)
        #   rolled[r, c] = m[r, (c - r) mod W]     (per-sublane lane roll on the XLU)
        #   bias[r, s]   = rolled[r, s]            (slice starts at lane 0 -> free view)
        m = jnp.dot(qh, tbl_ref[...], preferred_element_type=jnp.float32)
        rolled = pltpu.roll(m, 0, 1, stride=1, stride_axis=0)
        s = a + rolled[:, :T]
        s = jnp.where(key_bad, NEG_INF, s)
        mx = jnp.max(s, axis=-1, keepdims=True)
        e = jnp.exp(s - mx)
        p = e * pl.reciprocal(jnp.sum(e, axis=-1, keepdims=True), approx=True)
        p = jnp.where(key_bad, 0.0, p)
        ctx_heads.append(jnp.dot(p.astype(MXU_DTYPE), v_ref[h],
                                 preferred_element_type=jnp.float32))
    ctx = jnp.concatenate(ctx_heads, axis=-1)              # (tq, D), torch head order
    y = jnp.dot(ctx.astype(MXU_DTYPE), wo_ref[...], preferred_element_type=jnp.float32)
    o_ref[...] = x_ref[...] + y + bo_ref[...]


def _rel_pos_tables(pe_k_table, T, tq, nq, maxlen):
    """Per-query-tile (d_k, W) tables, pre-rotated so the in-kernel skew is a static
    shift-by-row pltpu.roll and the bias slice starts at lane 0.
    Column c of tile i encodes relative position (i*tq + d_c) with
      c in [0, T)        -> d_c = -c        (keys at / after the local query row)
      c in (W - tq, W)   -> d_c = W - c     (keys before the local query row, wrapped)."""
    W = _round_up(T + tq - 1, 128)
    c = jnp.arange(W)
    d_c = jnp.where(c > W - tq, W - c, -c)
    q_start = jnp.arange(nq)[:, None] * tq
    rel = q_start + d_c[None, :]                           # (nq, W) = t - s
    idx = jnp.clip(rel, -maxlen, maxlen - 1) + maxlen
    tbl = pe_k_table[idx]                                  # (nq, W, d_k)
    return jnp.transpose(tbl, (0, 2, 1)).astype(MXU_DTYPE)  # (nq, d_k, W)


def mhsa_residual(x, mask, tbl, p, n_heads, tq):
    B, T, D = x.shape
    d_k = D // n_heads
    nq = -(-T // tq)
    Tp = nq * tq
    W = tbl.shape[-1]

    q, k, v = qkv_project(x.reshape(B * T, D), p, n_heads, d_k, 1.0 / math.sqrt(d_k))
    q = q.reshape(n_heads, B, T, d_k)
    k = k.reshape(n_heads, B, T, d_k)
    v = v.reshape(n_heads, B, T, d_k)
    xp = x
    if Tp != T:
        q = jnp.pad(q, ((0, 0), (0, 0), (0, Tp - T), (0, 0)))
        xp = jnp.pad(x, ((0, 0), (0, Tp - T), (0, 0)))

    out = pl.pallas_call(
        functools.partial(_attn_kernel, n_heads=n_heads, T=T),
        grid=(B, nq),
        in_specs=[
            pl.BlockSpec((None, tq, D), lambda b, i: (b, i, 0)),                # x tile
            pl.BlockSpec((n_heads, None, tq, d_k), lambda b, i: (0, b, i, 0)),  # q tile
            pl.BlockSpec((n_heads, None, T, d_k), lambda b, i: (0, b, 0, 0)),   # k (full)
            pl.BlockSpec((n_heads, None, T, d_k), lambda b, i: (0, b, 0, 0)),   # v (full)
            pl.BlockSpec((None, 1, T), lambda b, i: (b, 0, 0)),                 # key mask
            pl.BlockSpec((None, d_k, W), lambda b, i: (i, 0, 0)),               # rel-pos tbl
            pl.BlockSpec((D, D), lambda b, i: (0, 0)),                          # Wo
            pl.BlockSpec((1, D), lambda b, i: (0, 0)),                          # bo
        ],
        out_specs=pl.BlockSpec((None, tq, D), lambda b, i: (b, i, 0)),
        out_shape=jax.ShapeDtypeStruct((B, Tp, D), jnp.float32),
        compiler_params=_cparams(("parallel", "parallel")),
    )(xp, q, k, v, mask, tbl, p["wo"].astype(MXU_DTYPE), p["bo"].reshape(1, D))
    return out[:, :T]


# ----------------------------------------------------------------------------
# Kernel: Conformer conv module + residual
#   LN -> 1x1 conv (1->2 ch) -> GLU -> depthwise conv1d over time -> ReLU -> 1x1 conv
# ----------------------------------------------------------------------------
def _convmod_kernel(x_ref, g_ref, bt_ref, dww_ref, dwb_ref,
                    pw1w_ref, pw1b_ref, pw2w_ref, pw2b_ref, o_ref, *, T, K):
    x = x_ref[...]                                         # (T, D)
    xn = _layernorm(x, g_ref[...], bt_ref[...])

    # pw_conv_1: Conv2d(1, 2, 1) == per-output-channel scalar scale + bias (SMEM scalars)
    a = pw1w_ref[0] * xn + pw1b_ref[0]
    gate = jax.nn.sigmoid(pw1w_ref[1] * xn + pw1b_ref[1])
    u = a * gate                                           # GLU, (T, D)

    # Depthwise Conv1d over time (zero pad (K-1)//2 both sides) via static sublane
    # rolls + edge masks.
    pad = (K - 1) // 2
    row = jax.lax.broadcasted_iota(jnp.int32, (T, 1), 0)
    acc = jnp.zeros_like(u)
    for kk in range(K):
        off = kk - pad                                     # tap reads u[t + off]
        shifted = pltpu.roll(u, (-off) % T, 0)             # shifted[t] = u[(t + off) % T]
        valid = jnp.logical_and(row + off >= 0, row + off < T)
        acc = acc + jnp.where(valid, dww_ref[kk:kk + 1, :] * shifted, 0.0)
    y = jnp.maximum(acc + dwb_ref[...], 0.0)

    # pw_conv_2: Conv2d(1, 1, 1) == scalar scale + bias (SMEM scalars)
    y = pw2w_ref[0] * y + pw2b_ref[0]
    o_ref[...] = x + y


def convmod_residual(x, p, kernel_size):
    B, T, D = x.shape
    K = kernel_size
    const = lambda shape: pl.BlockSpec(shape, lambda b: (0, 0))
    smem = pl.BlockSpec(memory_space=pltpu.MemorySpace.SMEM)
    in_specs = [
        pl.BlockSpec((None, T, D), lambda b: (b, 0, 0)),   # x
        const((1, D)), const((1, D)),                      # LN gamma/beta
        const((K, D)), const((1, D)),                      # depthwise weight/bias
        smem, smem, smem, smem,                            # pw1 w/b, pw2 w/b scalars
    ]
    return pl.pallas_call(
        functools.partial(_convmod_kernel, T=T, K=K),
        grid=(B,),
        in_specs=in_specs,
        out_specs=pl.BlockSpec((None, T, D), lambda b: (b, 0, 0)),
        out_shape=jax.ShapeDtypeStruct((B, T, D), jnp.float32),
        compiler_params=_cparams(("parallel",)),
    )(x, p["gamma"].reshape(1, D), p["beta"].reshape(1, D),
      p["dw_w"], p["dw_b"].reshape(1, D),
      p["pw1_w"], p["pw1_b"], p["pw2_w"], p["pw2_b"])


# ----------------------------------------------------------------------------
# Conv2dSubsampling front-end (tap slabs in JAX, row-tiled matmuls in Pallas)
# ----------------------------------------------------------------------------
def _im2col_taps(x, kh, kw, stride):
    """Return the kh*kw stride-`stride` tap slabs of NHWC `x` (no concat)."""
    B, H, Wd, C = x.shape
    Ho = (H - kh) // stride + 1
    Wo = (Wd - kw) // stride + 1
    taps = []
    for i in range(kh):
        for j in range(kw):
            taps.append(x[:, i:i + stride * (Ho - 1) + 1:stride,
                          j:j + stride * (Wo - 1) + 1:stride, :])
    return taps, Ho, Wo


def _sinusoidal_pe(T, d):
    pos = jnp.arange(T, dtype=jnp.float32)[:, None]
    div = jnp.exp(jnp.arange(0, d, 2, dtype=jnp.float32) * (-math.log(10000.0) / d))
    pe = jnp.zeros((T, d), jnp.float32)
    pe = pe.at[:, 0::2].set(jnp.sin(pos * div))
    pe = pe.at[:, 1::2].set(jnp.cos(pos * div))
    return pe


def conv2d_subsampling(x, mask, params, d_model):
    # x: (B, T_in, idim); torch does x.unsqueeze(1) -> NCHW, here NHWC with C=1.
    B = x.shape[0]
    h = x[:, :, :, None]

    # conv1: 3x3 stride-2, C_in=1 (taps are raw-feature scalars); tiny (M,9)@(9,D) matmul.
    taps1, T1, F1 = _im2col_taps(h, 3, 3, 2)
    cols1 = jnp.concatenate(taps1, axis=-1)                # (B,T1,F1,9) — raw features, small
    y = matmul_bias(cols1.reshape(B * T1 * F1, 9), params["conv1_w"], params["conv1_b"],
                    relu=True, out_dtype=MXU_DTYPE)
    y = y.reshape(B, T1, F1, d_model)

    # conv2: 3x3 stride-2 on the D-wide activation — 9-tap reduction-grid matmul,
    # no (M, 9*D) im2col concat in HBM; taps and output in bf16.
    taps2, T2, F2 = _im2col_taps(y, 3, 3, 2)
    taps2 = jnp.stack([t.reshape(B * T2 * F2, d_model) for t in taps2], axis=0)
    y2 = conv_taps_matmul(taps2, params["conv2_w"], params["conv2_b"],
                          relu=True, out_dtype=MXU_DTYPE)
    y2 = y2.reshape(B, T2, F2, d_model)

    # torch: (b, c, t, f) -> transpose(1, 2) -> view(b, t, c*f)  (channel-major over freq)
    flat = jnp.transpose(y2, (0, 1, 3, 2)).reshape(B * T2, d_model * F2)
    out = matmul_bias(flat, params["lin_w"], params["lin_b"]).reshape(B, T2, d_model)

    # espnet PositionalEncoding: scale by sqrt(d_model) + sinusoidal PE (dropout = identity)
    out = out * math.sqrt(d_model) + _sinusoidal_pe(T2, d_model)[None]

    mask_sub = mask[:, :, :-2:2][:, :, :-2:2]
    return out, mask_sub


# ----------------------------------------------------------------------------
# Full Encoder forward
# ----------------------------------------------------------------------------
def encoder_forward(params, xs, masks, *, d_model, n_heads, kernel_size, maxlen=1000):
    x, mask_sub = conv2d_subsampling(xs, masks, params, d_model)
    B, T, D = x.shape
    hs_mask = mask_sub.astype(jnp.float32)                 # (B, 1, T) key mask

    tq = min(Q_TILE, _round_up(T, 8))
    nq = -(-T // tq)
    tbl = _rel_pos_tables(params["pe_k_table"], T, tq, nq, maxlen)  # shared by all layers

    for lp in params["layers"]:
        x = ffn_residual(x, lp["ffn_in"], 0.5)
        x = mhsa_residual(x, hs_mask, tbl, lp["attn"], n_heads, tq)
        x = convmod_residual(x, lp["conv"], kernel_size)
        x = ffn_residual(x, lp["ffn_out"], 0.5, final_ln_p=lp["ln"])  # fused trailing LN
    return x, mask_sub


# ----------------------------------------------------------------------------
# Deterministic synthetic parameters
# ----------------------------------------------------------------------------
def init_params(key, idim, d_model, n_heads, d_ffn, layers, kernel_size, maxlen=1000):
    d_k = d_model // n_heads
    f1 = (idim - 1) // 2
    f2 = (f1 - 1) // 2

    keys = iter(jax.random.split(key, 256))

    def nrm(shape, scale=0.05):
        return scale * jax.random.normal(next(keys), shape, dtype=jnp.float32)

    ones = lambda n: jnp.ones((n,), jnp.float32)
    zeros = lambda n: jnp.zeros((n,), jnp.float32)

    params = {
        "conv1_w": nrm((9 * 1, d_model)),                  # (kh*kw*cin, cout)
        "conv1_b": zeros(d_model),
        "conv2_w": nrm((9, d_model, d_model)),             # per-tap (cin, cout)
        "conv2_b": zeros(d_model),
        "lin_w": nrm((d_model * f2, d_model)),
        "lin_b": zeros(d_model),
        "pe_k_table": nrm((2 * maxlen, d_k), scale=0.1),
        "layers": [],
    }

    def ffn_p():
        return dict(gamma=ones(d_model), beta=zeros(d_model),
                    w1=nrm((d_model, d_ffn)), b1=zeros(d_ffn),
                    w2=nrm((d_ffn, d_model)), b2=zeros(d_model))

    for _ in range(layers):
        lp = {
            "ffn_in": ffn_p(),
            "attn": dict(gamma=ones(d_model), beta=zeros(d_model),
                         wq=nrm((d_model, d_model)), bq=zeros(d_model),
                         wk=nrm((d_model, d_model)), bk=zeros(d_model),
                         wv=nrm((d_model, d_model)), bv=zeros(d_model),
                         wo=nrm((d_model, d_model)), bo=zeros(d_model)),
            "conv": dict(gamma=ones(d_model), beta=zeros(d_model),
                         pw1_w=nrm((2,)), pw1_b=zeros(2),
                         dw_w=nrm((kernel_size, d_model)),   # (K, D): torch (D,1,K) transposed
                         dw_b=zeros(d_model),
                         pw2_w=nrm((1,)), pw2_b=zeros(1)),
            "ffn_out": ffn_p(),
            "ln": dict(gamma=ones(d_model), beta=zeros(d_model)),
        }
        params["layers"].append(lp)
    return params


# ----------------------------------------------------------------------------
if __name__ == "__main__":
    # Small config (module defaults: idim=83, d_model=256, heads=4, d_ffn=2048, 6 layers).
    # kernel_size must be odd for the non-causal residual add to be shape-consistent.
    idim, d_model, n_heads, d_ffn, n_layers, kernel_size = 16, 32, 4, 64, 2, 7
    B, T_in = 2, 35   # subsampled length: ((35-1)//2 - 1)//2 = 8

    key = jax.random.PRNGKey(0)
    kx, kp = jax.random.split(key)
    xs = jax.random.normal(kx, (B, T_in, idim), dtype=jnp.float32)
    masks = jnp.ones((B, 1, T_in), dtype=jnp.float32)
    masks = masks.at[1, 0, 28:].set(0.0)   # second sequence is padded

    params = init_params(kp, idim, d_model, n_heads, d_ffn, n_layers, kernel_size)

    fwd = jax.jit(functools.partial(encoder_forward, d_model=d_model,
                                    n_heads=n_heads, kernel_size=kernel_size))
    out, out_mask = fwd(params, xs, masks)
    jax.block_until_ready(out)

    T_out = ((T_in - 1) // 2 - 1) // 2
    assert out.shape == (B, T_out, d_model), out.shape
    assert out_mask.shape == (B, 1, T_out), out_mask.shape
    assert bool(jnp.all(jnp.isfinite(out)))
    print("KERNEL_OK")
</pallas_src>

<mosaic_0001>
module attributes {stable_mosaic.version = 11 : i64} {
  func.func @_matmul_bias_kernel(%arg0: i32, %arg1: memref<240x9xbf16, #tpu.memory_space<vmem>>, %arg2: memref<9x32xbf16, #tpu.memory_space<vmem>>, %arg3: memref<1x32xf32, #tpu.memory_space<vmem>>, %arg4: memref<240x32xbf16, #tpu.memory_space<vmem>>) attributes {dimension_semantics = [#tpu.dimension_semantics<parallel>], iteration_bounds = array<i64: 1>, scalar_prefetch = 0 : i64, scratch_operands = 0 : i64, tpu.core_type = #tpu.core_type<tc>, window_params = [{transform_indices = @transform_0, window_bounds = array<i64: 240, 9>}, {pipeline_mode = #tpu.pipeline_mode<synchronous>, transform_indices = @transform_1, window_bounds = array<i64: 9, 32>}, {pipeline_mode = #tpu.pipeline_mode<synchronous>, transform_indices = @transform_2, window_bounds = array<i64: 1, 32>}, {transform_indices = @transform_3, window_bounds = array<i64: 240, 32>}]} {
    %c0 = arith.constant 0 : index
    %c0_0 = arith.constant 0 : index
    %0 = vector.load %arg1[%c0, %c0_0] : memref<240x9xbf16, #tpu.memory_space<vmem>>, vector<240x9xbf16>
    %c0_1 = arith.constant 0 : index
    %c0_2 = arith.constant 0 : index
    %1 = vector.load %arg2[%c0_1, %c0_2] : memref<9x32xbf16, #tpu.memory_space<vmem>>, vector<9x32xbf16>
    %cst = arith.constant dense<0.000000e+00> : vector<240x32xf32>
    %2 = tpu.matmul %0, %1, %cst {dimension_numbers = #tpu.dot_dimension_numbers<[1], [0], [0], [1], [0, 0, 1, 1], [], []>} : vector<240x9xbf16>, vector<9x32xbf16>, vector<240x32xf32> -> vector<240x32xf32>
    %c0_3 = arith.constant 0 : index
    %c0_4 = arith.constant 0 : index
    %3 = vector.load %arg3[%c0_3, %c0_4] : memref<1x32xf32, #tpu.memory_space<vmem>>, vector<1x32xf32>
    %4 = vector.broadcast %3 : vector<1x32xf32> to vector<240x32xf32>
    %5 = arith.addf %2, %4 : vector<240x32xf32>
    %cst_5 = arith.constant 0.000000e+00 : f32
    %6 = vector.broadcast %cst_5 : f32 to vector<240x32xf32>
    %7 = arith.maximumf %5, %6 : vector<240x32xf32>
    %8 = arith.truncf %7 : vector<240x32xf32> to vector<240x32xbf16>
    %c0_6 = arith.constant 0 : index
    %c0_7 = arith.constant 0 : index
    %9 = vector.load %arg4[%c0_6, %c0_7] : memref<240x32xbf16, #tpu.memory_space<vmem>>, vector<240x32xbf16>
    tpu.vector_store %arg4[%c0_6, %c0_7], %8 {strides = array<i32>} : memref<240x32xbf16, #tpu.memory_space<vmem>>, vector<240x32xbf16>,
    return
  }
  func.func @transform_0(%arg0: i32) -> (i32, i32) {
    %c0_i32 = arith.constant 0 : i32
    %c0_i32_0 = arith.constant 0 : i32
    return %arg0, %c0_i32 : i32, i32
  }
  func.func @transform_1(%arg0: i32) -> (i32, i32) {
    %c0_i32 = arith.constant 0 : i32
    %c0_i32_0 = arith.constant 0 : i32
    %c0_i32_1 = arith.constant 0 : i32
    return %c0_i32, %c0_i32_0 : i32, i32
  }
  func.func @transform_2(%arg0: i32) -> (i32, i32) {
    %c0_i32 = arith.constant 0 : i32
    %c0_i32_0 = arith.constant 0 : i32
    %c0_i32_1 = arith.constant 0 : i32
    return %c0_i32, %c0_i32_0 : i32, i32
  }
  func.func @transform_3(%arg0: i32) -> (i32, i32) {
    %c0_i32 = arith.constant 0 : i32
    %c0_i32_0 = arith.constant 0 : i32
    return %arg0, %c0_i32 : i32, i32
  }
}

module attributes {stable_mosaic.version = 11 : i64} {
  func.func @_tap_matmul_kernel(%arg0: i32, %arg1: i32, %arg2: memref<1x48x32xbf16, #tpu.memory_space<vmem>>, %arg3: memref<1x32x32xbf16, #tpu.memory_space<vmem>>, %arg4: memref<1x32xf32, #tpu.memory_space<vmem>>, %arg5: memref<48x32xbf16, #tpu.memory_space<vmem>>, %arg6: memref<48x32xf32, #tpu.memory_space<vmem>>) attributes {dimension_semantics = [#tpu.dimension_semantics<parallel>, #tpu.dimension_semantics<arbitrary>], iteration_bounds = array<i64: 1, 9>, scalar_prefetch = 0 : i64, scratch_operands = 1 : i64, tpu.core_type = #tpu.core_type<tc>, window_params = [{transform_indices = @transform_0, window_bounds = array<i64: 1, 48, 32>}, {transform_indices = @transform_1, window_bounds = array<i64: 1, 32, 32>}, {pipeline_mode = #tpu.pipeline_mode<synchronous>, transform_indices = @transform_2, window_bounds = array<i64: 1, 32>}, {transform_indices = @transform_3, window_bounds = array<i64: 48, 32>}]} {
    %c0_i32 = arith.constant 0 : i32
    %0 = arith.cmpi eq, %arg1, %c0_i32 : i32
    %1 = arith.extui %0 : i1 to i32
    %c0_i32_0 = arith.constant 0 : i32
    %2 = arith.cmpi ne, %1, %c0_i32_0 : i32
    scf.if %2 {
      %cst_11 = arith.constant 0.000000e+00 : f32
      %14 = vector.broadcast %cst_11 : f32 to vector<48x32xf32>
      %c0_12 = arith.constant 0 : index
      %c0_13 = arith.constant 0 : index
      %15 = vector.load %arg6[%c0_12, %c0_13] : memref<48x32xf32, #tpu.memory_space<vmem>>, vector<48x32xf32>
      tpu.vector_store %arg6[%c0_12, %c0_13], %14 {strides = array<i32>} : memref<48x32xf32, #tpu.memory_space<vmem>>, vector<48x32xf32>,
    } else {
    }
    %c0 = arith.constant 0 : index
    %c0_1 = arith.constant 0 : index
    %3 = vector.load %arg6[%c0, %c0_1] : memref<48x32xf32, #tpu.memory_space<vmem>>, vector<48x32xf32>
    %c0_2 = arith.constant 0 : index
    %c0_3 = arith.constant 0 : index
    %c0_4 = arith.constant 0 : index
    %4 = vector.load %arg2[%c0_2, %c0_3, %c0_4] : memref<1x48x32xbf16, #tpu.memory_space<vmem>>, vector<1x48x32xbf16>
    %5 = vector.shape_cast %4 : vector<1x48x32xbf16> to vector<48x32xbf16>
    %c0_5 = arith.constant 0 : index
    %c0_6 = arith.constant 0 : index
    %c0_7 = arith.constant 0 : index
    %6 = vector.load %arg3[%c0_5, %c0_6, %c0_7] : memref<1x32x32xbf16, #tpu.memory_space<vmem>>, vector<1x32x32xbf16>
    %7 = vector.shape_cast %6 : vector<1x32x32xbf16> to vector<32x32xbf16>
    %cst = arith.constant dense<0.000000e+00> : vector<48x32xf32>
    %8 = tpu.matmul %5, %7, %cst {dimension_numbers = #tpu.dot_dimension_numbers<[1], [0], [0], [1], [0, 0, 1, 1], [], []>} : vector<48x32xbf16>, vector<32x32xbf16>, vector<48x32xf32> -> vector<48x32xf32>
    %9 = arith.addf %3, %8 : vector<48x32xf32>
    %c0_8 = arith.constant 0 : index
    %c0_9 = arith.constant 0 : index
    %10 = vector.load %arg6[%c0_8, %c0_9] : memref<48x32xf32, #tpu.memory_space<vmem>>, vector<48x32xf32>
    tpu.vector_store %arg6[%c0_8, %c0_9], %9 {strides = array<i32>} : memref<48x32xf32, #tpu.memory_space<vmem>>, vector<48x32xf32>,
    %c8_i32 = arith.constant 8 : i32
    %11 = arith.cmpi eq, %arg1, %c8_i32 : i32
    %12 = arith.extui %11 : i1 to i32
    %c0_i32_10 = arith.constant 0 : i32
    %13 = arith.cmpi ne, %12, %c0_i32_10 : i32
    scf.if %13 {
      %c0_11 = arith.constant 0 : index
      %c0_12 = arith.constant 0 : index
      %14 = vector.load %arg6[%c0_11, %c0_12] : memref<48x32xf32, #tpu.memory_space<vmem>>, vector<48x32xf32>
      %c0_13 = arith.constant 0 : index
      %c0_14 = arith.constant 0 : index
      %15 = vector.load %arg4[%c0_13, %c0_14] : memref<1x32xf32, #tpu.memory_space<vmem>>, vector<1x32xf32>
      %16 = vector.broadcast %15 : vector<1x32xf32> to vector<48x32xf32>
      %17 = arith.addf %14, %16 : vector<48x32xf32>
      %cst_15 = arith.constant 0.000000e+00 : f32
      %18 = vector.broadcast %cst_15 : f32 to vector<48x32xf32>
      %19 = arith.maximumf %17, %18 : vector<48x32xf32>
      %20 = arith.truncf %19 : vector<48x32xf32> to vector<48x32xbf16>
      %c0_16 = arith.constant 0 : index
      %c0_17 = arith.constant 0 : index
      %21 = vector.load %arg5[%c0_16, %c0_17] : memref<48x32xbf16, #tpu.memory_space<vmem>>, vector<48x32xbf16>
      tpu.vector_store %arg5[%c0_16, %c0_17], %20 {strides = array<i32>} : memref<48x32xbf16, #tpu.memory_space<vmem>>, vector<48x32xbf16>,
    } else {
    }
    return
  }
  func.func @transform_0(%arg0: i32, %arg1: i32) -> (i32, i32, i32) {
    %c0_i32 = arith.constant 0 : i32
    %c0_i32_0 = arith.constant 0 : i32
    return %arg1, %arg0, %c0_i32 : i32, i32, i32
  }
  func.func @transform_1(%arg0: i32, %arg1: i32) -> (i32, i32, i32) {
    %c0_i32 = arith.constant 0 : i32
    %c0_i32_0 = arith.constant 0 : i32
    %c0_i32_1 = arith.constant 0 : i32
    return %arg1, %c0_i32, %c0_i32_0 : i32, i32, i32
  }
  func.func @transform_2(%arg0: i32, %arg1: i32) -> (i32, i32) {
    %c0_i32 = arith.constant 0 : i32
    %c0_i32_0 = arith.constant 0 : i32
    %c0_i32_1 = arith.constant 0 : i32
    return %c0_i32, %c0_i32_0 : i32, i32
  }
  func.func @transform_3(%arg0: i32, %arg1: i32) -> (i32, i32) {
    %c0_i32 = arith.constant 0 : i32
    %c0_i32_0 = arith.constant 0 : i32
    return %arg0, %c0_i32 : i32, i32
  }
}

module attributes {stable_mosaic.version = 11 : i64} {
  func.func @_matmul_bias_kernel(%arg0: i32, %arg1: memref<16x96xbf16, #tpu.memory_space<vmem>>, %arg2: memref<96x32xbf16, #tpu.memory_space<vmem>>, %arg3: memref<1x32xf32, #tpu.memory_space<vmem>>, %arg4: memref<16x32xf32, #tpu.memory_space<vmem>>) attributes {dimension_semantics = [#tpu.dimension_semantics<parallel>], iteration_bounds = array<i64: 1>, scalar_prefetch = 0 : i64, scratch_operands = 0 : i64, tpu.core_type = #tpu.core_type<tc>, window_params = [{transform_indices = @transform_0, window_bounds = array<i64: 16, 96>}, {pipeline_mode = #tpu.pipeline_mode<synchronous>, transform_indices = @transform_1, window_bounds = array<i64: 96, 32>}, {pipeline_mode = #tpu.pipeline_mode<synchronous>, transform_indices = @transform_2, window_bounds = array<i64: 1, 32>}, {transform_indices = @transform_3, window_bounds = array<i64: 16, 32>}]} {
    %c0 = arith.constant 0 : index
    %c0_0 = arith.constant 0 : index
    %0 = vector.load %arg1[%c0, %c0_0] : memref<16x96xbf16, #tpu.memory_space<vmem>>, vector<16x96xbf16>
    %c0_1 = arith.constant 0 : index
    %c0_2 = arith.constant 0 : index
    %1 = vector.load %arg2[%c0_1, %c0_2] : memref<96x32xbf16, #tpu.memory_space<vmem>>, vector<96x32xbf16>
    %cst = arith.constant dense<0.000000e+00> : vector<16x32xf32>
    %2 = tpu.matmul %0, %1, %cst {dimension_numbers = #tpu.dot_dimension_numbers<[1], [0], [0], [1], [0, 0, 1, 1], [], []>} : vector<16x96xbf16>, vector<96x32xbf16>, vector<16x32xf32> -> vector<16x32xf32>
    %c0_3 = arith.constant 0 : index
    %c0_4 = arith.constant 0 : index
    %3 = vector.load %arg3[%c0_3, %c0_4] : memref<1x32xf32, #tpu.memory_space<vmem>>, vector<1x32xf32>
    %4 = vector.broadcast %3 : vector<1x32xf32> to vector<16x32xf32>
    %5 = arith.addf %2, %4 : vector<16x32xf32>
    %c0_5 = arith.constant 0 : index
    %c0_6 = arith.constant 0 : index
    %6 = vector.load %arg4[%c0_5, %c0_6] : memref<16x32xf32, #tpu.memory_space<vmem>>, vector<16x32xf32>
    tpu.vector_store %arg4[%c0_5, %c0_6], %5 {strides = array<i32>} : memref<16x32xf32, #tpu.memory_space<vmem>>, vector<16x32xf32>,
    return
  }
  func.func @transform_0(%arg0: i32) -> (i32, i32) {
    %c0_i32 = arith.constant 0 : i32
    %c0_i32_0 = arith.constant 0 : i32
    return %arg0, %c0_i32 : i32, i32
  }
  func.func @transform_1(%arg0: i32) -> (i32, i32) {
    %c0_i32 = arith.constant 0 : i32
    %c0_i32_0 = arith.constant 0 : i32
    %c0_i32_1 = arith.constant 0 : i32
    return %c0_i32, %c0_i32_0 : i32, i32
  }
  func.func @transform_2(%arg0: i32) -> (i32, i32) {
    %c0_i32 = arith.constant 0 : i32
    %c0_i32_0 = arith.constant 0 : i32
    %c0_i32_1 = arith.constant 0 : i32
    return %c0_i32, %c0_i32_0 : i32, i32
  }
  func.func @transform_3(%arg0: i32) -> (i32, i32) {
    %c0_i32 = arith.constant 0 : i32
    %c0_i32_0 = arith.constant 0 : i32
    return %arg0, %c0_i32 : i32, i32
  }
}

module attributes {stable_mosaic.version = 11 : i64} {
  func.func @_ffn_kernel(%arg0: i32, %arg1: memref<16x32xf32, #tpu.memory_space<vmem>>, %arg2: memref<1x32xf32, #tpu.memory_space<vmem>>, %arg3: memref<1x32xf32, #tpu.memory_space<vmem>>, %arg4: memref<32x64xbf16, #tpu.memory_space<vmem>>, %arg5: memref<1x64xf32, #tpu.memory_space<vmem>>, %arg6: memref<64x32xbf16, #tpu.memory_space<vmem>>, %arg7: memref<1x32xf32, #tpu.memory_space<vmem>>, %arg8: memref<16x32xf32, #tpu.memory_space<vmem>>) attributes {dimension_semantics = [#tpu.dimension_semantics<parallel>], iteration_bounds = array<i64: 1>, scalar_prefetch = 0 : i64, scratch_operands = 0 : i64, tpu.core_type = #tpu.core_type<tc>, window_params = [{transform_indices = @transform_0, window_bounds = array<i64: 16, 32>}, {pipeline_mode = #tpu.pipeline_mode<synchronous>, transform_indices = @transform_1, window_bounds = array<i64: 1, 32>}, {pipeline_mode = #tpu.pipeline_mode<synchronous>, transform_indices = @transform_2, window_bounds = array<i64: 1, 32>}, {pipeline_mode = #tpu.pipeline_mode<synchronous>, transform_indices = @transform_3, window_bounds = array<i64: 32, 64>}, {pipeline_mode = #tpu.pipeline_mode<synchronous>, transform_indices = @transform_4, window_bounds = array<i64: 1, 64>}, {pipeline_mode = #tpu.pipeline_mode<synchronous>, transform_indices = @transform_5, window_bounds = array<i64: 64, 32>}, {pipeline_mode = #tpu.pipeline_mode<synchronous>, transform_indices = @transform_6, window_bounds = array<i64: 1, 32>}, {transform_indices = @transform_7, window_bounds = array<i64: 16, 32>}]} {
    %c0 = arith.constant 0 : index
    %c0_0 = arith.constant 0 : index
    %0 = vector.load %arg1[%c0, %c0_0] : memref<16x32xf32, #tpu.memory_space<vmem>>, vector<16x32xf32>
    %c0_1 = arith.constant 0 : index
    %c0_2 = arith.constant 0 : index
    %1 = vector.load %arg2[%c0_1, %c0_2] : memref<1x32xf32, #tpu.memory_space<vmem>>, vector<1x32xf32>
    %c0_3 = arith.constant 0 : index
    %c0_4 = arith.constant 0 : index
    %2 = vector.load %arg3[%c0_3, %c0_4] : memref<1x32xf32, #tpu.memory_space<vmem>>, vector<1x32xf32>
    %cst = arith.constant dense<0.000000e+00> : vector<16xf32>
    %3 = vector.multi_reduction <add>, %0, %cst [1] : vector<16x32xf32> to vector<16xf32>
    %4 = vector.shape_cast %3 : vector<16xf32> to vector<16x1xf32>
    %cst_5 = arith.constant 3.200000e+01 : f32
    %5 = vector.broadcast %cst_5 : f32 to vector<16x1xf32>
    %6 = arith.divf %4, %5 : vector<16x1xf32>
    %7 = vector.broadcast %6 : vector<16x1xf32> to vector<16x32xf32>
    %8 = arith.subf %0, %7 : vector<16x32xf32>
    %9 = arith.mulf %8, %8 : vector<16x32xf32>
    %cst_6 = arith.constant dense<0.000000e+00> : vector<16xf32>
    %10 = vector.multi_reduction <add>, %9, %cst_6 [1] : vector<16x32xf32> to vector<16xf32>
    %11 = vector.shape_cast %10 : vector<16xf32> to vector<16x1xf32>
    %cst_7 = arith.constant 3.200000e+01 : f32
    %12 = vector.broadcast %cst_7 : f32 to vector<16x1xf32>
    %13 = arith.divf %11, %12 : vector<16x1xf32>
    %14 = vector.broadcast %6 : vector<16x1xf32> to vector<16x32xf32>
    %15 = arith.subf %0, %14 : vector<16x32xf32>
    %cst_8 = arith.constant 9.99999974E-6 : f32
    %16 = vector.broadcast %cst_8 : f32 to vector<16x1xf32>
    %17 = arith.addf %13, %16 : vector<16x1xf32>
    %18 = math.rsqrt %17 : vector<16x1xf32>
    %19 = vector.broadcast %18 : vector<16x1xf32> to vector<16x32xf32>
    %20 = arith.mulf %15, %19 : vector<16x32xf32>
    %21 = vector.broadcast %1 : vector<1x32xf32> to vector<16x32xf32>
    %22 = arith.mulf %20, %21 : vector<16x32xf32>
    %23 = vector.broadcast %2 : vector<1x32xf32> to vector<16x32xf32>
    %24 = arith.addf %22, %23 : vector<16x32xf32>
    %c0_9 = arith.constant 0 : index
    %c0_10 = arith.constant 0 : index
    %25 = vector.load %arg4[%c0_9, %c0_10] : memref<32x64xbf16, #tpu.memory_space<vmem>>, vector<32x64xbf16>
    %26 = arith.truncf %24 : vector<16x32xf32> to vector<16x32xbf16>
    %cst_11 = arith.constant dense<0.000000e+00> : vector<16x64xf32>
    %27 = tpu.matmul %26, %25, %cst_11 {dimension_numbers = #tpu.dot_dimension_numbers<[1], [0], [0], [1], [0, 0, 1, 1], [], []>} : vector<16x32xbf16>, vector<32x64xbf16>, vector<16x64xf32> -> vector<16x64xf32>
    %c0_12 = arith.constant 0 : index
    %c0_13 = arith.constant 0 : index
    %28 = vector.load %arg5[%c0_12, %c0_13] : memref<1x64xf32, #tpu.memory_space<vmem>>, vector<1x64xf32>
    %29 = vector.broadcast %28 : vector<1x64xf32> to vector<16x64xf32>
    %30 = arith.addf %27, %29 : vector<16x64xf32>
    %cst_14 = arith.constant 0.000000e+00 : f32
    %31 = vector.broadcast %cst_14 : f32 to vector<16x64xf32>
    %32 = arith.maximumf %30, %31 : vector<16x64xf32>
    %c0_15 = arith.constant 0 : index
    %c0_16 = arith.constant 0 : index
    %33 = vector.load %arg6[%c0_15, %c0_16] : memref<64x32xbf16, #tpu.memory_space<vmem>>, vector<64x32xbf16>
    %34 = arith.truncf %32 : vector<16x64xf32> to vector<16x64xbf16>
    %cst_17 = arith.constant dense<0.000000e+00> : vector<16x32xf32>
    %35 = tpu.matmul %34, %33, %cst_17 {dimension_numbers = #tpu.dot_dimension_numbers<[1], [0], [0], [1], [0, 0, 1, 1], [], []>} : vector<16x64xbf16>, vector<64x32xbf16>, vector<16x32xf32> -> vector<16x32xf32>
    %c0_18 = arith.constant 0 : index
    %c0_19 = arith.constant 0 : index
    %36 = vector.load %arg7[%c0_18, %c0_19] : memref<1x32xf32, #tpu.memory_space<vmem>>, vector<1x32xf32>
    %37 = vector.broadcast %36 : vector<1x32xf32> to vector<16x32xf32>
    %38 = arith.addf %35, %37 : vector<16x32xf32>
    %cst_20 = arith.constant 5.000000e-01 : f32
    %39 = vector.broadcast %cst_20 : f32 to vector<16x32xf32>
    %40 = arith.mulf %39, %38 : vector<16x32xf32>
    %41 = arith.addf %0, %40 : vector<16x32xf32>
    %c0_21 = arith.constant 0 : index
    %c0_22 = arith.constant 0 : index
    %42 = vector.load %arg8[%c0_21, %c0_22] : memref<16x32xf32, #tpu.memory_space<vmem>>, vector<16x32xf32>
    tpu.vector_store %arg8[%c0_21, %c0_22], %41 {strides = array<i32>} : memref<16x32xf32, #tpu.memory_space<vmem>>, vector<16x32xf32>,
    return
  }
  func.func @transform_0(%arg0: i32) -> (i32, i32) {
    %c0_i32 = arith.constant 0 : i32
    %c0_i32_0 = arith.constant 0 : i32
    return %arg0, %c0_i32 : i32, i32
  }
  func.func @transform_1(%arg0: i32) -> (i32, i32) {
    %c0_i32 = arith.constant 0 : i32
    %c0_i32_0 = arith.constant 0 : i32
    %c0_i32_1 = arith.constant 0 : i32
    return %c0_i32, %c0_i32_0 : i32, i32
  }
  func.func @transform_2(%arg0: i32) -> (i32, i32) {
    %c0_i32 = arith.constant 0 : i32
    %c0_i32_0 = arith.constant 0 : i32
    %c0_i32_1 = arith.constant 0 : i32
    return %c0_i32, %c0_i32_0 : i32, i32
  }
  func.func @transform_3(%arg0: i32) -> (i32, i32) {
    %c0_i32 = arith.constant 0 : i32
    %c0_i32_0 = arith.constant 0 : i32
    %c0_i32_1 = arith.constant 0 : i32
    return %c0_i32, %c0_i32_0 : i32, i32
  }
  func.func @transform_4(%arg0: i32) -> (i32, i32) {
    %c0_i32 = arith.constant 0 : i32
    %c0_i32_0 = arith.constant 0 : i32
    %c0_i32_1 = arith.constant 0 : i32
    return %c0_i32, %c0_i32_0 : i32, i32
  }
  func.func @transform_5(%arg0: i32) -> (i32, i32) {
    %c0_i32 = arith.constant 0 : i32
    %c0_i32_0 = arith.constant 0 : i32
    %c0_i32_1 = arith.constant 0 : i32
    return %c0_i32, %c0_i32_0 : i32, i32
  }
  func.func @transform_6(%arg0: i32) -> (i32, i32) {
    %c0_i32 = arith.constant 0 : i32
    %c0_i32_0 = arith.constant 0 : i32
    %c0_i32_1 = arith.constant 0 : i32
    return %c0_i32, %c0_i32_0 : i32, i32
  }
  func.func @transform_7(%arg0: i32) -> (i32, i32) {
    %c0_i32 = arith.constant 0 : i32
    %c0_i32_0 = arith.constant 0 : i32
    return %arg0, %c0_i32 : i32, i32
  }
}

module attributes {stable_mosaic.version = 11 : i64} {
  func.func @_qkv_kernel(%arg0: i32, %arg1: memref<16x32xf32, #tpu.memory_space<vmem>>, %arg2: memref<1x32xf32, #tpu.memory_space<vmem>>, %arg3: memref<1x32xf32, #tpu.memory_space<vmem>>, %arg4: memref<32x96xbf16, #tpu.memory_space<vmem>>, %arg5: memref<1x96xf32, #tpu.memory_space<vmem>>, %arg6: memref<4x16x8xbf16, #tpu.memory_space<vmem>>, %arg7: memref<4x16x8xbf16, #tpu.memory_space<vmem>>, %arg8: memref<4x16x8xbf16, #tpu.memory_space<vmem>>) attributes {dimension_semantics = [#tpu.dimension_semantics<parallel>], iteration_bounds = array<i64: 1>, scalar_prefetch = 0 : i64, scratch_operands = 0 : i64, tpu.core_type = #tpu.core_type<tc>, window_params = [{transform_indices = @transform_0, window_bounds = array<i64: 16, 32>}, {pipeline_mode = #tpu.pipeline_mode<synchronous>, transform_indices = @transform_1, window_bounds = array<i64: 1, 32>}, {pipeline_mode = #tpu.pipeline_mode<synchronous>, transform_indices = @transform_2, window_bounds = array<i64: 1, 32>}, {pipeline_mode = #tpu.pipeline_mode<synchronous>, transform_indices = @transform_3, window_bounds = array<i64: 32, 96>}, {pipeline_mode = #tpu.pipeline_mode<synchronous>, transform_indices = @transform_4, window_bounds = array<i64: 1, 96>}, {transform_indices = @transform_5, window_bounds = array<i64: 4, 16, 8>}, {transform_indices = @transform_6, window_bounds = array<i64: 4, 16, 8>}, {transform_indices = @transform_7, window_bounds = array<i64: 4, 16, 8>}]} {
    %c0 = arith.constant 0 : index
    %c0_0 = arith.constant 0 : index
    %0 = vector.load %arg1[%c0, %c0_0] : memref<16x32xf32, #tpu.memory_space<vmem>>, vector<16x32xf32>
    %c0_1 = arith.constant 0 : index
    %c0_2 = arith.constant 0 : index
    %1 = vector.load %arg2[%c0_1, %c0_2] : memref<1x32xf32, #tpu.memory_space<vmem>>, vector<1x32xf32>
    %c0_3 = arith.constant 0 : index
    %c0_4 = arith.constant 0 : index
    %2 = vector.load %arg3[%c0_3, %c0_4] : memref<1x32xf32, #tpu.memory_space<vmem>>, vector<1x32xf32>
    %cst = arith.constant dense<0.000000e+00> : vector<16xf32>
    %3 = vector.multi_reduction <add>, %0, %cst [1] : vector<16x32xf32> to vector<16xf32>
    %4 = vector.shape_cast %3 : vector<16xf32> to vector<16x1xf32>
    %cst_5 = arith.constant 3.200000e+01 : f32
    %5 = vector.broadcast %cst_5 : f32 to vector<16x1xf32>
    %6 = arith.divf %4, %5 : vector<16x1xf32>
    %7 = vector.broadcast %6 : vector<16x1xf32> to vector<16x32xf32>
    %8 = arith.subf %0, %7 : vector<16x32xf32>
    %9 = arith.mulf %8, %8 : vector<16x32xf32>
    %cst_6 = arith.constant dense<0.000000e+00> : vector<16xf32>
    %10 = vector.multi_reduction <add>, %9, %cst_6 [1] : vector<16x32xf32> to vector<16xf32>
    %11 = vector.shape_cast %10 : vector<16xf32> to vector<16x1xf32>
    %cst_7 = arith.constant 3.200000e+01 : f32
    %12 = vector.broadcast %cst_7 : f32 to vector<16x1xf32>
    %13 = arith.divf %11, %12 : vector<16x1xf32>
    %14 = vector.broadcast %6 : vector<16x1xf32> to vector<16x32xf32>
    %15 = arith.subf %0, %14 : vector<16x32xf32>
    %cst_8 = arith.constant 9.99999974E-6 : f32
    %16 = vector.broadcast %cst_8 : f32 to vector<16x1xf32>
    %17 = arith.addf %13, %16 : vector<16x1xf32>
    %18 = math.rsqrt %17 : vector<16x1xf32>
    %19 = vector.broadcast %18 : vector<16x1xf32> to vector<16x32xf32>
    %20 = arith.mulf %15, %19 : vector<16x32xf32>
    %21 = vector.broadcast %1 : vector<1x32xf32> to vector<16x32xf32>
    %22 = arith.mulf %20, %21 : vector<16x32xf32>
    %23 = vector.broadcast %2 : vector<1x32xf32> to vector<16x32xf32>
    %24 = arith.addf %22, %23 : vector<16x32xf32>
    %c0_9 = arith.constant 0 : index
    %c0_10 = arith.constant 0 : index
    %25 = vector.load %arg4[%c0_9, %c0_10] : memref<32x96xbf16, #tpu.memory_space<vmem>>, vector<32x96xbf16>
    %26 = arith.truncf %24 : vector<16x32xf32> to vector<16x32xbf16>
    %cst_11 = arith.constant dense<0.000000e+00> : vector<16x96xf32>
    %27 = tpu.matmul %26, %25, %cst_11 {dimension_numbers = #tpu.dot_dimension_numbers<[1], [0], [0], [1], [0, 0, 1, 1], [], []>} : vector<16x32xbf16>, vector<32x96xbf16>, vector<16x96xf32> -> vector<16x96xf32>
    %c0_12 = arith.constant 0 : index
    %c0_13 = arith.constant 0 : index
    %28 = vector.load %arg5[%c0_12, %c0_13] : memref<1x96xf32, #tpu.memory_space<vmem>>, vector<1x96xf32>
    %29 = vector.broadcast %28 : vector<1x96xf32> to vector<16x96xf32>
    %30 = arith.addf %27, %29 : vector<16x96xf32>
    %31 = vector.extract_strided_slice %30 {offsets = [0, 0], sizes = [16, 8], strides = [1, 1]} : vector<16x96xf32> to vector<16x8xf32>
    %cst_14 = arith.constant 0.353553385 : f32
    %32 = vector.broadcast %cst_14 : f32 to vector<16x8xf32>
    %33 = arith.mulf %31, %32 : vector<16x8xf32>
    %34 = arith.truncf %33 : vector<16x8xf32> to vector<16x8xbf16>
    %c0_15 = arith.constant 0 : index
    %c0_16 = arith.constant 0 : index
    %c0_17 = arith.constant 0 : index
    %35 = vector.load %arg6[%c0_15, %c0_16, %c0_17] : memref<4x16x8xbf16, #tpu.memory_space<vmem>>, vector<1x16x8xbf16>
    %36 = vector.shape_cast %35 : vector<1x16x8xbf16> to vector<16x8xbf16>
    %37 = vector.shape_cast %34 : vector<16x8xbf16> to vector<1x16x8xbf16>
    tpu.vector_store %arg6[%c0_15, %c0_16, %c0_17], %37 {strides = array<i32>} : memref<4x16x8xbf16, #tpu.memory_space<vmem>>, vector<1x16x8xbf16>,
    %38 = vector.extract_strided_slice %30 {offsets = [0, 32], sizes = [16, 8], strides = [1, 1]} : vector<16x96xf32> to vector<16x8xf32>
    %39 = arith.truncf %38 : vector<16x8xf32> to vector<16x8xbf16>
    %c0_18 = arith.constant 0 : index
    %c0_19 = arith.constant 0 : index
    %c0_20 = arith.constant 0 : index
    %40 = vector.load %arg7[%c0_18, %c0_19, %c0_20] : memref<4x16x8xbf16, #tpu.memory_space<vmem>>, vector<1x16x8xbf16>
    %41 = vector.shape_cast %40 : vector<1x16x8xbf16> to vector<16x8xbf16>
    %42 = vector.shape_cast %39 : vector<16x8xbf16> to vector<1x16x8xbf16>
    tpu.vector_store %arg7[%c0_18, %c0_19, %c0_20], %42 {strides = array<i32>} : memref<4x16x8xbf16, #tpu.memory_space<vmem>>, vector<1x16x8xbf16>,
    %43 = vector.extract_strided_slice %30 {offsets = [0, 64], sizes = [16, 8], strides = [1, 1]} : vector<16x96xf32> to vector<16x8xf32>
    %44 = arith.truncf %43 : vector<16x8xf32> to vector<16x8xbf16>
    %c0_21 = arith.constant 0 : index
    %c0_22 = arith.constant 0 : index
    %c0_23 = arith.constant 0 : index
    %45 = vector.load %arg8[%c0_21, %c0_22, %c0_23] : memref<4x16x8xbf16, #tpu.memory_space<vmem>>, vector<1x16x8xbf16>
    %46 = vector.shape_cast %45 : vector<1x16x8xbf16> to vector<16x8xbf16>
    %47 = vector.shape_cast %44 : vector<16x8xbf16> to vector<1x16x8xbf16>
    tpu.vector_store %arg8[%c0_21, %c0_22, %c0_23], %47 {strides = array<i32>} : memref<4x16x8xbf16, #tpu.memory_space<vmem>>, vector<1x16x8xbf16>,
    %48 = vector.extract_strided_slice %30 {offsets = [0, 8], sizes = [16, 8], strides = [1, 1]} : vector<16x96xf32> to vector<16x8xf32>
    %cst_24 = arith.constant 0.353553385 : f32
    %49 = vector.broadcast %cst_24 : f32 to vector<16x8xf32>
    %50 = arith.mulf %48, %49 : vector<16x8xf32>
    %51 = arith.truncf %50 : vector<16x8xf32> to vector<16x8xbf16>
    %c1 = arith.constant 1 : index
    %c0_25 = arith.constant 0 : index
    %c0_26 = arith.constant 0 : index
    %52 = vector.load %arg6[%c1, %c0_25, %c0_26] : memref<4x16x8xbf16, #tpu.memory_space<vmem>>, vector<1x16x8xbf16>
    %53 = vector.shape_cast %52 : vector<1x16x8xbf16> to vector<16x8xbf16>
    %54 = vector.shape_cast %51 : vector<16x8xbf16> to vector<1x16x8xbf16>
    tpu.vector_store %arg6[%c1, %c0_25, %c0_26], %54 {strides = array<i32>} : memref<4x16x8xbf16, #tpu.memory_space<vmem>>, vector<1x16x8xbf16>,
    %55 = vector.extract_strided_slice %30 {offsets = [0, 40], sizes = [16, 8], strides = [1, 1]} : vector<16x96xf32> to vector<16x8xf32>
    %56 = arith.truncf %55 : vector<16x8xf32> to vector<16x8xbf16>
    %c1_27 = arith.constant 1 : index
    %c0_28 = arith.constant 0 : index
    %c0_29 = arith.constant 0 : index
    %57 = vector.load %arg7[%c1_27, %c0_28, %c0_29] : memref<4x16x8xbf16, #tpu.memory_space<vmem>>, vector<1x16x8xbf16>
    %58 = vector.shape_cast %57 : vector<1x16x8xbf16> to vector<16x8xbf16>
    %59 = vector.shape_cast %56 : vector<16x8xbf16> to vector<1x16x8xbf16>
    tpu.vector_store %arg7[%c1_27, %c0_28, %c0_29], %59 {strides = array<i32>} : memref<4x16x8xbf16, #tpu.memory_space<vmem>>, vector<1x16x8xbf16>,
    %60 = vector.extract_strided_slice %30 {offsets = [0, 72], sizes = [16, 8], strides = [1, 1]} : vector<16x96xf32> to vector<16x8xf32>
    %61 = arith.truncf %60 : vector<16x8xf32> to vector<16x8xbf16>
    %c1_30 = arith.constant 1 : index
    %c0_31 = arith.constant 0 : index
    %c0_32 = arith.constant 0 : index
    %62 = vector.load %arg8[%c1_30, %c0_31, %c0_32] : memref<4x16x8xbf16, #tpu.memory_space<vmem>>, vector<1x16x8xbf16>
    %63 = vector.shape_cast %62 : vector<1x16x8xbf16> to vector<16x8xbf16>
    %64 = vector.shape_cast %61 : vector<16x8xbf16> to vector<1x16x8xbf16>
    tpu.vector_store %arg8[%c1_30, %c0_31, %c0_32], %64 {strides = array<i32>} : memref<4x16x8xbf16, #tpu.memory_space<vmem>>, vector<1x16x8xbf16>,
    %65 = vector.extract_strided_slice %30 {offsets = [0, 16], sizes = [16, 8], strides = [1, 1]} : vector<16x96xf32> to vector<16x8xf32>
    %cst_33 = arith.constant 0.353553385 : f32
    %66 = vector.broadcast %cst_33 : f32 to vector<16x8xf32>
    %67 = arith.mulf %65, %66 : vector<16x8xf32>
    %68 = arith.truncf %67 : vector<16x8xf32> to vector<16x8xbf16>
    %c2 = arith.constant 2 : index
    %c0_34 = arith.constant 0 : index
    %c0_35 = arith.constant 0 : index
    %69 = vector.load %arg6[%c2, %c0_34, %c0_35] : memref<4x16x8xbf16, #tpu.memory_space<vmem>>, vector<1x16x8xbf16>
    %70 = vector.shape_cast %69 : vector<1x16x8xbf16> to vector<16x8xbf16>
    %71 = vector.shape_cast %68 : vector<16x8xbf16> to vector<1x16x8xbf16>
    tpu.vector_store %arg6[%c2, %c0_34, %c0_35], %71 {strides = array<i32>} : memref<4x16x8xbf16, #tpu.memory_space<vmem>>, vector<1x16x8xbf16>,
    %72 = vector.extract_strided_slice %30 {offsets = [0, 48], sizes = [16, 8], strides = [1, 1]} : vector<16x96xf32> to vector<16x8xf32>
    %73 = arith.truncf %72 : vector<16x8xf32> to vector<16x8xbf16>
    %c2_36 = arith.constant 2 : index
    %c0_37 = arith.constant 0 : index
    %c0_38 = arith.constant 0 : index
    %74 = vector.load %arg7[%c2_36, %c0_37, %c0_38] : memref<4x16x8xbf16, #tpu.memory_space<vmem>>, vector<1x16x8xbf16>
    %75 = vector.shape_cast %74 : vector<1x16x8xbf16> to vector<16x8xbf16>
    %76 = vector.shape_cast %73 : vector<16x8xbf16> to vector<1x16x8xbf16>
    tpu.vector_store %arg7[%c2_36, %c0_37, %c0_38], %76 {strides = array<i32>} : memref<4x16x8xbf16, #tpu.memory_space<vmem>>, vector<1x16x8xbf16>,
    %77 = vector.extract_strided_slice %30 {offsets = [0, 80], sizes = [16, 8], strides = [1, 1]} : vector<16x96xf32> to vector<16x8xf32>
    %78 = arith.truncf %77 : vector<16x8xf32> to vector<16x8xbf16>
    %c2_39 = arith.constant 2 : index
    %c0_40 = arith.constant 0 : index
    %c0_41 = arith.constant 0 : index
    %79 = vector.load %arg8[%c2_39, %c0_40, %c0_41] : memref<4x16x8xbf16, #tpu.memory_space<vmem>>, vector<1x16x8xbf16>
    %80 = vector.shape_cast %79 : vector<1x16x8xbf16> to vector<16x8xbf16>
    %81 = vector.shape_cast %78 : vector<16x8xbf16> to vector<1x16x8xbf16>
    tpu.vector_store %arg8[%c2_39, %c0_40, %c0_41], %81 {strides = array<i32>} : memref<4x16x8xbf16, #tpu.memory_space<vmem>>, vector<1x16x8xbf16>,
    %82 = vector.extract_strided_slice %30 {offsets = [0, 24], sizes = [16, 8], strides = [1, 1]} : vector<16x96xf32> to vector<16x8xf32>
    %cst_42 = arith.constant 0.353553385 : f32
    %83 = vector.broadcast %cst_42 : f32 to vector<16x8xf32>
    %84 = arith.mulf %82, %83 : vector<16x8xf32>
    %85 = arith.truncf %84 : vector<16x8xf32> to vector<16x8xbf16>
    %c3 = arith.constant 3 : index
    %c0_43 = arith.constant 0 : index
    %c0_44 = arith.constant 0 : index
    %86 = vector.load %arg6[%c3, %c0_43, %c0_44] : memref<4x16x8xbf16, #tpu.memory_space<vmem>>, vector<1x16x8xbf16>
    %87 = vector.shape_cast %86 : vector<1x16x8xbf16> to vector<16x8xbf16>
    %88 = vector.shape_cast %85 : vector<16x8xbf16> to vector<1x16x8xbf16>
    tpu.vector_store %arg6[%c3, %c0_43, %c0_44], %88 {strides = array<i32>} : memref<4x16x8xbf16, #tpu.memory_space<vmem>>, vector<1x16x8xbf16>,
    %89 = vector.extract_strided_slice %30 {offsets = [0, 56], sizes = [16, 8], strides = [1, 1]} : vector<16x96xf32> to vector<16x8xf32>
    %90 = arith.truncf %89 : vector<16x8xf32> to vector<16x8xbf16>
    %c3_45 = arith.constant 3 : index
    %c0_46 = arith.constant 0 : index
    %c0_47 = arith.constant 0 : index
    %91 = vector.load %arg7[%c3_45, %c0_46, %c0_47] : memref<4x16x8xbf16, #tpu.memory_space<vmem>>, vector<1x16x8xbf16>
    %92 = vector.shape_cast %91 : vector<1x16x8xbf16> to vector<16x8xbf16>
    %93 = vector.shape_cast %90 : vector<16x8xbf16> to vector<1x16x8xbf16>
    tpu.vector_store %arg7[%c3_45, %c0_46, %c0_47], %93 {strides = array<i32>} : memref<4x16x8xbf16, #tpu.memory_space<vmem>>, vector<1x16x8xbf16>,
    %94 = vector.extract_strided_slice %30 {offsets = [0, 88], sizes = [16, 8], strides = [1, 1]} : vector<16x96xf32> to vector<16x8xf32>
    %95 = arith.truncf %94 : vector<16x8xf32> to vector<16x8xbf16>
    %c3_48 = arith.constant 3 : index
    %c0_49 = arith.constant 0 : index
    %c0_50 = arith.constant 0 : index
    %96 = vector.load %arg8[%c3_48, %c0_49, %c0_50] : memref<4x16x8xbf16, #tpu.memory_space<vmem>>, vector<1x16x8xbf16>
    %97 = vector.shape_cast %96 : vector<1x16x8xbf16> to vector<16x8xbf16>
    %98 = vector.shape_cast %95 : vector<16x8xbf16> to vector<1x16x8xbf16>
    tpu.vector_store %arg8[%c3_48, %c0_49, %c0_50], %98 {strides = array<i32>} : memref<4x16x8xbf16, #tpu.memory_space<vmem>>, vector<1x16x8xbf16>,
    return
  }
  func.func @transform_0(%arg0: i32) -> (i32, i32) {
    %c0_i32 = arith.constant 0 : i32
    %c0_i32_0 = arith.constant 0 : i32
    return %arg0, %c0_i32 : i32, i32
  }
  func.func @transform_1(%arg0: i32) -> (i32, i32) {
    %c0_i32 = arith.constant 0 : i32
    %c0_i32_0 = arith.constant 0 : i32
    %c0_i32_1 = arith.constant 0 : i32
    return %c0_i32, %c0_i32_0 : i32, i32
  }
  func.func @transform_2(%arg0: i32) -> (i32, i32) {
    %c0_i32 = arith.constant 0 : i32
    %c0_i32_0 = arith.constant 0 : i32
    %c0_i32_1 = arith.constant 0 : i32
    return %c0_i32, %c0_i32_0 : i32, i32
  }
  func.func @transform_3(%arg0: i32) -> (i32, i32) {
    %c0_i32 = arith.constant 0 : i32
    %c0_i32_0 = arith.constant 0 : i32
    %c0_i32_1 = arith.constant 0 : i32
    return %c0_i32, %c0_i32_0 : i32, i32
  }
  func.func @transform_4(%arg0: i32) -> (i32, i32) {
    %c0_i32 = arith.constant 0 : i32
    %c0_i32_0 = arith.constant 0 : i32
    %c0_i32_1 = arith.constant 0 : i32
    return %c0_i32, %c0_i32_0 : i32, i32
  }
  func.func @transform_5(%arg0: i32) -> (i32, i32, i32) {
    %c0_i32 = arith.constant 0 : i32
    %c0_i32_0 = arith.constant 0 : i32
    %c0_i32_1 = arith.constant 0 : i32
    return %c0_i32, %arg0, %c0_i32_0 : i32, i32, i32
  }
  func.func @transform_6(%arg0: i32) -> (i32, i32, i32) {
    %c0_i32 = arith.constant 0 : i32
    %c0_i32_0 = arith.constant 0 : i32
    %c0_i32_1 = arith.constant 0 : i32
    return %c0_i32, %arg0, %c0_i32_0 : i32, i32, i32
  }
  func.func @transform_7(%arg0: i32) -> (i32, i32, i32) {
    %c0_i32 = arith.constant 0 : i32
    %c0_i32_0 = arith.constant 0 : i32
    %c0_i32_1 = arith.constant 0 : i32
    return %c0_i32, %arg0, %c0_i32_0 : i32, i32, i32
  }
}

module attributes {stable_mosaic.version = 11 : i64} {
  func.func @_attn_kernel(%arg0: i32, %arg1: i32, %arg2: memref<1x8x32xf32, #tpu.memory_space<vmem>>, %arg3: memref<4x1x8x8xbf16, #tpu.memory_space<vmem>>, %arg4: memref<4x1x8x8xbf16, #tpu.memory_space<vmem>>, %arg5: memref<4x1x8x8xbf16, #tpu.memory_space<vmem>>, %arg6: memref<1x1x8xf32, #tpu.memory_space<vmem>>, %arg7: memref<1x8x128xbf16, #tpu.memory_space<vmem>>, %arg8: memref<32x32xbf16, #tpu.memory_space<vmem>>, %arg9: memref<1x32xf32, #tpu.memory_space<vmem>>, %arg10: memref<1x8x32xf32, #tpu.memory_space<vmem>>) attributes {dimension_semantics = [#tpu.dimension_semantics<parallel>, #tpu.dimension_semantics<parallel>], iteration_bounds = array<i64: 2, 1>, scalar_prefetch = 0 : i64, scratch_operands = 0 : i64, tpu.core_type = #tpu.core_type<tc>, window_params = [{transform_indices = @transform_0, window_bounds = array<i64: 1, 8, 32>}, {transform_indices = @transform_1, window_bounds = array<i64: 4, 1, 8, 8>}, {transform_indices = @transform_2, window_bounds = array<i64: 4, 1, 8, 8>}, {transform_indices = @transform_3, window_bounds = array<i64: 4, 1, 8, 8>}, {transform_indices = @transform_4, window_bounds = array<i64: 1, 1, 8>}, {transform_indices = @transform_5, window_bounds = array<i64: 1, 8, 128>}, {pipeline_mode = #tpu.pipeline_mode<synchronous>, transform_indices = @transform_6, window_bounds = array<i64: 32, 32>}, {pipeline_mode = #tpu.pipeline_mode<synchronous>, transform_indices = @transform_7, window_bounds = array<i64: 1, 32>}, {transform_indices = @transform_8, window_bounds = array<i64: 1, 8, 32>}]} {
    %c0 = arith.constant 0 : index
    %c0_0 = arith.constant 0 : index
    %c0_1 = arith.constant 0 : index
    %0 = vector.load %arg6[%c0, %c0_0, %c0_1] : memref<1x1x8xf32, #tpu.memory_space<vmem>>, vector<1x1x8xf32>
    %1 = vector.shape_cast %0 : vector<1x1x8xf32> to vector<1x8xf32>
    %cst = arith.constant 0.000000e+00 : f32
    %2 = vector.broadcast %cst : f32 to vector<1x8xf32>
    %3 = arith.cmpf oeq, %1, %2 : vector<1x8xf32>
    %c0_2 = arith.constant 0 : index
    %c0_3 = arith.constant 0 : index
    %c0_4 = arith.constant 0 : index
    %c0_5 = arith.constant 0 : index
    %4 = vector.load %arg3[%c0_2, %c0_3, %c0_4, %c0_5] : memref<4x1x8x8xbf16, #tpu.memory_space<vmem>>, vector<1x1x8x8xbf16>
    %5 = vector.shape_cast %4 : vector<1x1x8x8xbf16> to vector<8x8xbf16>
    %c0_6 = arith.constant 0 : index
    %c0_7 = arith.constant 0 : index
    %c0_8 = arith.constant 0 : index
    %c0_9 = arith.constant 0 : index
    %6 = vector.load %arg4[%c0_6, %c0_7, %c0_8, %c0_9] : memref<4x1x8x8xbf16, #tpu.memory_space<vmem>>, vector<1x1x8x8xbf16>
    %7 = vector.shape_cast %6 : vector<1x1x8x8xbf16> to vector<8x8xbf16>
    "tpu.trace_start"() <{level = 10 : i32, message = "qd,kd->qk"}> : () -> ()
    %cst_10 = arith.constant dense<0.000000e+00> : vector<8x8xf32>
    %8 = tpu.matmul %5, %7, %cst_10 {dimension_numbers = #tpu.dot_dimension_numbers<[1], [1], [0], [0], [0, 0, 1, 0], [], []>} : vector<8x8xbf16>, vector<8x8xbf16>, vector<8x8xf32> -> vector<8x8xf32>
    "tpu.trace_stop"() : () -> ()
    %c0_11 = arith.constant 0 : index
    %c0_12 = arith.constant 0 : index
    %c0_13 = arith.constant 0 : index
    %9 = vector.load %arg7[%c0_11, %c0_12, %c0_13] : memref<1x8x128xbf16, #tpu.memory_space<vmem>>, vector<1x8x128xbf16>
    %10 = vector.shape_cast %9 : vector<1x8x128xbf16> to vector<8x128xbf16>
    %cst_14 = arith.constant dense<0.000000e+00> : vector<8x128xf32>
    %11 = tpu.matmul %5, %10, %cst_14 {dimension_numbers = #tpu.dot_dimension_numbers<[1], [0], [0], [1], [0, 0, 1, 1], [], []>} : vector<8x8xbf16>, vector<8x128xbf16>, vector<8x128xf32> -> vector<8x128xf32>
    %c0_i32 = arith.constant 0 : i32
    %12 = tpu.dynamic_rotate %11 by %c0_i32 dim 1 {stride = 1 : si32, stride_dimension = 0 : si32} : vector<8x128xf32>, i32 -> vector<8x128xf32>
    %13 = vector.extract_strided_slice %12 {offsets = [0, 0], sizes = [8, 8], strides = [1, 1]} : vector<8x128xf32> to vector<8x8xf32>
    %14 = arith.addf %8, %13 : vector<8x8xf32>
    %cst_15 = arith.constant -3.40282347E+38 : f32
    %15 = vector.shape_cast %3 : vector<1x8xi1> to vector<1x8xi1>
    %16 = vector.broadcast %15 : vector<1x8xi1> to vector<8x8xi1>
    %17 = vector.broadcast %cst_15 : f32 to vector<8x8xf32>
    %18 = arith.select %16, %17, %14 : vector<8x8xi1>, vector<8x8xf32>
    %cst_16 = arith.constant dense<0xFF800000> : vector<8xf32>
    %19 = vector.multi_reduction <maximumf>, %18, %cst_16 [1] : vector<8x8xf32> to vector<8xf32>
    %20 = vector.shape_cast %19 : vector<8xf32> to vector<8x1xf32>
    %21 = vector.broadcast %20 : vector<8x1xf32> to vector<8x8xf32>
    %22 = arith.subf %18, %21 : vector<8x8xf32>
    %23 = math.exp %22 : vector<8x8xf32>
    %cst_17 = arith.constant dense<0.000000e+00> : vector<8xf32>
    %24 = vector.multi_reduction <add>, %23, %cst_17 [1] : vector<8x8xf32> to vector<8xf32>
    %25 = vector.shape_cast %24 : vector<8xf32> to vector<8x1xf32>
    %26 = tpu.reciprocal %25 {approx = true} : vector<8x1xf32> -> vector<8x1xf32>
    %27 = vector.broadcast %26 : vector<8x1xf32> to vector<8x8xf32>
    %28 = arith.mulf %23, %27 : vector<8x8xf32>
    %cst_18 = arith.constant 0.000000e+00 : f32
    %29 = vector.shape_cast %3 : vector<1x8xi1> to vector<1x8xi1>
    %30 = vector.broadcast %29 : vector<1x8xi1> to vector<8x8xi1>
    %31 = vector.broadcast %cst_18 : f32 to vector<8x8xf32>
    %32 = arith.select %30, %31, %28 : vector<8x8xi1>, vector<8x8xf32>
    %33 = arith.truncf %32 : vector<8x8xf32> to vector<8x8xbf16>
    %c0_19 = arith.constant 0 : index
    %c0_20 = arith.constant 0 : index
    %c0_21 = arith.constant 0 : index
    %c0_22 = arith.constant 0 : index
    %34 = vector.load %arg5[%c0_19, %c0_20, %c0_21, %c0_22] : memref<4x1x8x8xbf16, #tpu.memory_space<vmem>>, vector<1x1x8x8xbf16>
    %35 = vector.shape_cast %34 : vector<1x1x8x8xbf16> to vector<8x8xbf16>
    %cst_23 = arith.constant dense<0.000000e+00> : vector<8x8xf32>
    %36 = tpu.matmul %33, %35, %cst_23 {dimension_numbers = #tpu.dot_dimension_numbers<[1], [0], [0], [1], [0, 0, 1, 1], [], []>} : vector<8x8xbf16>, vector<8x8xbf16>, vector<8x8xf32> -> vector<8x8xf32>
    %c1 = arith.constant 1 : index
    %c0_24 = arith.constant 0 : index
    %c0_25 = arith.constant 0 : index
    %c0_26 = arith.constant 0 : index
    %37 = vector.load %arg3[%c1, %c0_24, %c0_25, %c0_26] : memref<4x1x8x8xbf16, #tpu.memory_space<vmem>>, vector<1x1x8x8xbf16>
    %38 = vector.shape_cast %37 : vector<1x1x8x8xbf16> to vector<8x8xbf16>
    %c1_27 = arith.constant 1 : index
    %c0_28 = arith.constant 0 : index
    %c0_29 = arith.constant 0 : index
    %c0_30 = arith.constant 0 : index
    %39 = vector.load %arg4[%c1_27, %c0_28, %c0_29, %c0_30] : memref<4x1x8x8xbf16, #tpu.memory_space<vmem>>, vector<1x1x8x8xbf16>
    %40 = vector.shape_cast %39 : vector<1x1x8x8xbf16> to vector<8x8xbf16>
    "tpu.trace_start"() <{level = 10 : i32, message = "qd,kd->qk"}> : () -> ()
    %cst_31 = arith.constant dense<0.000000e+00> : vector<8x8xf32>
    %41 = tpu.matmul %38, %40, %cst_31 {dimension_numbers = #tpu.dot_dimension_numbers<[1], [1], [0], [0], [0, 0, 1, 0], [], []>} : vector<8x8xbf16>, vector<8x8xbf16>, vector<8x8xf32> -> vector<8x8xf32>
    "tpu.trace_stop"() : () -> ()
    %c0_32 = arith.constant 0 : index
    %c0_33 = arith.constant 0 : index
    %c0_34 = arith.constant 0 : index
    %42 = vector.load %arg7[%c0_32, %c0_33, %c0_34] : memref<1x8x128xbf16, #tpu.memory_space<vmem>>, vector<1x8x128xbf16>
    %43 = vector.shape_cast %42 : vector<1x8x128xbf16> to vector<8x128xbf16>
    %cst_35 = arith.constant dense<0.000000e+00> : vector<8x128xf32>
    %44 = tpu.matmul %38, %43, %cst_35 {dimension_numbers = #tpu.dot_dimension_numbers<[1], [0], [0], [1], [0, 0, 1, 1], [], []>} : vector<8x8xbf16>, vector<8x128xbf16>, vector<8x128xf32> -> vector<8x128xf32>
    %c0_i32_36 = arith.constant 0 : i32
    %45 = tpu.dynamic_rotate %44 by %c0_i32_36 dim 1 {stride = 1 : si32, stride_dimension = 0 : si32} : vector<8x128xf32>, i32 -> vector<8x128xf32>
    %46 = vector.extract_strided_slice %45 {offsets = [0, 0], sizes = [8, 8], strides = [1, 1]} : vector<8x128xf32> to vector<8x8xf32>
    %47 = arith.addf %41, %46 : vector<8x8xf32>
    %cst_37 = arith.constant -3.40282347E+38 : f32
    %48 = vector.shape_cast %3 : vector<1x8xi1> to vector<1x8xi1>
    %49 = vector.broadcast %48 : vector<1x8xi1> to vector<8x8xi1>
    %50 = vector.broadcast %cst_37 : f32 to vector<8x8xf32>
    %51 = arith.select %49, %50, %47 : vector<8x8xi1>, vector<8x8xf32>
    %cst_38 = arith.constant dense<0xFF800000> : vector<8xf32>
    %52 = vector.multi_reduction <maximumf>, %51, %cst_38 [1] : vector<8x8xf32> to vector<8xf32>
    %53 = vector.shape_cast %52 : vector<8xf32> to vector<8x1xf32>
    %54 = vector.broadcast %53 : vector<8x1xf32> to vector<8x8xf32>
    %55 = arith.subf %51, %54 : vector<8x8xf32>
    %56 = math.exp %55 : vector<8x8xf32>
    %cst_39 = arith.constant dense<0.000000e+00> : vector<8xf32>
    %57 = vector.multi_reduction <add>, %56, %cst_39 [1] : vector<8x8xf32> to vector<8xf32>
    %58 = vector.shape_cast %57 : vector<8xf32> to vector<8x1xf32>
    %59 = tpu.reciprocal %58 {approx = true} : vector<8x1xf32> -> vector<8x1xf32>
    %60 = vector.broadcast %59 : vector<8x1xf32> to vector<8x8xf32>
    %61 = arith.mulf %56, %60 : vector<8x8xf32>
    %cst_40 = arith.constant 0.000000e+00 : f32
    %62 = vector.shape_cast %3 : vector<1x8xi1> to vector<1x8xi1>
    %63 = vector.broadcast %62 : vector<1x8xi1> to vector<8x8xi1>
    %64 = vector.broadcast %cst_40 : f32 to vector<8x8xf32>
    %65 = arith.select %63, %64, %61 : vector<8x8xi1>, vector<8x8xf32>
    %66 = arith.truncf %65 : vector<8x8xf32> to vector<8x8xbf16>
    %c1_41 = arith.constant 1 : index
    %c0_42 = arith.constant 0 : index
    %c0_43 = arith.constant 0 : index
    %c0_44 = arith.constant 0 : index
    %67 = vector.load %arg5[%c1_41, %c0_42, %c0_43, %c0_44] : memref<4x1x8x8xbf16, #tpu.memory_space<vmem>>, vector<1x1x8x8xbf16>
    %68 = vector.shape_cast %67 : vector<1x1x8x8xbf16> to vector<8x8xbf16>
    %cst_45 = arith.constant dense<0.000000e+00> : vector<8x8xf32>
    %69 = tpu.matmul %66, %68, %cst_45 {dimension_numbers = #tpu.dot_dimension_numbers<[1], [0], [0], [1], [0, 0, 1, 1], [], []>} : vector<8x8xbf16>, vector<8x8xbf16>, vector<8x8xf32> -> vector<8x8xf32>
    %c2 = arith.constant 2 : index
    %c0_46 = arith.constant 0 : index
    %c0_47 = arith.constant 0 : index
    %c0_48 = arith.constant 0 : index
    %70 = vector.load %arg3[%c2, %c0_46, %c0_47, %c0_48] : memref<4x1x8x8xbf16, #tpu.memory_space<vmem>>, vector<1x1x8x8xbf16>
    %71 = vector.shape_cast %70 : vector<1x1x8x8xbf16> to vector<8x8xbf16>
    %c2_49 = arith.constant 2 : index
    %c0_50 = arith.constant 0 : index
    %c0_51 = arith.constant 0 : index
    %c0_52 = arith.constant 0 : index
    %72 = vector.load %arg4[%c2_49, %c0_50, %c0_51, %c0_52] : memref<4x1x8x8xbf16, #tpu.memory_space<vmem>>, vector<1x1x8x8xbf16>
    %73 = vector.shape_cast %72 : vector<1x1x8x8xbf16> to vector<8x8xbf16>
    "tpu.trace_start"() <{level = 10 : i32, message = "qd,kd->qk"}> : () -> ()
    %cst_53 = arith.constant dense<0.000000e+00> : vector<8x8xf32>
    %74 = tpu.matmul %71, %73, %cst_53 {dimension_numbers = #tpu.dot_dimension_numbers<[1], [1], [0], [0], [0, 0, 1, 0], [], []>} : vector<8x8xbf16>, vector<8x8xbf16>, vector<8x8xf32> -> vector<8x8xf32>
    "tpu.trace_stop"() : () -> ()
    %c0_54 = arith.constant 0 : index
    %c0_55 = arith.constant 0 : index
    %c0_56 = arith.constant 0 : index
    %75 = vector.load %arg7[%c0_54, %c0_55, %c0_56] : memref<1x8x128xbf16, #tpu.memory_space<vmem>>, vector<1x8x128xbf16>
    %76 = vector.shape_cast %75 : vector<1x8x128xbf16> to vector<8x128xbf16>
    %cst_57 = arith.constant dense<0.000000e+00> : vector<8x128xf32>
    %77 = tpu.matmul %71, %76, %cst_57 {dimension_numbers = #tpu.dot_dimension_numbers<[1], [0], [0], [1], [0, 0, 1, 1], [], []>} : vector<8x8xbf16>, vector<8x128xbf16>, vector<8x128xf32> -> vector<8x128xf32>
    %c0_i32_58 = arith.constant 0 : i32
    %78 = tpu.dynamic_rotate %77 by %c0_i32_58 dim 1 {stride = 1 : si32, stride_dimension = 0 : si32} : vector<8x128xf32>, i32 -> vector<8x128xf32>
    %79 = vector.extract_strided_slice %78 {offsets = [0, 0], sizes = [8, 8], strides = [1, 1]} : vector<8x128xf32> to vector<8x8xf32>
    %80 = arith.addf %74, %79 : vector<8x8xf32>
    %cst_59 = arith.constant -3.40282347E+38 : f32
    %81 = vector.shape_cast %3 : vector<1x8xi1> to vector<1x8xi1>
    %82 = vector.broadcast %81 : vector<1x8xi1> to vector<8x8xi1>
    %83 = vector.broadcast %cst_59 : f32 to vector<8x8xf32>
    %84 = arith.select %82, %83, %80 : vector<8x8xi1>, vector<8x8xf32>
    %cst_60 = arith.constant dense<0xFF800000> : vector<8xf32>
    %85 = vector.multi_reduction <maximumf>, %84, %cst_60 [1] : vector<8x8xf32> to vector<8xf32>
    %86 = vector.shape_cast %85 : vector<8xf32> to vector<8x1xf32>
    %87 = vector.broadcast %86 : vector<8x1xf32> to vector<8x8xf32>
    %88 = arith.subf %84, %87 : vector<8x8xf32>
    %89 = math.exp %88 : vector<8x8xf32>
    %cst_61 = arith.constant dense<0.000000e+00> : vector<8xf32>
    %90 = vector.multi_reduction <add>, %89, %cst_61 [1] : vector<8x8xf32> to vector<8xf32>
    %91 = vector.shape_cast %90 : vector<8xf32> to vector<8x1xf32>
    %92 = tpu.reciprocal %91 {approx = true} : vector<8x1xf32> -> vector<8x1xf32>
    %93 = vector.broadcast %92 : vector<8x1xf32> to vector<8x8xf32>
    %94 = arith.mulf %89, %93 : vector<8x8xf32>
    %cst_62 = arith.constant 0.000000e+00 : f32
    %95 = vector.shape_cast %3 : vector<1x8xi1> to vector<1x8xi1>
    %96 = vector.broadcast %95 : vector<1x8xi1> to vector<8x8xi1>
    %97 = vector.broadcast %cst_62 : f32 to vector<8x8xf32>
    %98 = arith.select %96, %97, %94 : vector<8x8xi1>, vector<8x8xf32>
    %99 = arith.truncf %98 : vector<8x8xf32> to vector<8x8xbf16>
    %c2_63 = arith.constant 2 : index
    %c0_64 = arith.constant 0 : index
    %c0_65 = arith.constant 0 : index
    %c0_66 = arith.constant 0 : index
    %100 = vector.load %arg5[%c2_63, %c0_64, %c0_65, %c0_66] : memref<4x1x8x8xbf16, #tpu.memory_space<vmem>>, vector<1x1x8x8xbf16>
    %101 = vector.shape_cast %100 : vector<1x1x8x8xbf16> to vector<8x8xbf16>
    %cst_67 = arith.constant dense<0.000000e+00> : vector<8x8xf32>
    %102 = tpu.matmul %99, %101, %cst_67 {dimension_numbers = #tpu.dot_dimension_numbers<[1], [0], [0], [1], [0, 0, 1, 1], [], []>} : vector<8x8xbf16>, vector<8x8xbf16>, vector<8x8xf32> -> vector<8x8xf32>
    %c3 = arith.constant 3 : index
    %c0_68 = arith.constant 0 : index
    %c0_69 = arith.constant 0 : index
    %c0_70 = arith.constant 0 : index
    %103 = vector.load %arg3[%c3, %c0_68, %c0_69, %c0_70] : memref<4x1x8x8xbf16, #tpu.memory_space<vmem>>, vector<1x1x8x8xbf16>
    %104 = vector.shape_cast %103 : vector<1x1x8x8xbf16> to vector<8x8xbf16>
    %c3_71 = arith.constant 3 : index
    %c0_72 = arith.constant 0 : index
    %c0_73 = arith.constant 0 : index
    %c0_74 = arith.constant 0 : index
    %105 = vector.load %arg4[%c3_71, %c0_72, %c0_73, %c0_74] : memref<4x1x8x8xbf16, #tpu.memory_space<vmem>>, vector<1x1x8x8xbf16>
    %106 = vector.shape_cast %105 : vector<1x1x8x8xbf16> to vector<8x8xbf16>
    "tpu.trace_start"() <{level = 10 : i32, message = "qd,kd->qk"}> : () -> ()
    %cst_75 = arith.constant dense<0.000000e+00> : vector<8x8xf32>
    %107 = tpu.matmul %104, %106, %cst_75 {dimension_numbers = #tpu.dot_dimension_numbers<[1], [1], [0], [0], [0, 0, 1, 0], [], []>} : vector<8x8xbf16>, vector<8x8xbf16>, vector<8x8xf32> -> vector<8x8xf32>
    "tpu.trace_stop"() : () -> ()
    %c0_76 = arith.constant 0 : index
    %c0_77 = arith.constant 0 : index
    %c0_78 = arith.constant 0 : index
    %108 = vector.load %arg7[%c0_76, %c0_77, %c0_78] : memref<1x8x128xbf16, #tpu.memory_space<vmem>>, vector<1x8x128xbf16>
    %109 = vector.shape_cast %108 : vector<1x8x128xbf16> to vector<8x128xbf16>
    %cst_79 = arith.constant dense<0.000000e+00> : vector<8x128xf32>
    %110 = tpu.matmul %104, %109, %cst_79 {dimension_numbers = #tpu.dot_dimension_numbers<[1], [0], [0], [1], [0, 0, 1, 1], [], []>} : vector<8x8xbf16>, vector<8x128xbf16>, vector<8x128xf32> -> vector<8x128xf32>
    %c0_i32_80 = arith.constant 0 : i32
    %111 = tpu.dynamic_rotate %110 by %c0_i32_80 dim 1 {stride = 1 : si32, stride_dimension = 0 : si32} : vector<8x128xf32>, i32 -> vector<8x128xf32>
    %112 = vector.extract_strided_slice %111 {offsets = [0, 0], sizes = [8, 8], strides = [1, 1]} : vector<8x128xf32> to vector<8x8xf32>
    %113 = arith.addf %107, %112 : vector<8x8xf32>
    %cst_81 = arith.constant -3.40282347E+38 : f32
    %114 = vector.shape_cast %3 : vector<1x8xi1> to vector<1x8xi1>
    %115 = vector.broadcast %114 : vector<1x8xi1> to vector<8x8xi1>
    %116 = vector.broadcast %cst_81 : f32 to vector<8x8xf32>
    %117 = arith.select %115, %116, %113 : vector<8x8xi1>, vector<8x8xf32>
    %cst_82 = arith.constant dense<0xFF800000> : vector<8xf32>
    %118 = vector.multi_reduction <maximumf>, %117, %cst_82 [1] : vector<8x8xf32> to vector<8xf32>
    %119 = vector.shape_cast %118 : vector<8xf32> to vector<8x1xf32>
    %120 = vector.broadcast %119 : vector<8x1xf32> to vector<8x8xf32>
    %121 = arith.subf %117, %120 : vector<8x8xf32>
    %122 = math.exp %121 : vector<8x8xf32>
    %cst_83 = arith.constant dense<0.000000e+00> : vector<8xf32>
    %123 = vector.multi_reduction <add>, %122, %cst_83 [1] : vector<8x8xf32> to vector<8xf32>
    %124 = vector.shape_cast %123 : vector<8xf32> to vector<8x1xf32>
    %125 = tpu.reciprocal %124 {approx = true} : vector<8x1xf32> -> vector<8x1xf32>
    %126 = vector.broadcast %125 : vector<8x1xf32> to vector<8x8xf32>
    %127 = arith.mulf %122, %126 : vector<8x8xf32>
    %cst_84 = arith.constant 0.000000e+00 : f32
    %128 = vector.shape_cast %3 : vector<1x8xi1> to vector<1x8xi1>
    %129 = vector.broadcast %128 : vector<1x8xi1> to vector<8x8xi1>
    %130 = vector.broadcast %cst_84 : f32 to vector<8x8xf32>
    %131 = arith.select %129, %130, %127 : vector<8x8xi1>, vector<8x8xf32>
    %132 = arith.truncf %131 : vector<8x8xf32> to vector<8x8xbf16>
    %c3_85 = arith.constant 3 : index
    %c0_86 = arith.constant 0 : index
    %c0_87 = arith.constant 0 : index
    %c0_88 = arith.constant 0 : index
    %133 = vector.load %arg5[%c3_85, %c0_86, %c0_87, %c0_88] : memref<4x1x8x8xbf16, #tpu.memory_space<vmem>>, vector<1x1x8x8xbf16>
    %134 = vector.shape_cast %133 : vector<1x1x8x8xbf16> to vector<8x8xbf16>
    %cst_89 = arith.constant dense<0.000000e+00> : vector<8x8xf32>
    %135 = tpu.matmul %132, %134, %cst_89 {dimension_numbers = #tpu.dot_dimension_numbers<[1], [0], [0], [1], [0, 0, 1, 1], [], []>} : vector<8x8xbf16>, vector<8x8xbf16>, vector<8x8xf32> -> vector<8x8xf32>
    %136 = tpu.concatenate %36, %69, %102, %135 in 1 : vector<8x8xf32>, vector<8x8xf32>, vector<8x8xf32>, vector<8x8xf32> -> vector<8x32xf32>
    %137 = arith.truncf %136 : vector<8x32xf32> to vector<8x32xbf16>
    %c0_90 = arith.constant 0 : index
    %c0_91 = arith.constant 0 : index
    %138 = vector.load %arg8[%c0_90, %c0_91] : memref<32x32xbf16, #tpu.memory_space<vmem>>, vector<32x32xbf16>
    %cst_92 = arith.constant dense<0.000000e+00> : vector<8x32xf32>
    %139 = tpu.matmul %137, %138, %cst_92 {dimension_numbers = #tpu.dot_dimension_numbers<[1], [0], [0], [1], [0, 0, 1, 1], [], []>} : vector<8x32xbf16>, vector<32x32xbf16>, vector<8x32xf32> -> vector<8x32xf32>
    %c0_93 = arith.constant 0 : index
    %c0_94 = arith.constant 0 : index
    %c0_95 = arith.constant 0 : index
    %140 = vector.load %arg2[%c0_93, %c0_94, %c0_95] : memref<1x8x32xf32, #tpu.memory_space<vmem>>, vector<1x8x32xf32>
    %141 = vector.shape_cast %140 : vector<1x8x32xf32> to vector<8x32xf32>
    %142 = arith.addf %141, %139 : vector<8x32xf32>
    %c0_96 = arith.constant 0 : index
    %c0_97 = arith.constant 0 : index
    %143 = vector.load %arg9[%c0_96, %c0_97] : memref<1x32xf32, #tpu.memory_space<vmem>>, vector<1x32xf32>
    %144 = vector.broadcast %143 : vector<1x32xf32> to vector<8x32xf32>
    %145 = arith.addf %142, %144 : vector<8x32xf32>
    %c0_98 = arith.constant 0 : index
    %c0_99 = arith.constant 0 : index
    %c0_100 = arith.constant 0 : index
    %146 = vector.load %arg10[%c0_98, %c0_99, %c0_100] : memref<1x8x32xf32, #tpu.memory_space<vmem>>, vector<1x8x32xf32>
    %147 = vector.shape_cast %146 : vector<1x8x32xf32> to vector<8x32xf32>
    %148 = vector.shape_cast %145 : vector<8x32xf32> to vector<1x8x32xf32>
    tpu.vector_store %arg10[%c0_98, %c0_99, %c0_100], %148 {strides = array<i32>} : memref<1x8x32xf32, #tpu.memory_space<vmem>>, vector<1x8x32xf32>,
    return
  }
  func.func @transform_0(%arg0: i32, %arg1: i32) -> (i32, i32, i32) {
    %c0_i32 = arith.constant 0 : i32
    %c0_i32_0 = arith.constant 0 : i32
    return %arg0, %arg1, %c0_i32 : i32, i32, i32
  }
  func.func @transform_1(%arg0: i32, %arg1: i32) -> (i32, i32, i32, i32) {
    %c0_i32 = arith.constant 0 : i32
    %c0_i32_0 = arith.constant 0 : i32
    %c0_i32_1 = arith.constant 0 : i32
    return %c0_i32, %arg0, %arg1, %c0_i32_0 : i32, i32, i32, i32
  }
  func.func @transform_2(%arg0: i32, %arg1: i32) -> (i32, i32, i32, i32) {
    %c0_i32 = arith.constant 0 : i32
    %c0_i32_0 = arith.constant 0 : i32
    %c0_i32_1 = arith.constant 0 : i32
    %c0_i32_2 = arith.constant 0 : i32
    return %c0_i32, %arg0, %c0_i32_0, %c0_i32_1 : i32, i32, i32, i32
  }
  func.func @transform_3(%arg0: i32, %arg1: i32) -> (i32, i32, i32, i32) {
    %c0_i32 = arith.constant 0 : i32
    %c0_i32_0 = arith.constant 0 : i32
    %c0_i32_1 = arith.constant 0 : i32
    %c0_i32_2 = arith.constant 0 : i32
    return %c0_i32, %arg0, %c0_i32_0, %c0_i32_1 : i32, i32, i32, i32
  }
  func.func @transform_4(%arg0: i32, %arg1: i32) -> (i32, i32, i32) {
    %c0_i32 = arith.constant 0 : i32
    %c0_i32_0 = arith.constant 0 : i32
    %c0_i32_1 = arith.constant 0 : i32
    return %arg0, %c0_i32, %c0_i32_0 : i32, i32, i32
  }
  func.func @transform_5(%arg0: i32, %arg1: i32) -> (i32, i32, i32) {
    %c0_i32 = arith.constant 0 : i32
    %c0_i32_0 = arith.constant 0 : i32
    %c0_i32_1 = arith.constant 0 : i32
    return %arg1, %c0_i32, %c0_i32_0 : i32, i32, i32
  }
  func.func @transform_6(%arg0: i32, %arg1: i32) -> (i32, i32) {
    %c0_i32 = arith.constant 0 : i32
    %c0_i32_0 = arith.constant 0 : i32
    %c0_i32_1 = arith.constant 0 : i32
    return %c0_i32, %c0_i32_0 : i32, i32
  }
  func.func @transform_7(%arg0: i32, %arg1: i32) -> (i32, i32) {
    %c0_i32 = arith.constant 0 : i32
    %c0_i32_0 = arith.constant 0 : i32
    %c0_i32_1 = arith.constant 0 : i32
    return %c0_i32, %c0_i32_0 : i32, i32
  }
  func.func @transform_8(%arg0: i32, %arg1: i32) -> (i32, i32, i32) {
    %c0_i32 = arith.constant 0 : i32
    %c0_i32_0 = arith.constant 0 : i32
    return %arg0, %arg1, %c0_i32 : i32, i32, i32
  }
}

module attributes {stable_mosaic.version = 11 : i64} {
  func.func @_convmod_kernel(%arg0: i32, %arg1: memref<1x8x32xf32, #tpu.memory_space<vmem>>, %arg2: memref<1x32xf32, #tpu.memory_space<vmem>>, %arg3: memref<1x32xf32, #tpu.memory_space<vmem>>, %arg4: memref<7x32xf32, #tpu.memory_space<vmem>>, %arg5: memref<1x32xf32, #tpu.memory_space<vmem>>, %arg6: memref<2xf32, #tpu.memory_space<smem>>, %arg7: memref<2xf32, #tpu.memory_space<smem>>, %arg8: memref<1xf32, #tpu.memory_space<smem>>, %arg9: memref<1xf32, #tpu.memory_space<smem>>, %arg10: memref<1x8x32xf32, #tpu.memory_space<vmem>>) attributes {dimension_semantics = [#tpu.dimension_semantics<parallel>], iteration_bounds = array<i64: 2>, scalar_prefetch = 0 : i64, scratch_operands = 0 : i64, tpu.core_type = #tpu.core_type<tc>, window_params = [{transform_indices = @transform_0, window_bounds = array<i64: 1, 8, 32>}, {pipeline_mode = #tpu.pipeline_mode<synchronous>, transform_indices = @transform_1, window_bounds = array<i64: 1, 32>}, {pipeline_mode = #tpu.pipeline_mode<synchronous>, transform_indices = @transform_2, window_bounds = array<i64: 1, 32>}, {pipeline_mode = #tpu.pipeline_mode<synchronous>, transform_indices = @transform_3, window_bounds = array<i64: 7, 32>}, {pipeline_mode = #tpu.pipeline_mode<synchronous>, transform_indices = @transform_4, window_bounds = array<i64: 1, 32>}, {transform_indices = @transform_5, window_bounds = array<i64: 2>}, {transform_indices = @transform_6, window_bounds = array<i64: 2>}, {transform_indices = @transform_7, window_bounds = array<i64: 1>}, {transform_indices = @transform_8, window_bounds = array<i64: 1>}, {transform_indices = @transform_9, window_bounds = array<i64: 1, 8, 32>}]} {
    %c0 = arith.constant 0 : index
    %c0_0 = arith.constant 0 : index
    %c0_1 = arith.constant 0 : index
    %0 = vector.load %arg1[%c0, %c0_0, %c0_1] : memref<1x8x32xf32, #tpu.memory_space<vmem>>, vector<1x8x32xf32>
    %1 = vector.shape_cast %0 : vector<1x8x32xf32> to vector<8x32xf32>
    %c0_2 = arith.constant 0 : index
    %c0_3 = arith.constant 0 : index
    %2 = vector.load %arg2[%c0_2, %c0_3] : memref<1x32xf32, #tpu.memory_space<vmem>>, vector<1x32xf32>
    %c0_4 = arith.constant 0 : index
    %c0_5 = arith.constant 0 : index
    %3 = vector.load %arg3[%c0_4, %c0_5] : memref<1x32xf32, #tpu.memory_space<vmem>>, vector<1x32xf32>
    %cst = arith.constant dense<0.000000e+00> : vector<8xf32>
    %4 = vector.multi_reduction <add>, %1, %cst [1] : vector<8x32xf32> to vector<8xf32>
    %5 = vector.shape_cast %4 : vector<8xf32> to vector<8x1xf32>
    %cst_6 = arith.constant 3.200000e+01 : f32
    %6 = vector.broadcast %cst_6 : f32 to vector<8x1xf32>
    %7 = arith.divf %5, %6 : vector<8x1xf32>
    %8 = vector.broadcast %7 : vector<8x1xf32> to vector<8x32xf32>
    %9 = arith.subf %1, %8 : vector<8x32xf32>
    %10 = arith.mulf %9, %9 : vector<8x32xf32>
    %cst_7 = arith.constant dense<0.000000e+00> : vector<8xf32>
    %11 = vector.multi_reduction <add>, %10, %cst_7 [1] : vector<8x32xf32> to vector<8xf32>
    %12 = vector.shape_cast %11 : vector<8xf32> to vector<8x1xf32>
    %cst_8 = arith.constant 3.200000e+01 : f32
    %13 = vector.broadcast %cst_8 : f32 to vector<8x1xf32>
    %14 = arith.divf %12, %13 : vector<8x1xf32>
    %15 = vector.broadcast %7 : vector<8x1xf32> to vector<8x32xf32>
    %16 = arith.subf %1, %15 : vector<8x32xf32>
    %cst_9 = arith.constant 9.99999974E-6 : f32
    %17 = vector.broadcast %cst_9 : f32 to vector<8x1xf32>
    %18 = arith.addf %14, %17 : vector<8x1xf32>
    %19 = math.rsqrt %18 : vector<8x1xf32>
    %20 = vector.broadcast %19 : vector<8x1xf32> to vector<8x32xf32>
    %21 = arith.mulf %16, %20 : vector<8x32xf32>
    %22 = vector.broadcast %2 : vector<1x32xf32> to vector<8x32xf32>
    %23 = arith.mulf %21, %22 : vector<8x32xf32>
    %24 = vector.broadcast %3 : vector<1x32xf32> to vector<8x32xf32>
    %25 = arith.addf %23, %24 : vector<8x32xf32>
    %c0_10 = arith.constant 0 : index
    %26 = memref.load %arg6[%c0_10] : memref<2xf32, #tpu.memory_space<smem>>
    %27 = vector.broadcast %26 : f32 to vector<8x32xf32>
    %28 = arith.mulf %27, %25 : vector<8x32xf32>
    %c0_11 = arith.constant 0 : index
    %29 = memref.load %arg7[%c0_11] : memref<2xf32, #tpu.memory_space<smem>>
    %30 = vector.broadcast %29 : f32 to vector<8x32xf32>
    %31 = arith.addf %28, %30 : vector<8x32xf32>
    %c1 = arith.constant 1 : index
    %32 = memref.load %arg6[%c1] : memref<2xf32, #tpu.memory_space<smem>>
    %33 = vector.broadcast %32 : f32 to vector<8x32xf32>
    %34 = arith.mulf %33, %25 : vector<8x32xf32>
    %c1_12 = arith.constant 1 : index
    %35 = memref.load %arg7[%c1_12] : memref<2xf32, #tpu.memory_space<smem>>
    %36 = vector.broadcast %35 : f32 to vector<8x32xf32>
    %37 = arith.addf %34, %36 : vector<8x32xf32>
    %38 = arith.negf %37 : vector<8x32xf32>
    %39 = math.exp %38 : vector<8x32xf32>
    %cst_13 = arith.constant 1.000000e+00 : f32
    %40 = vector.broadcast %cst_13 : f32 to vector<8x32xf32>
    %41 = arith.addf %40, %39 : vector<8x32xf32>
    %42 = arith.divf %40, %41 : vector<8x32xf32>
    %43 = arith.mulf %31, %42 : vector<8x32xf32>
    %44 = tpu.iota {dimensions = array<i32: 0>} : vector<8x1xi32>
    %cst_14 = arith.constant 0.000000e+00 : f32
    %45 = vector.broadcast %cst_14 : f32 to vector<8x32xf32>
    %c3_i32 = arith.constant 3 : i32
    %46 = tpu.dynamic_rotate %43 by %c3_i32 dim 0 : vector<8x32xf32>, i32 -> vector<8x32xf32>
    %c-3_i32 = arith.constant -3 : i32
    %47 = vector.broadcast %c-3_i32 : i32 to vector<8x1xi32>
    %48 = arith.addi %44, %47 : vector<8x1xi32>
    %c0_i32 = arith.constant 0 : i32
    %49 = vector.broadcast %c0_i32 : i32 to vector<8x1xi32>
    %50 = arith.cmpi sge, %48, %49 : vector<8x1xi32>
    %c-3_i32_15 = arith.constant -3 : i32
    %51 = vector.broadcast %c-3_i32_15 : i32 to vector<8x1xi32>
    %52 = arith.addi %44, %51 : vector<8x1xi32>
    %c8_i32 = arith.constant 8 : i32
    %53 = vector.broadcast %c8_i32 : i32 to vector<8x1xi32>
    %54 = arith.cmpi slt, %52, %53 : vector<8x1xi32>
    %55 = arith.andi %50, %54 : vector<8x1xi1>
    %c0_16 = arith.constant 0 : index
    %c0_17 = arith.constant 0 : index
    %56 = vector.load %arg4[%c0_16, %c0_17] : memref<7x32xf32, #tpu.memory_space<vmem>>, vector<1x32xf32>
    %57 = vector.broadcast %56 : vector<1x32xf32> to vector<8x32xf32>
    %58 = arith.mulf %57, %46 : vector<8x32xf32>
    %cst_18 = arith.constant 0.000000e+00 : f32
    %59 = vector.shape_cast %55 : vector<8x1xi1> to vector<8x1xi1>
    %60 = vector.broadcast %59 : vector<8x1xi1> to vector<8x32xi1>
    %61 = vector.broadcast %cst_18 : f32 to vector<8x32xf32>
    %62 = arith.select %60, %58, %61 : vector<8x32xi1>, vector<8x32xf32>
    %63 = arith.addf %45, %62 : vector<8x32xf32>
    %c2_i32 = arith.constant 2 : i32
    %64 = tpu.dynamic_rotate %43 by %c2_i32 dim 0 : vector<8x32xf32>, i32 -> vector<8x32xf32>
    %c-2_i32 = arith.constant -2 : i32
    %65 = vector.broadcast %c-2_i32 : i32 to vector<8x1xi32>
    %66 = arith.addi %44, %65 : vector<8x1xi32>
    %c0_i32_19 = arith.constant 0 : i32
    %67 = vector.broadcast %c0_i32_19 : i32 to vector<8x1xi32>
    %68 = arith.cmpi sge, %66, %67 : vector<8x1xi32>
    %c-2_i32_20 = arith.constant -2 : i32
    %69 = vector.broadcast %c-2_i32_20 : i32 to vector<8x1xi32>
    %70 = arith.addi %44, %69 : vector<8x1xi32>
    %c8_i32_21 = arith.constant 8 : i32
    %71 = vector.broadcast %c8_i32_21 : i32 to vector<8x1xi32>
    %72 = arith.cmpi slt, %70, %71 : vector<8x1xi32>
    %73 = arith.andi %68, %72 : vector<8x1xi1>
    %c1_22 = arith.constant 1 : index
    %c0_23 = arith.constant 0 : index
    %74 = vector.load %arg4[%c1_22, %c0_23] : memref<7x32xf32, #tpu.memory_space<vmem>>, vector<1x32xf32>
    %75 = vector.broadcast %74 : vector<1x32xf32> to vector<8x32xf32>
    %76 = arith.mulf %75, %64 : vector<8x32xf32>
    %cst_24 = arith.constant 0.000000e+00 : f32
    %77 = vector.shape_cast %73 : vector<8x1xi1> to vector<8x1xi1>
    %78 = vector.broadcast %77 : vector<8x1xi1> to vector<8x32xi1>
    %79 = vector.broadcast %cst_24 : f32 to vector<8x32xf32>
    %80 = arith.select %78, %76, %79 : vector<8x32xi1>, vector<8x32xf32>
    %81 = arith.addf %63, %80 : vector<8x32xf32>
    %c1_i32 = arith.constant 1 : i32
    %82 = tpu.dynamic_rotate %43 by %c1_i32 dim 0 : vector<8x32xf32>, i32 -> vector<8x32xf32>
    %c-1_i32 = arith.constant -1 : i32
    %83 = vector.broadcast %c-1_i32 : i32 to vector<8x1xi32>
    %84 = arith.addi %44, %83 : vector<8x1xi32>
    %c0_i32_25 = arith.constant 0 : i32
    %85 = vector.broadcast %c0_i32_25 : i32 to vector<8x1xi32>
    %86 = arith.cmpi sge, %84, %85 : vector<8x1xi32>
    %c-1_i32_26 = arith.constant -1 : i32
    %87 = vector.broadcast %c-1_i32_26 : i32 to vector<8x1xi32>
    %88 = arith.addi %44, %87 : vector<8x1xi32>
    %c8_i32_27 = arith.constant 8 : i32
    %89 = vector.broadcast %c8_i32_27 : i32 to vector<8x1xi32>
    %90 = arith.cmpi slt, %88, %89 : vector<8x1xi32>
    %91 = arith.andi %86, %90 : vector<8x1xi1>
    %c2 = arith.constant 2 : index
    %c0_28 = arith.constant 0 : index
    %92 = vector.load %arg4[%c2, %c0_28] : memref<7x32xf32, #tpu.memory_space<vmem>>, vector<1x32xf32>
    %93 = vector.broadcast %92 : vector<1x32xf32> to vector<8x32xf32>
    %94 = arith.mulf %93, %82 : vector<8x32xf32>
    %cst_29 = arith.constant 0.000000e+00 : f32
    %95 = vector.shape_cast %91 : vector<8x1xi1> to vector<8x1xi1>
    %96 = vector.broadcast %95 : vector<8x1xi1> to vector<8x32xi1>
    %97 = vector.broadcast %cst_29 : f32 to vector<8x32xf32>
    %98 = arith.select %96, %94, %97 : vector<8x32xi1>, vector<8x32xf32>
    %99 = arith.addf %81, %98 : vector<8x32xf32>
    %c0_i32_30 = arith.constant 0 : i32
    %100 = tpu.dynamic_rotate %43 by %c0_i32_30 dim 0 : vector<8x32xf32>, i32 -> vector<8x32xf32>
    %c0_i32_31 = arith.constant 0 : i32
    %101 = vector.broadcast %c0_i32_31 : i32 to vector<8x1xi32>
    %102 = arith.addi %44, %101 : vector<8x1xi32>
    %c0_i32_32 = arith.constant 0 : i32
    %103 = vector.broadcast %c0_i32_32 : i32 to vector<8x1xi32>
    %104 = arith.cmpi sge, %102, %103 : vector<8x1xi32>
    %c0_i32_33 = arith.constant 0 : i32
    %105 = vector.broadcast %c0_i32_33 : i32 to vector<8x1xi32>
    %106 = arith.addi %44, %105 : vector<8x1xi32>
    %c8_i32_34 = arith.constant 8 : i32
    %107 = vector.broadcast %c8_i32_34 : i32 to vector<8x1xi32>
    %108 = arith.cmpi slt, %106, %107 : vector<8x1xi32>
    %109 = arith.andi %104, %108 : vector<8x1xi1>
    %c3 = arith.constant 3 : index
    %c0_35 = arith.constant 0 : index
    %110 = vector.load %arg4[%c3, %c0_35] : memref<7x32xf32, #tpu.memory_space<vmem>>, vector<1x32xf32>
    %111 = vector.broadcast %110 : vector<1x32xf32> to vector<8x32xf32>
    %112 = arith.mulf %111, %100 : vector<8x32xf32>
    %cst_36 = arith.constant 0.000000e+00 : f32
    %113 = vector.shape_cast %109 : vector<8x1xi1> to vector<8x1xi1>
    %114 = vector.broadcast %113 : vector<8x1xi1> to vector<8x32xi1>
    %115 = vector.broadcast %cst_36 : f32 to vector<8x32xf32>
    %116 = arith.select %114, %112, %115 : vector<8x32xi1>, vector<8x32xf32>
    %117 = arith.addf %99, %116 : vector<8x32xf32>
    %c7_i32 = arith.constant 7 : i32
    %118 = tpu.dynamic_rotate %43 by %c7_i32 dim 0 : vector<8x32xf32>, i32 -> vector<8x32xf32>
    %c1_i32_37 = arith.constant 1 : i32
    %119 = vector.broadcast %c1_i32_37 : i32 to vector<8x1xi32>
    %120 = arith.addi %44, %119 : vector<8x1xi32>
    %c0_i32_38 = arith.constant 0 : i32
    %121 = vector.broadcast %c0_i32_38 : i32 to vector<8x1xi32>
    %122 = arith.cmpi sge, %120, %121 : vector<8x1xi32>
    %c1_i32_39 = arith.constant 1 : i32
    %123 = vector.broadcast %c1_i32_39 : i32 to vector<8x1xi32>
    %124 = arith.addi %44, %123 : vector<8x1xi32>
    %c8_i32_40 = arith.constant 8 : i32
    %125 = vector.broadcast %c8_i32_40 : i32 to vector<8x1xi32>
    %126 = arith.cmpi slt, %124, %125 : vector<8x1xi32>
    %127 = arith.andi %122, %126 : vector<8x1xi1>
    %c4 = arith.constant 4 : index
    %c0_41 = arith.constant 0 : index
    %128 = vector.load %arg4[%c4, %c0_41] : memref<7x32xf32, #tpu.memory_space<vmem>>, vector<1x32xf32>
    %129 = vector.broadcast %128 : vector<1x32xf32> to vector<8x32xf32>
    %130 = arith.mulf %129, %118 : vector<8x32xf32>
    %cst_42 = arith.constant 0.000000e+00 : f32
    %131 = vector.shape_cast %127 : vector<8x1xi1> to vector<8x1xi1>
    %132 = vector.broadcast %131 : vector<8x1xi1> to vector<8x32xi1>
    %133 = vector.broadcast %cst_42 : f32 to vector<8x32xf32>
    %134 = arith.select %132, %130, %133 : vector<8x32xi1>, vector<8x32xf32>
    %135 = arith.addf %117, %134 : vector<8x32xf32>
    %c6_i32 = arith.constant 6 : i32
    %136 = tpu.dynamic_rotate %43 by %c6_i32 dim 0 : vector<8x32xf32>, i32 -> vector<8x32xf32>
    %c2_i32_43 = arith.constant 2 : i32
    %137 = vector.broadcast %c2_i32_43 : i32 to vector<8x1xi32>
    %138 = arith.addi %44, %137 : vector<8x1xi32>
    %c0_i32_44 = arith.constant 0 : i32
    %139 = vector.broadcast %c0_i32_44 : i32 to vector<8x1xi32>
    %140 = arith.cmpi sge, %138, %139 : vector<8x1xi32>
    %c2_i32_45 = arith.constant 2 : i32
    %141 = vector.broadcast %c2_i32_45 : i32 to vector<8x1xi32>
    %142 = arith.addi %44, %141 : vector<8x1xi32>
    %c8_i32_46 = arith.constant 8 : i32
    %143 = vector.broadcast %c8_i32_46 : i32 to vector<8x1xi32>
    %144 = arith.cmpi slt, %142, %143 : vector<8x1xi32>
    %145 = arith.andi %140, %144 : vector<8x1xi1>
    %c5 = arith.constant 5 : index
    %c0_47 = arith.constant 0 : index
    %146 = vector.load %arg4[%c5, %c0_47] : memref<7x32xf32, #tpu.memory_space<vmem>>, vector<1x32xf32>
    %147 = vector.broadcast %146 : vector<1x32xf32> to vector<8x32xf32>
    %148 = arith.mulf %147, %136 : vector<8x32xf32>
    %cst_48 = arith.constant 0.000000e+00 : f32
    %149 = vector.shape_cast %145 : vector<8x1xi1> to vector<8x1xi1>
    %150 = vector.broadcast %149 : vector<8x1xi1> to vector<8x32xi1>
    %151 = vector.broadcast %cst_48 : f32 to vector<8x32xf32>
    %152 = arith.select %150, %148, %151 : vector<8x32xi1>, vector<8x32xf32>
    %153 = arith.addf %135, %152 : vector<8x32xf32>
    %c5_i32 = arith.constant 5 : i32
    %154 = tpu.dynamic_rotate %43 by %c5_i32 dim 0 : vector<8x32xf32>, i32 -> vector<8x32xf32>
    %c3_i32_49 = arith.constant 3 : i32
    %155 = vector.broadcast %c3_i32_49 : i32 to vector<8x1xi32>
    %156 = arith.addi %44, %155 : vector<8x1xi32>
    %c0_i32_50 = arith.constant 0 : i32
    %157 = vector.broadcast %c0_i32_50 : i32 to vector<8x1xi32>
    %158 = arith.cmpi sge, %156, %157 : vector<8x1xi32>
    %c3_i32_51 = arith.constant 3 : i32
    %159 = vector.broadcast %c3_i32_51 : i32 to vector<8x1xi32>
    %160 = arith.addi %44, %159 : vector<8x1xi32>
    %c8_i32_52 = arith.constant 8 : i32
    %161 = vector.broadcast %c8_i32_52 : i32 to vector<8x1xi32>
    %162 = arith.cmpi slt, %160, %161 : vector<8x1xi32>
    %163 = arith.andi %158, %162 : vector<8x1xi1>
    %c6 = arith.constant 6 : index
    %c0_53 = arith.constant 0 : index
    %164 = vector.load %arg4[%c6, %c0_53] : memref<7x32xf32, #tpu.memory_space<vmem>>, vector<1x32xf32>
    %165 = vector.broadcast %164 : vector<1x32xf32> to vector<8x32xf32>
    %166 = arith.mulf %165, %154 : vector<8x32xf32>
    %cst_54 = arith.constant 0.000000e+00 : f32
    %167 = vector.shape_cast %163 : vector<8x1xi1> to vector<8x1xi1>
    %168 = vector.broadcast %167 : vector<8x1xi1> to vector<8x32xi1>
    %169 = vector.broadcast %cst_54 : f32 to vector<8x32xf32>
    %170 = arith.select %168, %166, %169 : vector<8x32xi1>, vector<8x32xf32>
    %171 = arith.addf %153, %170 : vector<8x32xf32>
    %c0_55 = arith.constant 0 : index
    %c0_56 = arith.constant 0 : index
    %172 = vector.load %arg5[%c0_55, %c0_56] : memref<1x32xf32, #tpu.memory_space<vmem>>, vector<1x32xf32>
    %173 = vector.broadcast %172 : vector<1x32xf32> to vector<8x32xf32>
    %174 = arith.addf %171, %173 : vector<8x32xf32>
    %cst_57 = arith.constant 0.000000e+00 : f32
    %175 = vector.broadcast %cst_57 : f32 to vector<8x32xf32>
    %176 = arith.maximumf %174, %175 : vector<8x32xf32>
    %c0_58 = arith.constant 0 : index
    %177 = memref.load %arg8[%c0_58] : memref<1xf32, #tpu.memory_space<smem>>
    %178 = vector.broadcast %177 : f32 to vector<8x32xf32>
    %179 = arith.mulf %178, %176 : vector<8x32xf32>
    %c0_59 = arith.constant 0 : index
    %180 = memref.load %arg9[%c0_59] : memref<1xf32, #tpu.memory_space<smem>>
    %181 = vector.broadcast %180 : f32 to vector<8x32xf32>
    %182 = arith.addf %179, %181 : vector<8x32xf32>
    %183 = arith.addf %1, %182 : vector<8x32xf32>
    %c0_60 = arith.constant 0 : index
    %c0_61 = arith.constant 0 : index
    %c0_62 = arith.constant 0 : index
    %184 = vector.load %arg10[%c0_60, %c0_61, %c0_62] : memref<1x8x32xf32, #tpu.memory_space<vmem>>, vector<1x8x32xf32>
    %185 = vector.shape_cast %184 : vector<1x8x32xf32> to vector<8x32xf32>
    %186 = vector.shape_cast %183 : vector<8x32xf32> to vector<1x8x32xf32>
    tpu.vector_store %arg10[%c0_60, %c0_61, %c0_62], %186 {strides = array<i32>} : memref<1x8x32xf32, #tpu.memory_space<vmem>>, vector<1x8x32xf32>,
    return
  }
  func.func @transform_0(%arg0: i32) -> (i32, i32, i32) {
    %c0_i32 = arith.constant 0 : i32
    %c0_i32_0 = arith.constant 0 : i32
    %c0_i32_1 = arith.constant 0 : i32
    return %arg0, %c0_i32, %c0_i32_0 : i32, i32, i32
  }
  func.func @transform_1(%arg0: i32) -> (i32, i32) {
    %c0_i32 = arith.constant 0 : i32
    %c0_i32_0 = arith.constant 0 : i32
    %c0_i32_1 = arith.constant 0 : i32
    return %c0_i32, %c0_i32_0 : i32, i32
  }
  func.func @transform_2(%arg0: i32) -> (i32, i32) {
    %c0_i32 = arith.constant 0 : i32
    %c0_i32_0 = arith.constant 0 : i32
    %c0_i32_1 = arith.constant 0 : i32
    return %c0_i32, %c0_i32_0 : i32, i32
  }
  func.func @transform_3(%arg0: i32) -> (i32, i32) {
    %c0_i32 = arith.constant 0 : i32
    %c0_i32_0 = arith.constant 0 : i32
    %c0_i32_1 = arith.constant 0 : i32
    return %c0_i32, %c0_i32_0 : i32, i32
  }
  func.func @transform_4(%arg0: i32) -> (i32, i32) {
    %c0_i32 = arith.constant 0 : i32
    %c0_i32_0 = arith.constant 0 : i32
    %c0_i32_1 = arith.constant 0 : i32
    return %c0_i32, %c0_i32_0 : i32, i32
  }
  func.func @transform_5(%arg0: i32) -> i32 {
    %c0_i32 = arith.constant 0 : i32
    %c0_i32_0 = arith.constant 0 : i32
    return %c0_i32 : i32
  }
  func.func @transform_6(%arg0: i32) -> i32 {
    %c0_i32 = arith.constant 0 : i32
    %c0_i32_0 = arith.constant 0 : i32
    return %c0_i32 : i32
  }
  func.func @transform_7(%arg0: i32) -> i32 {
    %c0_i32 = arith.constant 0 : i32
    %c0_i32_0 = arith.constant 0 : i32
    return %c0_i32 : i32
  }
  func.func @transform_8(%arg0: i32) -> i32 {
    %c0_i32 = arith.constant 0 : i32
    %c0_i32_0 = arith.constant 0 : i32
    return %c0_i32 : i32
  }
  func.func @transform_9(%arg0: i32) -> (i32, i32, i32) {
    %c0_i32 = arith.constant 0 : i32
    %c0_i32_0 = arith.constant 0 : i32
    %c0_i32_1 = arith.constant 0 : i32
    return %arg0, %c0_i32, %c0_i32_0 : i32, i32, i32
  }
}

module attributes {stable_mosaic.version = 11 : i64} {
  func.func @_ffn_kernel(%arg0: i32, %arg1: memref<16x32xf32, #tpu.memory_space<vmem>>, %arg2: memref<1x32xf32, #tpu.memory_space<vmem>>, %arg3: memref<1x32xf32, #tpu.memory_space<vmem>>, %arg4: memref<32x64xbf16, #tpu.memory_space<vmem>>, %arg5: memref<1x64xf32, #tpu.memory_space<vmem>>, %arg6: memref<64x32xbf16, #tpu.memory_space<vmem>>, %arg7: memref<1x32xf32, #tpu.memory_space<vmem>>, %arg8: memref<1x32xf32, #tpu.memory_space<vmem>>, %arg9: memref<1x32xf32, #tpu.memory_space<vmem>>, %arg10: memref<16x32xf32, #tpu.memory_space<vmem>>) attributes {dimension_semantics = [#tpu.dimension_semantics<parallel>], iteration_bounds = array<i64: 1>, scalar_prefetch = 0 : i64, scratch_operands = 0 : i64, tpu.core_type = #tpu.core_type<tc>, window_params = [{transform_indices = @transform_0, window_bounds = array<i64: 16, 32>}, {pipeline_mode = #tpu.pipeline_mode<synchronous>, transform_indices = @transform_1, window_bounds = array<i64: 1, 32>}, {pipeline_mode = #tpu.pipeline_mode<synchronous>, transform_indices = @transform_2, window_bounds = array<i64: 1, 32>}, {pipeline_mode = #tpu.pipeline_mode<synchronous>, transform_indices = @transform_3, window_bounds = array<i64: 32, 64>}, {pipeline_mode = #tpu.pipeline_mode<synchronous>, transform_indices = @transform_4, window_bounds = array<i64: 1, 64>}, {pipeline_mode = #tpu.pipeline_mode<synchronous>, transform_indices = @transform_5, window_bounds = array<i64: 64, 32>}, {pipeline_mode = #tpu.pipeline_mode<synchronous>, transform_indices = @transform_6, window_bounds = array<i64: 1, 32>}, {pipeline_mode = #tpu.pipeline_mode<synchronous>, transform_indices = @transform_7, window_bounds = array<i64: 1, 32>}, {pipeline_mode = #tpu.pipeline_mode<synchronous>, transform_indices = @transform_8, window_bounds = array<i64: 1, 32>}, {transform_indices = @transform_9, window_bounds = array<i64: 16, 32>}]} {
    %c0 = arith.constant 0 : index
    %c0_0 = arith.constant 0 : index
    %0 = vector.load %arg1[%c0, %c0_0] : memref<16x32xf32, #tpu.memory_space<vmem>>, vector<16x32xf32>
    %c0_1 = arith.constant 0 : index
    %c0_2 = arith.constant 0 : index
    %1 = vector.load %arg2[%c0_1, %c0_2] : memref<1x32xf32, #tpu.memory_space<vmem>>, vector<1x32xf32>
    %c0_3 = arith.constant 0 : index
    %c0_4 = arith.constant 0 : index
    %2 = vector.load %arg3[%c0_3, %c0_4] : memref<1x32xf32, #tpu.memory_space<vmem>>, vector<1x32xf32>
    %cst = arith.constant dense<0.000000e+00> : vector<16xf32>
    %3 = vector.multi_reduction <add>, %0, %cst [1] : vector<16x32xf32> to vector<16xf32>
    %4 = vector.shape_cast %3 : vector<16xf32> to vector<16x1xf32>
    %cst_5 = arith.constant 3.200000e+01 : f32
    %5 = vector.broadcast %cst_5 : f32 to vector<16x1xf32>
    %6 = arith.divf %4, %5 : vector<16x1xf32>
    %7 = vector.broadcast %6 : vector<16x1xf32> to vector<16x32xf32>
    %8 = arith.subf %0, %7 : vector<16x32xf32>
    %9 = arith.mulf %8, %8 : vector<16x32xf32>
    %cst_6 = arith.constant dense<0.000000e+00> : vector<16xf32>
    %10 = vector.multi_reduction <add>, %9, %cst_6 [1] : vector<16x32xf32> to vector<16xf32>
    %11 = vector.shape_cast %10 : vector<16xf32> to vector<16x1xf32>
    %cst_7 = arith.constant 3.200000e+01 : f32
    %12 = vector.broadcast %cst_7 : f32 to vector<16x1xf32>
    %13 = arith.divf %11, %12 : vector<16x1xf32>
    %14 = vector.broadcast %6 : vector<16x1xf32> to vector<16x32xf32>
    %15 = arith.subf %0, %14 : vector<16x32xf32>
    %cst_8 = arith.constant 9.99999974E-6 : f32
    %16 = vector.broadcast %cst_8 : f32 to vector<16x1xf32>
    %17 = arith.addf %13, %16 : vector<16x1xf32>
    %18 = math.rsqrt %17 : vector<16x1xf32>
    %19 = vector.broadcast %18 : vector<16x1xf32> to vector<16x32xf32>
    %20 = arith.mulf %15, %19 : vector<16x32xf32>
    %21 = vector.broadcast %1 : vector<1x32xf32> to vector<16x32xf32>
    %22 = arith.mulf %20, %21 : vector<16x32xf32>
    %23 = vector.broadcast %2 : vector<1x32xf32> to vector<16x32xf32>
    %24 = arith.addf %22, %23 : vector<16x32xf32>
    %c0_9 = arith.constant 0 : index
    %c0_10 = arith.constant 0 : index
    %25 = vector.load %arg4[%c0_9, %c0_10] : memref<32x64xbf16, #tpu.memory_space<vmem>>, vector<32x64xbf16>
    %26 = arith.truncf %24 : vector<16x32xf32> to vector<16x32xbf16>
    %cst_11 = arith.constant dense<0.000000e+00> : vector<16x64xf32>
    %27 = tpu.matmul %26, %25, %cst_11 {dimension_numbers = #tpu.dot_dimension_numbers<[1], [0], [0], [1], [0, 0, 1, 1], [], []>} : vector<16x32xbf16>, vector<32x64xbf16>, vector<16x64xf32> -> vector<16x64xf32>
    %c0_12 = arith.constant 0 : index
    %c0_13 = arith.constant 0 : index
    %28 = vector.load %arg5[%c0_12, %c0_13] : memref<1x64xf32, #tpu.memory_space<vmem>>, vector<1x64xf32>
    %29 = vector.broadcast %28 : vector<1x64xf32> to vector<16x64xf32>
    %30 = arith.addf %27, %29 : vector<16x64xf32>
    %cst_14 = arith.constant 0.000000e+00 : f32
    %31 = vector.broadcast %cst_14 : f32 to vector<16x64xf32>
    %32 = arith.maximumf %30, %31 : vector<16x64xf32>
    %c0_15 = arith.constant 0 : index
    %c0_16 = arith.constant 0 : index
    %33 = vector.load %arg6[%c0_15, %c0_16] : memref<64x32xbf16, #tpu.memory_space<vmem>>, vector<64x32xbf16>
    %34 = arith.truncf %32 : vector<16x64xf32> to vector<16x64xbf16>
    %cst_17 = arith.constant dense<0.000000e+00> : vector<16x32xf32>
    %35 = tpu.matmul %34, %33, %cst_17 {dimension_numbers = #tpu.dot_dimension_numbers<[1], [0], [0], [1], [0, 0, 1, 1], [], []>} : vector<16x64xbf16>, vector<64x32xbf16>, vector<16x32xf32> -> vector<16x32xf32>
    %c0_18 = arith.constant 0 : index
    %c0_19 = arith.constant 0 : index
    %36 = vector.load %arg7[%c0_18, %c0_19] : memref<1x32xf32, #tpu.memory_space<vmem>>, vector<1x32xf32>
    %37 = vector.broadcast %36 : vector<1x32xf32> to vector<16x32xf32>
    %38 = arith.addf %35, %37 : vector<16x32xf32>
    %cst_20 = arith.constant 5.000000e-01 : f32
    %39 = vector.broadcast %cst_20 : f32 to vector<16x32xf32>
    %40 = arith.mulf %39, %38 : vector<16x32xf32>
    %41 = arith.addf %0, %40 : vector<16x32xf32>
    %c0_21 = arith.constant 0 : index
    %c0_22 = arith.constant 0 : index
    %42 = vector.load %arg8[%c0_21, %c0_22] : memref<1x32xf32, #tpu.memory_space<vmem>>, vector<1x32xf32>
    %c0_23 = arith.constant 0 : index
    %c0_24 = arith.constant 0 : index
    %43 = vector.load %arg9[%c0_23, %c0_24] : memref<1x32xf32, #tpu.memory_space<vmem>>, vector<1x32xf32>
    %cst_25 = arith.constant dense<0.000000e+00> : vector<16xf32>
    %44 = vector.multi_reduction <add>, %41, %cst_25 [1] : vector<16x32xf32> to vector<16xf32>
    %45 = vector.shape_cast %44 : vector<16xf32> to vector<16x1xf32>
    %cst_26 = arith.constant 3.200000e+01 : f32
    %46 = vector.broadcast %cst_26 : f32 to vector<16x1xf32>
    %47 = arith.divf %45, %46 : vector<16x1xf32>
    %48 = vector.broadcast %47 : vector<16x1xf32> to vector<16x32xf32>
    %49 = arith.subf %41, %48 : vector<16x32xf32>
    %50 = arith.mulf %49, %49 : vector<16x32xf32>
    %cst_27 = arith.constant dense<0.000000e+00> : vector<16xf32>
    %51 = vector.multi_reduction <add>, %50, %cst_27 [1] : vector<16x32xf32> to vector<16xf32>
    %52 = vector.shape_cast %51 : vector<16xf32> to vector<16x1xf32>
    %cst_28 = arith.constant 3.200000e+01 : f32
    %53 = vector.broadcast %cst_28 : f32 to vector<16x1xf32>
    %54 = arith.divf %52, %53 : vector<16x1xf32>
    %55 = vector.broadcast %47 : vector<16x1xf32> to vector<16x32xf32>
    %56 = arith.subf %41, %55 : vector<16x32xf32>
    %cst_29 = arith.constant 9.99999974E-6 : f32
    %57 = vector.broadcast %cst_29 : f32 to vector<16x1xf32>
    %58 = arith.addf %54, %57 : vector<16x1xf32>
    %59 = math.rsqrt %58 : vector<16x1xf32>
    %60 = vector.broadcast %59 : vector<16x1xf32> to vector<16x32xf32>
    %61 = arith.mulf %56, %60 : vector<16x32xf32>
    %62 = vector.broadcast %42 : vector<1x32xf32> to vector<16x32xf32>
    %63 = arith.mulf %61, %62 : vector<16x32xf32>
    %64 = vector.broadcast %43 : vector<1x32xf32> to vector<16x32xf32>
    %65 = arith.addf %63, %64 : vector<16x32xf32>
    %c0_30 = arith.constant 0 : index
    %c0_31 = arith.constant 0 : index
    %66 = vector.load %arg10[%c0_30, %c0_31] : memref<16x32xf32, #tpu.memory_space<vmem>>, vector<16x32xf32>
    tpu.vector_store %arg10[%c0_30, %c0_31], %65 {strides = array<i32>} : memref<16x32xf32, #tpu.memory_space<vmem>>, vector<16x32xf32>,
    return
  }
  func.func @transform_0(%arg0: i32) -> (i32, i32) {
    %c0_i32 = arith.constant 0 : i32
    %c0_i32_0 = arith.constant 0 : i32
    return %arg0, %c0_i32 : i32, i32
  }
  func.func @transform_1(%arg0: i32) -> (i32, i32) {
    %c0_i32 = arith.constant 0 : i32
    %c0_i32_0 = arith.constant 0 : i32
    %c0_i32_1 = arith.constant 0 : i32
    return %c0_i32, %c0_i32_0 : i32, i32
  }
  func.func @transform_2(%arg0: i32) -> (i32, i32) {
    %c0_i32 = arith.constant 0 : i32
    %c0_i32_0 = arith.constant 0 : i32
    %c0_i32_1 = arith.constant 0 : i32
    return %c0_i32, %c0_i32_0 : i32, i32
  }
  func.func @transform_3(%arg0: i32) -> (i32, i32) {
    %c0_i32 = arith.constant 0 : i32
    %c0_i32_0 = arith.constant 0 : i32
    %c0_i32_1 = arith.constant 0 : i32
    return %c0_i32, %c0_i32_0 : i32, i32
  }
  func.func @transform_4(%arg0: i32) -> (i32, i32) {
    %c0_i32 = arith.constant 0 : i32
    %c0_i32_0 = arith.constant 0 : i32
    %c0_i32_1 = arith.constant 0 : i32
    return %c0_i32, %c0_i32_0 : i32, i32
  }
  func.func @transform_5(%arg0: i32) -> (i32, i32) {
    %c0_i32 = arith.constant 0 : i32
    %c0_i32_0 = arith.constant 0 : i32
    %c0_i32_1 = arith.constant 0 : i32
    return %c0_i32, %c0_i32_0 : i32, i32
  }
  func.func @transform_6(%arg0: i32) -> (i32, i32) {
    %c0_i32 = arith.constant 0 : i32
    %c0_i32_0 = arith.constant 0 : i32
    %c0_i32_1 = arith.constant 0 : i32
    return %c0_i32, %c0_i32_0 : i32, i32
  }
  func.func @transform_7(%arg0: i32) -> (i32, i32) {
    %c0_i32 = arith.constant 0 : i32
    %c0_i32_0 = arith.constant 0 : i32
    %c0_i32_1 = arith.constant 0 : i32
    return %c0_i32, %c0_i32_0 : i32, i32
  }
  func.func @transform_8(%arg0: i32) -> (i32, i32) {
    %c0_i32 = arith.constant 0 : i32
    %c0_i32_0 = arith.constant 0 : i32
    %c0_i32_1 = arith.constant 0 : i32
    return %c0_i32, %c0_i32_0 : i32, i32
  }
  func.func @transform_9(%arg0: i32) -> (i32, i32) {
    %c0_i32 = arith.constant 0 : i32
    %c0_i32_0 = arith.constant 0 : i32
    return %arg0, %c0_i32 : i32, i32
  }
}

module attributes {stable_mosaic.version = 11 : i64} {
  func.func @_ffn_kernel(%arg0: i32, %arg1: memref<16x32xf32, #tpu.memory_space<vmem>>, %arg2: memref<1x32xf32, #tpu.memory_space<vmem>>, %arg3: memref<1x32xf32, #tpu.memory_space<vmem>>, %arg4: memref<32x64xbf16, #tpu.memory_space<vmem>>, %arg5: memref<1x64xf32, #tpu.memory_space<vmem>>, %arg6: memref<64x32xbf16, #tpu.memory_space<vmem>>, %arg7: memref<1x32xf32, #tpu.memory_space<vmem>>, %arg8: memref<1x32xf32, #tpu.memory_space<vmem>>, %arg9: memref<1x32xf32, #tpu.memory_space<vmem>>, %arg10: memref<16x32xf32, #tpu.memory_space<vmem>>) attributes {dimension_semantics = [#tpu.dimension_semantics<parallel>], iteration_bounds = array<i64: 1>, scalar_prefetch = 0 : i64, scratch_operands = 0 : i64, tpu.core_type = #tpu.core_type<tc>, window_params = [{transform_indices = @transform_0, window_bounds = array<i64: 16, 32>}, {pipeline_mode = #tpu.pipeline_mode<synchronous>, transform_indices = @transform_1, window_bounds = array<i64: 1, 32>}, {pipeline_mode = #tpu.pipeline_mode<synchronous>, transform_indices = @transform_2, window_bounds = array<i64: 1, 32>}, {pipeline_mode = #tpu.pipeline_mode<synchronous>, transform_indices = @transform_3, window_bounds = array<i64: 32, 64>}, {pipeline_mode = #tpu.pipeline_mode<synchronous>, transform_indices = @transform_4, window_bounds = array<i64: 1, 64>}, {pipeline_mode = #tpu.pipeline_mode<synchronous>, transform_indices = @transform_5, window_bounds = array<i64: 64, 32>}, {pipeline_mode = #tpu.pipeline_mode<synchronous>, transform_indices = @transform_6, window_bounds = array<i64: 1, 32>}, {pipeline_mode = #tpu.pipeline_mode<synchronous>, transform_indices = @transform_7, window_bounds = array<i64: 1, 32>}, {pipeline_mode = #tpu.pipeline_mode<synchronous>, transform_indices = @transform_8, window_bounds = array<i64: 1, 32>}, {transform_indices = @transform_9, window_bounds = array<i64: 16, 32>}]} {
    %c0 = arith.constant 0 : index
    %c0_0 = arith.constant 0 : index
    %0 = vector.load %arg1[%c0, %c0_0] : memref<16x32xf32, #tpu.memory_space<vmem>>, vector<16x32xf32>
    %c0_1 = arith.constant 0 : index
    %c0_2 = arith.constant 0 : index
    %1 = vector.load %arg2[%c0_1, %c0_2] : memref<1x32xf32, #tpu.memory_space<vmem>>, vector<1x32xf32>
    %c0_3 = arith.constant 0 : index
    %c0_4 = arith.constant 0 : index
    %2 = vector.load %arg3[%c0_3, %c0_4] : memref<1x32xf32, #tpu.memory_space<vmem>>, vector<1x32xf32>
    %cst = arith.constant dense<0.000000e+00> : vector<16xf32>
    %3 = vector.multi_reduction <add>, %0, %cst [1] : vector<16x32xf32> to vector<16xf32>
    %4 = vector.shape_cast %3 : vector<16xf32> to vector<16x1xf32>
    %cst_5 = arith.constant 3.200000e+01 : f32
    %5 = vector.broadcast %cst_5 : f32 to vector<16x1xf32>
    %6 = arith.divf %4, %5 : vector<16x1xf32>
    %7 = vector.broadcast %6 : vector<16x1xf32> to vector<16x32xf32>
    %8 = arith.subf %0, %7 : vector<16x32xf32>
    %9 = arith.mulf %8, %8 : vector<16x32xf32>
    %cst_6 = arith.constant dense<0.000000e+00> : vector<16xf32>
    %10 = vector.multi_reduction <add>, %9, %cst_6 [1] : vector<16x32xf32> to vector<16xf32>
    %11 = vector.shape_cast %10 : vector<16xf32> to vector<16x1xf32>
    %cst_7 = arith.constant 3.200000e+01 : f32
    %12 = vector.broadcast %cst_7 : f32 to vector<16x1xf32>
    %13 = arith.divf %11, %12 : vector<16x1xf32>
    %14 = vector.broadcast %6 : vector<16x1xf32> to vector<16x32xf32>
    %15 = arith.subf %0, %14 : vector<16x32xf32>
    %cst_8 = arith.constant 9.99999974E-6 : f32
    %16 = vector.broadcast %cst_8 : f32 to vector<16x1xf32>
    %17 = arith.addf %13, %16 : vector<16x1xf32>
    %18 = math.rsqrt %17 : vector<16x1xf32>
    %19 = vector.broadcast %18 : vector<16x1xf32> to vector<16x32xf32>
    %20 = arith.mulf %15, %19 : vector<16x32xf32>
    %21 = vector.broadcast %1 : vector<1x32xf32> to vector<16x32xf32>
    %22 = arith.mulf %20, %21 : vector<16x32xf32>
    %23 = vector.broadcast %2 : vector<1x32xf32> to vector<16x32xf32>
    %24 = arith.addf %22, %23 : vector<16x32xf32>
    %c0_9 = arith.constant 0 : index
    %c0_10 = arith.constant 0 : index
    %25 = vector.load %arg4[%c0_9, %c0_10] : memref<32x64xbf16, #tpu.memory_space<vmem>>, vector<32x64xbf16>
    %26 = arith.truncf %24 : vector<16x32xf32> to vector<16x32xbf16>
    %cst_11 = arith.constant dense<0.000000e+00> : vector<16x64xf32>
    %27 = tpu.matmul %26, %25, %cst_11 {dimension_numbers = #tpu.dot_dimension_numbers<[1], [0], [0], [1], [0, 0, 1, 1], [], []>} : vector<16x32xbf16>, vector<32x64xbf16>, vector<16x64xf32> -> vector<16x64xf32>
    %c0_12 = arith.constant 0 : index
    %c0_13 = arith.constant 0 : index
    %28 = vector.load %arg5[%c0_12, %c0_13] : memref<1x64xf32, #tpu.memory_space<vmem>>, vector<1x64xf32>
    %29 = vector.broadcast %28 : vector<1x64xf32> to vector<16x64xf32>
    %30 = arith.addf %27, %29 : vector<16x64xf32>
    %cst_14 = arith.constant 0.000000e+00 : f32
    %31 = vector.broadcast %cst_14 : f32 to vector<16x64xf32>
    %32 = arith.maximumf %30, %31 : vector<16x64xf32>
    %c0_15 = arith.constant 0 : index
    %c0_16 = arith.constant 0 : index
    %33 = vector.load %arg6[%c0_15, %c0_16] : memref<64x32xbf16, #tpu.memory_space<vmem>>, vector<64x32xbf16>
    %34 = arith.truncf %32 : vector<16x64xf32> to vector<16x64xbf16>
    %cst_17 = arith.constant dense<0.000000e+00> : vector<16x32xf32>
    %35 = tpu.matmul %34, %33, %cst_17 {dimension_numbers = #tpu.dot_dimension_numbers<[1], [0], [0], [1], [0, 0, 1, 1], [], []>} : vector<16x64xbf16>, vector<64x32xbf16>, vector<16x32xf32> -> vector<16x32xf32>
    %c0_18 = arith.constant 0 : index
    %c0_19 = arith.constant 0 : index
    %36 = vector.load %arg7[%c0_18, %c0_19] : memref<1x32xf32, #tpu.memory_space<vmem>>, vector<1x32xf32>
    %37 = vector.broadcast %36 : vector<1x32xf32> to vector<16x32xf32>
    %38 = arith.addf %35, %37 : vector<16x32xf32>
    %cst_20 = arith.constant 5.000000e-01 : f32
    %39 = vector.broadcast %cst_20 : f32 to vector<16x32xf32>
    %40 = arith.mulf %39, %38 : vector<16x32xf32>
    %41 = arith.addf %0, %40 : vector<16x32xf32>
    %c0_21 = arith.constant 0 : index
    %c0_22 = arith.constant 0 : index
    %42 = vector.load %arg8[%c0_21, %c0_22] : memref<1x32xf32, #tpu.memory_space<vmem>>, vector<1x32xf32>
    %c0_23 = arith.constant 0 : index
    %c0_24 = arith.constant 0 : index
    %43 = vector.load %arg9[%c0_23, %c0_24] : memref<1x32xf32, #tpu.memory_space<vmem>>, vector<1x32xf32>
    %cst_25 = arith.constant dense<0.000000e+00> : vector<16xf32>
    %44 = vector.multi_reduction <add>, %41, %cst_25 [1] : vector<16x32xf32> to vector<16xf32>
    %45 = vector.shape_cast %44 : vector<16xf32> to vector<16x1xf32>
    %cst_26 = arith.constant 3.200000e+01 : f32
    %46 = vector.broadcast %cst_26 : f32 to vector<16x1xf32>
    %47 = arith.divf %45, %46 : vector<16x1xf32>
    %48 = vector.broadcast %47 : vector<16x1xf32> to vector<16x32xf32>
    %49 = arith.subf %41, %48 : vector<16x32xf32>
    %50 = arith.mulf %49, %49 : vector<16x32xf32>
    %cst_27 = arith.constant dense<0.000000e+00> : vector<16xf32>
    %51 = vector.multi_reduction <add>, %50, %cst_27 [1] : vector<16x32xf32> to vector<16xf32>
    %52 = vector.shape_cast %51 : vector<16xf32> to vector<16x1xf32>
    %cst_28 = arith.constant 3.200000e+01 : f32
    %53 = vector.broadcast %cst_28 : f32 to vector<16x1xf32>
    %54 = arith.divf %52, %53 : vector<16x1xf32>
    %55 = vector.broadcast %47 : vector<16x1xf32> to vector<16x32xf32>
    %56 = arith.subf %41, %55 : vector<16x32xf32>
    %cst_29 = arith.constant 9.99999974E-6 : f32
    %57 = vector.broadcast %cst_29 : f32 to vector<16x1xf32>
    %58 = arith.addf %54, %57 : vector<16x1xf32>
    %59 = math.rsqrt %58 : vector<16x1xf32>
    %60 = vector.broadcast %59 : vector<16x1xf32> to vector<16x32xf32>
    %61 = arith.mulf %56, %60 : vector<16x32xf32>
    %62 = vector.broadcast %42 : vector<1x32xf32> to vector<16x32xf32>
    %63 = arith.mulf %61, %62 : vector<16x32xf32>
    %64 = vector.broadcast %43 : vector<1x32xf32> to vector<16x32xf32>
    %65 = arith.addf %63, %64 : vector<16x32xf32>
    %c0_30 = arith.constant 0 : index
    %c0_31 = arith.constant 0 : index
    %66 = vector.load %arg10[%c0_30, %c0_31] : memref<16x32xf32, #tpu.memory_space<vmem>>, vector<16x32xf32>
    tpu.vector_store %arg10[%c0_30, %c0_31], %65 {strides = array<i32>} : memref<16x32xf32, #tpu.memory_space<vmem>>, vector<16x32xf32>,
    return
  }
  func.func @transform_0(%arg0: i32) -> (i32, i32) {
    %c0_i32 = arith.constant 0 : i32
    %c0_i32_0 = arith.constant 0 : i32
    return %arg0, %c0_i32 : i32, i32
  }
  func.func @transform_1(%arg0: i32) -> (i32, i32) {
    %c0_i32 = arith.constant 0 : i32
    %c0_i32_0 = arith.constant 0 : i32
    %c0_i32_1 = arith.constant 0 : i32
    return %c0_i32, %c0_i32_0 : i32, i32
  }
  func.func @transform_2(%arg0: i32) -> (i32, i32) {
    %c0_i32 = arith.constant 0 : i32
    %c0_i32_0 = arith.constant 0 : i32
    %c0_i32_1 = arith.constant 0 : i32
    return %c0_i32, %c0_i32_0 : i32, i32
  }
  func.func @transform_3(%arg0: i32) -> (i32, i32) {
    %c0_i32 = arith.constant 0 : i32
    %c0_i32_0 = arith.constant 0 : i32
    %c0_i32_1 = arith.constant 0 : i32
    return %c0_i32, %c0_i32_0 : i32, i32
  }
  func.func @transform_4(%arg0: i32) -> (i32, i32) {
    %c0_i32 = arith.constant 0 : i32
    %c0_i32_0 = arith.constant 0 : i32
    %c0_i32_1 = arith.constant 0 : i32
    return %c0_i32, %c0_i32_0 : i32, i32
  }
  func.func @transform_5(%arg0: i32) -> (i32, i32) {
    %c0_i32 = arith.constant 0 : i32
    %c0_i32_0 = arith.constant 0 : i32
    %c0_i32_1 = arith.constant 0 : i32
    return %c0_i32, %c0_i32_0 : i32, i32
  }
  func.func @transform_6(%arg0: i32) -> (i32, i32) {
    %c0_i32 = arith.constant 0 : i32
    %c0_i32_0 = arith.constant 0 : i32
    %c0_i32_1 = arith.constant 0 : i32
    return %c0_i32, %c0_i32_0 : i32, i32
  }
  func.func @transform_7(%arg0: i32) -> (i32, i32) {
    %c0_i32 = arith.constant 0 : i32
    %c0_i32_0 = arith.constant 0 : i32
    %c0_i32_1 = arith.constant 0 : i32
    return %c0_i32, %c0_i32_0 : i32, i32
  }
  func.func @transform_8(%arg0: i32) -> (i32, i32) {
    %c0_i32 = arith.constant 0 : i32
    %c0_i32_0 = arith.constant 0 : i32
    %c0_i32_1 = arith.constant 0 : i32
    return %c0_i32, %c0_i32_0 : i32, i32
  }
  func.func @transform_9(%arg0: i32) -> (i32, i32) {
    %c0_i32 = arith.constant 0 : i32
    %c0_i32_0 = arith.constant 0 : i32
    return %arg0, %c0_i32 : i32, i32
  }
}

</mosaic_0001>

<bundles_post_ra>
// kernel: encoder_forward.13
= control target key start
LH: loop header
LB: loop body
LE: loop exit
PB: predicated region body
PF: predicated region fallthrough
CT: control target
= control target key end

     0   :  { %vm180_vm0 = vcmask 1043456   ;;  %vm181_vm1 = vcmask 1044480   ;;  %v716_v0 = vmov 0.0   ;;  %v717_v2 = vmov 65535   ;;  %s972_s1 = inlined_call_operand.vmem [shape: bf16[9,32], index: 1, kind: input, shape index: {}]   ;;  %s973_s0 = inlined_call_operand.vmem [shape: bf16[240,9], index: 0, kind: input, shape index: {}]   ;;  %s974_s2 = inlined_call_operand.vmem [shape: f32[1,32], index: 2, kind: input, shape index: {}]   ;;  %s975_s3 = inlined_call_operand.vmem [shape: bf16[240,32], index: 3, kind: output, shape index: {}]  }
   0x1   :  { %633 = vmatprep.subr.bf16.mxu0 %v716_v0  ;;  %v700_v1 = vld [vmem:[%s972_s1] sm:$0x1f]   ;;  %695 = vmatprep.subr.bf16.mxu1 %v716_v0  ;;  %v182_v3 = vsel %vm180_vm0, 4294967295, %v717_v2  ;;  %vm718_vm2 = vmmov 0   ;;  %vm134_vm3 = vcmask 72704   ;;  %v703_v8 = vld [vmem:[%s973_s0 + $0x8] sm:$0xff]  }
   0x2   :  { %v183_v4 = vsel %vm181_vm1, %v182_v3, 0  ;;  %635 = vmatprep.mubr.msk.bf16.mxu0 %vm718_vm2, %v716_v0  ;;  %v701_v5 = vld [vmem:[%s973_s0] sm:$0xff]   ;;  %667 = vmatprep.mubr.msk.bf16.mxu1 %vm718_vm2, %v716_v0  ;;  %v704_v9 = vld [vmem:[%s973_s0 + $0x48] sm:$0xff]   ;;  %v705_v10 = vld [vmem:[%s973_s0 + $0x10] sm:$0xff]   ;;  %vm490_vm4 = vcmask 257024  }
   0x3   :  { %v185_v6 = vand.u32 %v700_v1, %v183_v4  ;;  %v702_v7 = vld [vmem:[%s973_s0 + $0x40] sm:$0xff]   ;;  %v706_v11 = vld [vmem:[%s973_s0 + $0x50] sm:$0xff]   ;;  %v707_v12 = vld [vmem:[%s973_s0 + $0x18] sm:$0xff]  }
   0x4   :  { %v708_v13 = vld [vmem:[%s973_s0 + $0x58] sm:$0xff]   ;;  %v709_v14 = vld [vmem:[%s973_s0 + $0x20] sm:$0xff]   ;;  %v711_v16 = vld [vmem:[%s973_s0 + $0x28] sm:$0xff]  }
   0x5   :  { %634 = vmatpush3.bf16.msra.mxu0 %v185_v6  ;;  %696 = vmatpush3.bf16.msra.mxu1 %v185_v6  ;;  %v710_v15 = vld [vmem:[%s973_s0 + $0x60] sm:$0xff]   ;;  %v712_v17 = vld [vmem:[%s973_s0 + $0x68] sm:$0xff]   ;;  %v713_v18 = vld [vmem:[%s973_s0 + $0x30] sm:$0xff]  }
   0x6   :  { %v714_v19 = vld [vmem:[%s973_s0 + $0x70] sm:$0xff]   ;;  %v715_v20 = vld [vmem:[%s973_s0 + $0x38] sm:$0xff]   ;;  %v820_v21 = vld [vmem:[%s974_s2] ss:$0 sm:$0xff] }
   0x8   :  { %636 = vmatmul.mubr.msk.bf16.vlgmr.msra.gmra.mxu0 %vm134_vm3, %v701_v5  ;;  %668 = vmatmul.mubr.msk.bf16.vlgmr.msra.gmra.mxu1 %vm134_vm3, %v702_v7 }
   0x9   :  { %639 = vmatprep.mubr.msk.bf16.mxu0 %vm718_vm2, %v716_v0  ;;  %671 = vmatprep.mubr.msk.bf16.mxu1 %vm718_vm2, %v716_v0 }
  0x10   :  { %640 = vmatmul.mubr.msk.bf16.gmra.mxu0 %vm134_vm3, %v703_v8  ;;  %672 = vmatmul.mubr.msk.bf16.gmra.mxu1 %vm134_vm3, %v704_v9 }
  0x11   :  { %643 = vmatprep.mubr.msk.bf16.mxu0 %vm718_vm2, %v716_v0  ;;  %675 = vmatprep.mubr.msk.bf16.mxu1 %vm718_vm2, %v716_v0 }
  0x18   :  { %644 = vmatmul.mubr.msk.bf16.gmra.mxu0 %vm134_vm3, %v705_v10  ;;  %676 = vmatmul.mubr.msk.bf16.gmra.mxu1 %vm134_vm3, %v706_v11 }
  0x19   :  { %647 = vmatprep.mubr.msk.bf16.mxu0 %vm718_vm2, %v716_v0  ;;  %679 = vmatprep.mubr.msk.bf16.mxu1 %vm718_vm2, %v716_v0 }
  0x20   :  { %648 = vmatmul.mubr.msk.bf16.gmra.mxu0 %vm134_vm3, %v707_v12  ;;  %680 = vmatmul.mubr.msk.bf16.gmra.mxu1 %vm134_vm3, %v708_v13 }
  0x21   :  { %651 = vmatprep.mubr.msk.bf16.mxu0 %vm718_vm2, %v716_v0  ;;  %683 = vmatprep.mubr.msk.bf16.mxu1 %vm718_vm2, %v716_v0 }
  0x28   :  { %652 = vmatmul.mubr.msk.bf16.gmra.mxu0 %vm134_vm3, %v709_v14  ;;  %684 = vmatmul.mubr.msk.bf16.gmra.mxu1 %vm134_vm3, %v710_v15 }
  0x29   :  { %655 = vmatprep.mubr.msk.bf16.mxu0 %vm718_vm2, %v716_v0  ;;  %687 = vmatprep.mubr.msk.bf16.mxu1 %vm718_vm2, %v716_v0 }
  0x30   :  { %656 = vmatmul.mubr.msk.bf16.gmra.mxu0 %vm134_vm3, %v711_v16  ;;  %688 = vmatmul.mubr.msk.bf16.gmra.mxu1 %vm134_vm3, %v712_v17 }
  0x31   :  { %659 = vmatprep.mubr.msk.bf16.mxu0 %vm718_vm2, %v716_v0  ;;  %691 = vmatprep.mubr.msk.bf16.mxu1 %vm718_vm2, %v716_v0 }
  0x38   :  { %660 = vmatmul.mubr.msk.bf16.gmra.mxu0 %vm134_vm3, %v713_v18  ;;  %692 = vmatmul.mubr.msk.bf16.gmra.mxu1 %vm134_vm3, %v714_v19 }
  0x39   :  { %663 = vmatprep.mubr.msk.bf16.mxu0 %vm718_vm2, %v716_v0 }
  0x40   :  { %664 = vmatmul.mubr.msk.bf16.gmra.mxu0 %vm134_vm3, %v715_v20 }
  0xc8   :  { %v221_v22 = vpop.f32.mrf.mxu0  ;;  %v285_v23 = vpop.f32.mrf.mxu1 }
  0xc9   :  { %v222_v24 = vadd.f32 %v820_v21, %v221_v22  ;;  %v286_v25 = vadd.f32 %v820_v21, %v285_v23 }
  0xca   :  { %v637_v26 = vpop.f32.mrf.mxu0  ;;  %v669_v27 = vpop.f32.mrf.mxu1 }
  0xcb   :  { %v340_v28 = vmax.f32 %v222_v24, 0.0  ;;  %v356_v29 = vmax.f32 %v286_v25, 0.0 }
  0xcc   :  { %v224_v30 = vpop.f32.mrf.mxu0  ;;  %v288_v31 = vpop.f32.mrf.mxu1 }
  0xcd   :  { %v587_v32 = vpack.c.bf16 %v340_v28, %v340_v28  ;;  %v603_v33 = vpack.c.bf16 %v356_v29, %v356_v29  ;;  %v225_v34 = vadd.f32 %v820_v21, %v224_v30  ;;  %v289_v35 = vadd.f32 %v820_v21, %v288_v31 }
  0xce   :  { %v638_v36 = vpop.f32.mrf.mxu0  ;;  %v670_v37 = vpop.f32.mrf.mxu1 }
  0xcf   :  { %491 = vst.msk [vmem:[%s975_s3] sm:$0xf] %vm490_vm4, %v587_v32  ;;  %507 = vst.msk [vmem:[%s975_s3 + $0x40] sm:$0xf] %vm490_vm4, %v603_v33  ;;  %v341_v38 = vmax.f32 %v225_v34, 0.0  ;;  %v357_v39 = vmax.f32 %v289_v35, 0.0 }
  0xd0   :  { %v229_v40 = vpop.f32.mrf.mxu0  ;;  %v293_v41 = vpop.f32.mrf.mxu1 }
  0xd1   :  { %v588_v42 = vpack.c.bf16 %v341_v38, %v341_v38  ;;  %v604_v43 = vpack.c.bf16 %v357_v39, %v357_v39  ;;  %v230_v44 = vadd.f32 %v820_v21, %v229_v40  ;;  %v294_v45 = vadd.f32 %v820_v21, %v293_v41 }
  0xd2   :  { %v641_v46 = vpop.f32.mrf.mxu0  ;;  %v673_v47 = vpop.f32.mrf.mxu1 }
  0xd3   :  { %492 = vst.msk [vmem:[%s975_s3 + $0x4] sm:$0xf] %vm490_vm4, %v588_v42  ;;  %508 = vst.msk [vmem:[%s975_s3 + $0x44] sm:$0xf] %vm490_vm4, %v604_v43  ;;  %v342_v48 = vmax.f32 %v230_v44, 0.0  ;;  %v358_v49 = vmax.f32 %v294_v45, 0.0 }
  0xd4   :  { %v232_v50 = vpop.f32.mrf.mxu0  ;;  %v296_v51 = vpop.f32.mrf.mxu1 }
  0xd5   :  { %v589_v52 = vpack.c.bf16 %v342_v48, %v342_v48  ;;  %v605_v53 = vpack.c.bf16 %v358_v49, %v358_v49  ;;  %v233_v54 = vadd.f32 %v820_v21, %v232_v50  ;;  %v297_v55 = vadd.f32 %v820_v21, %v296_v51 }
  0xd6   :  { %v642_v56 = vpop.f32.mrf.mxu0  ;;  %v674_v57 = vpop.f32.mrf.mxu1 }
  0xd7   :  { %493 = vst.msk [vmem:[%s975_s3 + $0x8] sm:$0xf] %vm490_vm4, %v589_v52  ;;  %509 = vst.msk [vmem:[%s975_s3 + $0x48] sm:$0xf] %vm490_vm4, %v605_v53  ;;  %v343_v58 = vmax.f32 %v233_v54, 0.0  ;;  %v359_v59 = vmax.f32 %v297_v55, 0.0 }
  0xd8   :  { %v237_v60 = vpop.f32.mrf.mxu0  ;;  %v301_v61 = vpop.f32.mrf.mxu1 }
  0xd9   :  { %v590_v62 = vpack.c.bf16 %v343_v58, %v343_v58  ;;  %v606_v63 = vpack.c.bf16 %v359_v59, %v359_v59  ;;  %v238_v0 = vadd.f32 %v820_v21, %v237_v60  ;;  %v302_v1 = vadd.f32 %v820_v21, %v301_v61 }
  0xda   :  { %v645_v2 = vpop.f32.mrf.mxu0  ;;  %v677_v3 = vpop.f32.mrf.mxu1 }
  0xdb   :  { %494 = vst.msk [vmem:[%s975_s3 + $0xc] sm:$0xf] %vm490_vm4, %v590_v62  ;;  %510 = vst.msk [vmem:[%s975_s3 + $0x4c] sm:$0xf] %vm490_vm4, %v606_v63  ;;  %v344_v4 = vmax.f32 %v238_v0, 0.0  ;;  %v360_v5 = vmax.f32 %v302_v1, 0.0 }
  0xdc   :  { %v240_v6 = vpop.f32.mrf.mxu0  ;;  %v304_v7 = vpop.f32.mrf.mxu1 }
  0xdd   :  { %v591_v8 = vpack.c.bf16 %v344_v4, %v344_v4  ;;  %v607_v9 = vpack.c.bf16 %v360_v5, %v360_v5  ;;  %v241_v10 = vadd.f32 %v820_v21, %v240_v6  ;;  %v305_v11 = vadd.f32 %v820_v21, %v304_v7 }
  0xde   :  { %v646_v12 = vpop.f32.mrf.mxu0  ;;  %v678_v13 = vpop.f32.mrf.mxu1 }
  0xdf   :  { %495 = vst.msk [vmem:[%s975_s3 + $0x10] sm:$0xf] %vm490_vm4, %v591_v8  ;;  %511 = vst.msk [vmem:[%s975_s3 + $0x50] sm:$0xf] %vm490_vm4, %v607_v9  ;;  %v345_v14 = vmax.f32 %v241_v10, 0.0  ;;  %v361_v15 = vmax.f32 %v305_v11, 0.0 }
  0xe0   :  { %v245_v16 = vpop.f32.mrf.mxu0  ;;  %v309_v17 = vpop.f32.mrf.mxu1 }
  0xe1   :  { %v592_v18 = vpack.c.bf16 %v345_v14, %v345_v14  ;;  %v608_v19 = vpack.c.bf16 %v361_v15, %v361_v15  ;;  %v246_v20 = vadd.f32 %v820_v21, %v245_v16  ;;  %v310_v22 = vadd.f32 %v820_v21, %v309_v17 }
  0xe2   :  { %v649_v23 = vpop.f32.mrf.mxu0  ;;  %v681_v24 = vpop.f32.mrf.mxu1 }
  0xe3   :  { %496 = vst.msk [vmem:[%s975_s3 + $0x14] sm:$0xf] %vm490_vm4, %v592_v18  ;;  %512 = vst.msk [vmem:[%s975_s3 + $0x54] sm:$0xf] %vm490_vm4, %v608_v19  ;;  %v346_v25 = vmax.f32 %v246_v20, 0.0  ;;  %v362_v26 = vmax.f32 %v310_v22, 0.0 }
  0xe4   :  { %v248_v27 = vpop.f32.mrf.mxu0  ;;  %v312_v28 = vpop.f32.mrf.mxu1 }
  0xe5   :  { %v593_v29 = vpack.c.bf16 %v346_v25, %v346_v25  ;;  %v609_v30 = vpack.c.bf16 %v362_v26, %v362_v26  ;;  %v249_v31 = vadd.f32 %v820_v21, %v248_v27  ;;  %v313_v32 = vadd.f32 %v820_v21, %v312_v28 }
  0xe6   :  { %v650_v33 = vpop.f32.mrf.mxu0  ;;  %v682_v34 = vpop.f32.mrf.mxu1 }
  0xe7   :  { %497 = vst.msk [vmem:[%s975_s3 + $0x18] sm:$0xf] %vm490_vm4, %v593_v29  ;;  %513 = vst.msk [vmem:[%s975_s3 + $0x58] sm:$0xf] %vm490_vm4, %v609_v30  ;;  %v347_v35 = vmax.f32 %v249_v31, 0.0  ;;  %v363_v36 = vmax.f32 %v313_v32, 0.0 }
  0xe8   :  { %v253_v37 = vpop.f32.mrf.mxu0  ;;  %v317_v38 = vpop.f32.mrf.mxu1 }
  0xe9   :  { %v594_v39 = vpack.c.bf16 %v347_v35, %v347_v35  ;;  %v610_v40 = vpack.c.bf16 %v363_v36, %v363_v36  ;;  %v254_v41 = vadd.f32 %v820_v21, %v253_v37  ;;  %v318_v42 = vadd.f32 %v820_v21, %v317_v38 }
  0xea   :  { %v653_v43 = vpop.f32.mrf.mxu0  ;;  %v685_v44 = vpop.f32.mrf.mxu1 }
  0xeb   :  { %498 = vst.msk [vmem:[%s975_s3 + $0x1c] sm:$0xf] %vm490_vm4, %v594_v39  ;;  %514 = vst.msk [vmem:[%s975_s3 + $0x5c] sm:$0xf] %vm490_vm4, %v610_v40  ;;  %v348_v45 = vmax.f32 %v254_v41, 0.0  ;;  %v364_v46 = vmax.f32 %v318_v42, 0.0 }
  0xec   :  { %v256_v47 = vpop.f32.mrf.mxu0  ;;  %v320_v48 = vpop.f32.mrf.mxu1 }
  0xed   :  { %v595_v49 = vpack.c.bf16 %v348_v45, %v348_v45  ;;  %v611_v50 = vpack.c.bf16 %v364_v46, %v364_v46  ;;  %v257_v51 = vadd.f32 %v820_v21, %v256_v47  ;;  %v321_v52 = vadd.f32 %v820_v21, %v320_v48 }
  0xee   :  { %v654_v53 = vpop.f32.mrf.mxu0  ;;  %v686_v54 = vpop.f32.mrf.mxu1 }
  0xef   :  { %499 = vst.msk [vmem:[%s975_s3 + $0x20] sm:$0xf] %vm490_vm4, %v595_v49  ;;  %515 = vst.msk [vmem:[%s975_s3 + $0x60] sm:$0xf] %vm490_vm4, %v611_v50  ;;  %v349_v55 = vmax.f32 %v257_v51, 0.0  ;;  %v365_v56 = vmax.f32 %v321_v52, 0.0 }
  0xf0   :  { %v261_v57 = vpop.f32.mrf.mxu0  ;;  %v325_v58 = vpop.f32.mrf.mxu1 }
  0xf1   :  { %v596_v59 = vpack.c.bf16 %v349_v55, %v349_v55  ;;  %v612_v60 = vpack.c.bf16 %v365_v56, %v365_v56  ;;  %v262_v61 = vadd.f32 %v820_v21, %v261_v57  ;;  %v326_v62 = vadd.f32 %v820_v21, %v325_v58 }
  0xf2   :  { %v657_v63 = vpop.f32.mrf.mxu0  ;;  %v689_v0 = vpop.f32.mrf.mxu1 }
  0xf3   :  { %500 = vst.msk [vmem:[%s975_s3 + $0x24] sm:$0xf] %vm490_vm4, %v596_v59  ;;  %516 = vst.msk [vmem:[%s975_s3 + $0x64] sm:$0xf] %vm490_vm4, %v612_v60  ;;  %v350_v1 = vmax.f32 %v262_v61, 0.0  ;;  %v366_v2 = vmax.f32 %v326_v62, 0.0 }
  0xf4   :  { %v264_v3 = vpop.f32.mrf.mxu0  ;;  %v328_v4 = vpop.f32.mrf.mxu1 }
  0xf5   :  { %v597_v5 = vpack.c.bf16 %v350_v1, %v350_v1  ;;  %v613_v6 = vpack.c.bf16 %v366_v2, %v366_v2  ;;  %v265_v7 = vadd.f32 %v820_v21, %v264_v3  ;;  %v329_v8 = vadd.f32 %v820_v21, %v328_v4 }
  0xf6   :  { %v658_v9 = vpop.f32.mrf.mxu0  ;;  %v690_v10 = vpop.f32.mrf.mxu1 }
  0xf7   :  { %501 = vst.msk [vmem:[%s975_s3 + $0x28] sm:$0xf] %vm490_vm4, %v597_v5  ;;  %517 = vst.msk [vmem:[%s975_s3 + $0x68] sm:$0xf] %vm490_vm4, %v613_v6  ;;  %v351_v11 = vmax.f32 %v265_v7, 0.0  ;;  %v367_v12 = vmax.f32 %v329_v8, 0.0 }
  0xf8   :  { %v269_v13 = vpop.f32.mrf.mxu0  ;;  %v333_v14 = vpop.f32.mrf.mxu1 }
  0xf9   :  { %v598_v15 = vpack.c.bf16 %v351_v11, %v351_v11  ;;  %v614_v16 = vpack.c.bf16 %v367_v12, %v367_v12  ;;  %v270_v17 = vadd.f32 %v820_v21, %v269_v13  ;;  %v334_v18 = vadd.f32 %v820_v21, %v333_v14 }
  0xfa   :  { %v661_v19 = vpop.f32.mrf.mxu0  ;;  %v693_v20 = vpop.f32.mrf.mxu1 }
  0xfb   :  { %502 = vst.msk [vmem:[%s975_s3 + $0x2c] sm:$0xf] %vm490_vm4, %v598_v15  ;;  %518 = vst.msk [vmem:[%s975_s3 + $0x6c] sm:$0xf] %vm490_vm4, %v614_v16  ;;  %v352_v22 = vmax.f32 %v270_v17, 0.0  ;;  %v368_v23 = vmax.f32 %v334_v18, 0.0 }
  0xfc   :  { %v272_v24 = vpop.f32.mrf.mxu0  ;;  %v336_v25 = vpop.f32.mrf.mxu1 }
  0xfd   :  { %v599_v26 = vpack.c.bf16 %v352_v22, %v352_v22  ;;  %v615_v27 = vpack.c.bf16 %v368_v23, %v368_v23  ;;  %v273_v28 = vadd.f32 %v820_v21, %v272_v24  ;;  %v337_v29 = vadd.f32 %v820_v21, %v336_v25 }
  0xfe   :  { %v662_v30 = vpop.f32.mrf.mxu0  ;;  %v694_v31 = vpop.f32.mrf.mxu1 }
  0xff   :  { %503 = vst.msk [vmem:[%s975_s3 + $0x30] sm:$0xf] %vm490_vm4, %v599_v26  ;;  %519 = vst.msk [vmem:[%s975_s3 + $0x70] sm:$0xf] %vm490_vm4, %v615_v27  ;;  %v353_v32 = vmax.f32 %v273_v28, 0.0  ;;  %v369_v33 = vmax.f32 %v337_v29, 0.0 }
 0x100   :  { %v277_v34 = vpop.f32.mrf.mxu0 }
 0x101   :  { %v600_v35 = vpack.c.bf16 %v353_v32, %v353_v32  ;;  %v616_v36 = vpack.c.bf16 %v369_v33, %v369_v33  ;;  %v278_v37 = vadd.f32 %v820_v21, %v277_v34 }
 0x102   :  { %v665_v38 = vpop.f32.mrf.mxu0 }
 0x103   :  { %504 = vst.msk [vmem:[%s975_s3 + $0x34] sm:$0xf] %vm490_vm4, %v600_v35  ;;  %520 = vst.msk [vmem:[%s975_s3 + $0x74] sm:$0xf] %vm490_vm4, %v616_v36  ;;  %v354_v39 = vmax.f32 %v278_v37, 0.0 }
 0x104   :  { %v280_v40 = vpop.f32.mrf.mxu0 }
 0x105   :  { %v601_v41 = vpack.c.bf16 %v354_v39, %v354_v39  ;;  %v281_v42 = vadd.f32 %v820_v21, %v280_v40 }
 0x106   :  { %v666_v43 = vpop.f32.mrf.mxu0 }
 0x107   :  { %505 = vst.msk [vmem:[%s975_s3 + $0x38] sm:$0xf] %vm490_vm4, %v601_v41  ;;  %v355_v44 = vmax.f32 %v281_v42, 0.0 }
 0x109   :  { %v602_v45 = vpack.c.bf16 %v355_v44, %v355_v44 }
 0x10b   :  { %506 = vst.msk [vmem:[%s975_s3 + $0x3c] sm:$0xf] %vm490_vm4, %v602_v45 }

// kernel: encoder_forward.14
= control target key start
LH: loop header
LB: loop body
LE: loop exit
PB: predicated region body
PF: predicated region fallthrough
CT: control target
= control target key end

     0   :  { %s634_s12 = smov 0   ;;  %s636_s13 = smov 0   ;;  %s714_s0 = inlined_call_operand.vmem [shape: bf16[9,48,32], index: 0, kind: input, shape index: {}]   ;;  %s715_s1 = inlined_call_operand.vmem [shape: bf16[9,32,32], index: 1, kind: input, shape index: {}]   ;;  %s716_s2 = inlined_call_operand.vmem [shape: f32[1,32], index: 2, kind: input, shape index: {}]   ;;  %s717_s3 = inlined_call_operand.vmem [shape: bf16[48,32], index: 3, kind: output, shape index: {}]  }
   0x1   :  { %s638_s14 = smov 0  }
   0x2 LB: > { %s22_s15 = sadd.s32 1, %s605_s13  ;;  %p497_p0 = scmp.ge.s32.totalorder %s609_s14, 1  ;;  %s609_s14 = sphi %s638_s14, %s13_s14   ;;  %s605_s13 = sphi %s636_s13, %s719_s13   ;;  %s601_s12 = sphi %s634_s12, %s718_s12  }
   0x3   : > { %p23_p1 = scmp.ge.s32.totalorder %s22_s15, 9  ;;  %p166_p2 = scmp.lt.s32.totalorder %s609_s14, 10 }
   0x5   : > { %s721_s15 = smov (%p23_p1, %s22_s15), 0  ;;  %p167_p3 = pnand %p497_p0, %p166_p2 }
   0x6   : > { %p200_p4 = scmp.lt.s32.totalorder (!%p167_p3), %s601_s12, 8  ;;  %p501_p5 = scmp.ne.s32.totalorder (!%p167_p3), %s601_s12, 0 }
   0x7   : > { %170 = sbr.rel (%p167_p3) target bundleno = 253 (0xfd), region = 32 }
   0xc   : > { %s201_s16 = scalar_select %p200_p4, %s601_s12, 8 }
   0xd   : > { %224 = sbr.rel (%p501_p5) target bundleno = 22 (0x16), region = 36 }
   0xe   : > { %s554_s17 = smul.u32 24, %s201_s16  ;;  %s522_s18 = sshll.u32 %s201_s16, 4 }
   0xf   : > { %s213_s21 = scalar_lea.vmem %s715_s1, %s522_s18 }
  0x10   : > { %s662_s24 = scalar_lea.vmem %s714_s0, %s554_s17 }
  0x12   : > { %vm225_vm0 = vcmask 261120   ;;  %v611_v0 = vmov 0.0  }
  0x13   : > { %226 = vst.msk [vmem:[#allocation2] sm:$0xff] %vm225_vm0, %v611_v0  ;;  %227 = vst.msk [vmem:[#allocation2 + $0x8] sm:$0xff] %vm225_vm0, %v611_v0 }
  0x14   : > { %228 = vst.msk [vmem:[#allocation2 + $0x10] sm:$0xff] %vm225_vm0, %v611_v0  ;;  %229 = vst.msk [vmem:[#allocation2 + $0x18] sm:$0xff] %vm225_vm0, %v611_v0 }
  0x15   : > { %230 = vst.msk [vmem:[#allocation2 + $0x20] sm:$0xff] %vm225_vm0, %v611_v0  ;;  %231 = vst.msk [vmem:[#allocation2 + $0x28] sm:$0xff] %vm225_vm0, %v611_v0 }
  0x16 PF: > { %v582_v1 = vld [vmem:[%s213_s21 + $0x8] sm:$0xff]   ;;  %v612_v2 = vmov 0.0   ;;  %v583_v3 = vld [vmem:[%s213_s21] sm:$0xff]   ;;  %vm613_vm1 = vmmov 0   ;;  %vm275_vm2 = vcmask 261120   ;;  %v586_v6 = vld [vmem:[%s662_s24 + $0x10] sm:$0xff]  }
  0x17   : > { %550 = vmatprep.subr.bf16.mxu1 %v612_v2  ;;  %534 = vmatprep.subr.bf16.mxu0 %v612_v2  ;;  %v584_v4 = vld [vmem:[%s662_s24 + $0x8] sm:$0xff]   ;;  %v585_v5 = vld [vmem:[%s662_s24] sm:$0xff]   ;;  %p510_p6 = scmp.ne.s32.totalorder %s601_s12, 8 }
  0x18   : > { %552 = vmatpush3.bf16.msra.mxu1 %v582_v1  ;;  %535 = vmatpush3.bf16.msra.mxu0 %v582_v1 }
  0x19   : > { %551 = vmatprep.subr.bf16.mxu1 %v612_v2  ;;  %536 = vmatprep.subr.bf16.mxu0 %v612_v2 }
  0x1a   : > { %542 = vmatprep.mubr.msk.bf16.mxu1 %vm613_vm1, %v612_v2  ;;  %538 = vmatprep.mubr.msk.bf16.mxu0 %vm613_vm1, %v612_v2  ;;  %v232_v8 = vld [vmem:[#allocation2] sm:$0xff]  ;;  %v233_v16 = vld [vmem:[#allocation2 + $0x8] sm:$0xff] }
  0x1b   : > { %v234_v7 = vld [vmem:[#allocation2 + $0x10] sm:$0xff]  ;;  %v235_v15 = vld [vmem:[#allocation2 + $0x18] sm:$0xff] }
  0x1c   : > { %553 = vmatpush3.bf16.msra.mxu1 %v583_v3  ;;  %537 = vmatpush3.bf16.msra.mxu0 %v583_v3  ;;  %v236_v23 = vld [vmem:[#allocation2 + $0x20] sm:$0xff]  ;;  %v237_v27 = vld [vmem:[#allocation2 + $0x28] sm:$0xff] }
  0x1f   : > { %543 = vmatmul.mubr.msk.bf16.vlgmr.msra.gmra.mxu1 %vm275_vm2, %v584_v4  ;;  %539 = vmatmul.mubr.msk.bf16.vlgmr.msra.gmra.mxu0 %vm275_vm2, %v585_v5 }
  0x20   : > { %546 = vmatprep.mubr.msk.bf16.mxu1 %vm613_vm1, %v612_v2 }
  0x27   : > { %547 = vmatmul.mubr.msk.bf16.gmra.mxu1 %vm275_vm2, %v586_v6 }
  0xdf   : > { %v327_v9 = vpop.f32.mrf.mxu1  ;;  %v319_v10 = vpop.f32.mrf.mxu0 }
  0xe0   : > { %v344_v11 = vadd.f32 %v327_v9, %v234_v7  ;;  %v342_v12 = vadd.f32 %v319_v10, %v232_v8 }
  0xe1   : > { %v544_v13 = vpop.f32.mrf.mxu1  ;;  %v540_v14 = vpop.f32.mrf.mxu0 }
  0xe2   : > { %350 = vst.msk [vmem:[#allocation2 + $0x10] sm:$0xff] %vm275_vm2, %v344_v11  ;;  %348 = vst.msk [vmem:[#allocation2] sm:$0xff] %vm275_vm2, %v342_v12 }
  0xe3   : > { %v330_v17 = vpop.f32.mrf.mxu1  ;;  %v322_v18 = vpop.f32.mrf.mxu0 }
  0xe4   : > { %v345_v19 = vadd.f32 %v330_v17, %v235_v15  ;;  %v343_v20 = vadd.f32 %v322_v18, %v233_v16 }
  0xe5   : > { %v545_v21 = vpop.f32.mrf.mxu1  ;;  %v541_v22 = vpop.f32.mrf.mxu0 }
  0xe6   : > { %351 = vst.msk [vmem:[#allocation2 + $0x18] sm:$0xff] %vm275_vm2, %v345_v19  ;;  %349 = vst.msk [vmem:[#allocation2 + $0x8] sm:$0xff] %vm275_vm2, %v343_v20 }
  0xe7   : > { %v335_v24 = vpop.f32.mrf.mxu1 }
  0xe8   : > { %v346_v25 = vadd.f32 %v335_v24, %v236_v23 }
  0xe9   : > { %v548_v26 = vpop.f32.mrf.mxu1 }
  0xea   : > { %352 = vst.msk [vmem:[#allocation2 + $0x20] sm:$0xff] %vm275_vm2, %v346_v25  ;;  %357 = sbr.rel (%p510_p6) target bundleno = 253 (0xfd), region = 40 }
  0xeb   : > { %v338_v28 = vpop.f32.mrf.mxu1 }
  0xec   : > { %v347_v29 = vadd.f32 %v338_v28, %v237_v27 }
  0xed   : > { %v549_v30 = vpop.f32.mrf.mxu1 }
  0xee   : > { %353 = vst.msk [vmem:[#allocation2 + $0x28] sm:$0xff] %vm275_vm2, %v347_v29 }
  0xef   : > { %v358_v31 = vld [vmem:[#allocation2] sm:$0xff]  ;;  %v359_v33 = vld [vmem:[#allocation2 + $0x8] sm:$0xff]  ;;  %v360_v36 = vld [vmem:[#allocation2 + $0x10] sm:$0xff]  ;;  %vm407_vm3 = vcmask 257024  }
  0xf0   : > { %v511_v32 = vld [vmem:[%s716_s2] ss:$0 sm:$0xff]  ;;  %v361_v37 = vld [vmem:[#allocation2 + $0x18] sm:$0xff] }
  0xf1   : > { %v371_v34 = vadd.f32 %v511_v32, %v358_v31  ;;  %v372_v35 = vadd.f32 %v511_v32, %v359_v33  ;;  %v362_v38 = vld [vmem:[#allocation2 + $0x20] sm:$0xff]  ;;  %v373_v39 = vadd.f32 %v511_v32, %v360_v36  ;;  %v374_v40 = vadd.f32 %v511_v32, %v361_v37 }
  0xf2   : > { %v375_v41 = vadd.f32 %v511_v32, %v362_v38 }
  0xf3   : > { %v377_v43 = vmax.f32 %v371_v34, 0.0  ;;  %v378_v44 = vmax.f32 %v372_v35, 0.0  ;;  %v379_v46 = vmax.f32 %v373_v39, 0.0  ;;  %v380_v47 = vmax.f32 %v374_v40, 0.0 }
  0xf4   : > { %v381_v48 = vmax.f32 %v375_v41, 0.0 }
  0xf5   : > { %v363_v42 = vld [vmem:[#allocation2 + $0x28] sm:$0xff]  ;;  %v523_v49 = vpack.c.bf16 %v377_v43, %v377_v43  ;;  %v524_v50 = vpack.c.bf16 %v378_v44, %v378_v44  ;;  %v525_v52 = vpack.c.bf16 %v379_v46, %v379_v46  ;;  %v526_v53 = vpack.c.bf16 %v380_v47, %v380_v47 }
  0xf6   : > { %v376_v45 = vadd.f32 %v511_v32, %v363_v42  ;;  %v527_v54 = vpack.c.bf16 %v381_v48, %v381_v48 }
  0xf7   : > { %408 = vst.msk [vmem:[%s717_s3] sm:$0xf] %vm407_vm3, %v523_v49  ;;  %409 = vst.msk [vmem:[%s717_s3 + $0x4] sm:$0xf] %vm407_vm3, %v524_v50 }
  0xf8   : > { %v382_v51 = vmax.f32 %v376_v45, 0.0  ;;  %410 = vst.msk [vmem:[%s717_s3 + $0x8] sm:$0xf] %vm407_vm3, %v525_v52  ;;  %411 = vst.msk [vmem:[%s717_s3 + $0xc] sm:$0xf] %vm407_vm3, %v526_v53 }
  0xf9   : > { %412 = vst.msk [vmem:[%s717_s3 + $0x10] sm:$0xf] %vm407_vm3, %v527_v54 }
  0xfa   : > { %v528_v55 = vpack.c.bf16 %v382_v51, %v382_v51 }
  0xfc   : > { %413 = vst.msk [vmem:[%s717_s3 + $0x14] sm:$0xf] %vm407_vm3, %v528_v55 }
  0xfd PF: > { %s13_s14 = sadd.s32 1, %s609_s14   ;;  %s718_s12 = smov %s605_s13 }
  0xfe   : > { %p10_p7 = scmp.ge.s32.totalorder %s13_s14, 11   ;;  %s719_s13 = smov %s721_s15 }
 0x100   :  { %12 = sbr.rel (!%p10_p7) target bundleno = 2 (0x2), region = 73 }

// kernel: encoder_forward.15
= control target key start
LH: loop header
LB: loop body
LE: loop exit
PB: predicated region body
PF: predicated region fallthrough
CT: control target
= control target key end

     0   :  { %v170_v0 = vmov 0.0   ;;  %vm171_vm0 = vmmov 0   ;;  %vm77_vm1 = vcmask 785408   ;;  %vm122_vm2 = vcmask 261120   ;;  %s222_s1 = inlined_call_operand.vmem [shape: bf16[96,32], index: 1, kind: input, shape index: {}]   ;;  %s223_s0 = inlined_call_operand.vmem [shape: bf16[16,96], index: 0, kind: input, shape index: {}]   ;;  %s224_s2 = inlined_call_operand.vmem [shape: f32[1,32], index: 2, kind: input, shape index: {}]   ;;  %s225_s3 = inlined_call_operand.vmem [shape: f32[16,32], index: 3, kind: output, shape index: {}]  }
   0x1   :  { %145 = vmatprep.subr.bf16.mxu0 %v170_v0  ;;  %v163_v1 = vld [vmem:[%s222_s1 + $0x28] sm:$0xff]   ;;  %157 = vmatprep.mubr.msk.bf16.mxu0 %vm171_vm0, %v170_v0  ;;  %v164_v2 = vld [vmem:[%s222_s1 + $0x20] sm:$0xff]   ;;  %v165_v3 = vld [vmem:[%s222_s1 + $0x18] sm:$0xff]  }
   0x2   :  { %146 = vmatpush3.bf16.msra.mxu0 %v163_v1  ;;  %v166_v4 = vld [vmem:[%s222_s1 + $0x10] sm:$0xff]   ;;  %v167_v5 = vld [vmem:[%s222_s1 + $0x8] sm:$0xff]   ;;  %v168_v6 = vld [vmem:[%s222_s1] sm:$0xff]  }
   0x3   :  { %147 = vmatprep.subr.bf16.mxu0 %v170_v0  ;;  %v169_v7 = vld [vmem:[%s223_s0] sm:$0xff]  }
   0x4   :  { %v129_v8 = vld [vmem:[%s224_s2] ss:$0 sm:$0xff] }
   0x6   :  { %148 = vmatpush3.bf16.msra.mxu0 %v164_v2 }
   0x7   :  { %149 = vmatprep.subr.bf16.mxu0 %v170_v0 }
   0xa   :  { %150 = vmatpush3.bf16.msra.mxu0 %v165_v3 }
   0xb   :  { %151 = vmatprep.subr.bf16.mxu0 %v170_v0 }
   0xe   :  { %152 = vmatpush3.bf16.msra.mxu0 %v166_v4 }
   0xf   :  { %153 = vmatprep.subr.bf16.mxu0 %v170_v0 }
  0x12   :  { %154 = vmatpush3.bf16.msra.mxu0 %v167_v5 }
  0x13   :  { %155 = vmatprep.subr.bf16.mxu0 %v170_v0 }
  0x16   :  { %156 = vmatpush3.bf16.msra.mxu0 %v168_v6 }
  0x19   :  { %158 = vmatmul.mubr.msk.bf16.vlgmr.msra.gmra.mxu0 %vm77_vm1, %v169_v7 }
  0xd9   :  { %v115_v9 = vpop.f32.mrf.mxu0 }
  0xda   :  { %v116_v10 = vadd.f32 %v129_v8, %v115_v9 }
  0xdb   :  { %v159_v11 = vpop.f32.mrf.mxu0 }
  0xdc   :  { %123 = vst.msk [vmem:[%s225_s3] sm:$0xff] %vm122_vm2, %v116_v10 }
  0xdd   :  { %v118_v12 = vpop.f32.mrf.mxu0 }
  0xde   :  { %v119_v13 = vadd.f32 %v129_v8, %v118_v12 }
  0xdf   :  { %v160_v14 = vpop.f32.mrf.mxu0 }
  0xe0   :  { %124 = vst.msk [vmem:[%s225_s3 + $0x8] sm:$0xff] %vm122_vm2, %v119_v13 }

// kernel: encoder_forward.16
= control target key start
LH: loop header
LB: loop body
LE: loop exit
PB: predicated region body
PF: predicated region fallthrough
CT: control target
= control target key end

     0   :  { %vm31_vm0 = vcmask 261120   ;;  %v292_v14 = vmov 0.0   ;;  %vm293_vm1 = vmmov 0   ;;  %vm185_vm2 = vcmask 523264   ;;  %s393_s0 = inlined_call_operand.vmem [shape: f32[16,32], index: 0, kind: input, shape index: {}]   ;;  %s394_s3 = inlined_call_operand.vmem [shape: bf16[32,64], index: 3, kind: input, shape index: {}]   ;;  %s395_s5 = inlined_call_operand.vmem [shape: bf16[64,32], index: 5, kind: input, shape index: {}]   ;;  %s396_s1 = inlined_call_operand.vmem [shape: f32[1,32], index: 1, kind: input, shape index: {}]   ;;  %s397_s2 = inlined_call_operand.vmem [shape: f32[1,32], index: 2, kind: input, shape index: {}]   ;;  %s398_s4 = inlined_call_operand.vmem [shape: f32[1,64], index: 4, kind: input, shape index: {}]   ;;  %s399_s6 = inlined_call_operand.vmem [shape: f32[1,32], index: 6, kind: input, shape index: {}]   ;;  %s400_s7 = inlined_call_operand.vmem [shape: f32[16,32], index: 7, kind: output, shape index: {}]  }
   0x1   :  { %v337_v0 = vld [vmem:[%s393_s0] sm:$0xff]  ;;  %v342_v1 = vld [vmem:[%s393_s0 + $0x8] sm:$0xff]  ;;  %260 = vmatprep.subr.bf16.mxu0 %v292_v14  ;;  %264 = vmatprep.mubr.msk.bf16.mxu0 %vm293_vm1, %v292_v14  ;;  %v284_v17 = vld [vmem:[%s395_s5 + $0x18] sm:$0xff]  }
   0x2   :  { %v32_v2 = vsel %vm31_vm0, %v337_v0, 0.0  ;;  %v35_v3 = vsel %vm31_vm0, %v342_v1, 0.0  ;;  %v282_v15 = vld [vmem:[%s394_s3 + $0x8] sm:$0xff]   ;;  %268 = vmatprep.subr.bf16.mxu1 %v292_v14  ;;  %276 = vmatprep.mubr.msk.bf16.mxu1 %vm293_vm1, %v292_v14  ;;  %v283_v16 = vld [vmem:[%s394_s3] sm:$0xff]   ;;  %v285_v35 = vld [vmem:[%s395_s5 + $0x10] sm:$0xff]  }
   0x3   :  { %33 = vadd.xlane.f32.xlu0 %v32_v2  ;;  %261 = vmatpush3.bf16.msra.mxu0 %v282_v15  ;;  %v240_v26 = vld [vmem:[%s396_s1] ss:$0 sm:$0xff]  ;;  %v286_v36 = vld [vmem:[%s395_s5 + $0x8] sm:$0xff]  }
   0x4   :  { %262 = vmatprep.subr.bf16.mxu0 %v292_v14  ;;  %269 = vmatpush3.bf16.msra.mxu1 %v284_v17  ;;  %v241_v30 = vld [vmem:[%s397_s2] ss:$0 sm:$0xff] }
   0x5   :  { %270 = vmatprep.subr.bf16.mxu1 %v292_v14  ;;  %v287_v37 = vld [vmem:[%s395_s5] sm:$0xff]  }
   0x6   :  { %v242_v38 = vld [vmem:[%s398_s4] ss:$0 sm:$0xff] }
   0x7   :  { %36 = vadd.xlane.f32.xlu0 %v35_v3  ;;  %263 = vmatpush3.bf16.msra.mxu0 %v283_v16  ;;  %v246_v48 = vld [vmem:[%s399_s6] ss:$0 sm:$0xff] }
   0x8   :  { %271 = vmatpush3.bf16.msra.mxu1 %v285_v35 }
   0x9   :  { %272 = vmatprep.subr.bf16.mxu1 %v292_v14 }
   0xc   :  { %273 = vmatpush3.bf16.msra.mxu1 %v286_v36 }
   0xd   :  { %274 = vmatprep.subr.bf16.mxu1 %v292_v14 }
  0x10   :  { %275 = vmatpush3.bf16.msra.mxu1 %v287_v37 }
  0x8c   :  { %v34_v4 = vpop.xlane.xlu0 %33 }
  0x8d   :  { %v39_v5 = vmul.f32 0.03125, %v34_v4 }
  0x8f   :  { %v41_v6 = vsub.f32 %v337_v0, %v39_v5 }
  0x90   :  { %v37_v7 = vpop.xlane.xlu0 %36 }
  0x91   :  { %v40_v8 = vmul.f32 0.03125, %v37_v7  ;;  %v43_v9 = vmul.f32 %v41_v6, %v41_v6 }
  0x93   :  { %v42_v10 = vsub.f32 %v342_v1, %v40_v8  ;;  %v45_v11 = vsel %vm31_vm0, %v43_v9, 0.0 }
  0x94   :  { %46 = vadd.xlane.f32.xlu1 %v45_v11 }
  0x95   :  { %v44_v12 = vmul.f32 %v42_v10, %v42_v10 }
  0x97   :  { %v48_v13 = vsel %vm31_vm0, %v44_v12, 0.0 }
  0x98   :  { %49 = vadd.xlane.f32.xlu1 %v48_v13 }
 0x11d   :  { %v47_v18 = vpop.xlane.xlu1 %46 }
 0x11e   :  { %v51_v19 = vmul.f32 0.03125, %v47_v18 }
 0x120   :  { %v53_v20 = vadd.f32 1e-05, %v51_v19 }
 0x121   :  { %v50_v21 = vpop.xlane.xlu1 %49 }
 0x122   :  { %288 = vrsqrt.f32 %v53_v20  ;;  %v52_v22 = vmul.f32 0.03125, %v50_v21 }
 0x124   :  { %v54_v23 = vadd.f32 1e-05, %v52_v22 }
 0x126   :  { %290 = vrsqrt.f32 %v54_v23 }
 0x12f   :  { %v289_v24 = vpop.eup %288 }
 0x130   :  { %v57_v25 = vmul.f32 %v289_v24, %v41_v6 }
 0x132   :  { %v65_v29 = vmul.f32 %v240_v26, %v57_v25 }
 0x133   :  { %v291_v27 = vpop.eup %290 }
 0x134   :  { %v58_v28 = vmul.f32 %v291_v27, %v42_v10  ;;  %v73_v32 = vadd.f32 %v241_v30, %v65_v29 }
 0x136   :  { %v66_v31 = vmul.f32 %v240_v26, %v58_v28 }
 0x138   :  { %v74_v33 = vadd.f32 %v241_v30, %v66_v31 }
 0x13a   :  { %v79_v34 = vpack.c.bf16 %v74_v33, %v73_v32 }
 0x13c   :  { %265 = vmatmul.mubr.msk.bf16.vlgmr.msra.gmra.mxu0 %vm31_vm0, %v79_v34 }
 0x1fc   :  { %v136_v39 = vpop.f32.mrf.mxu0 }
 0x1fd   :  { %v137_v41 = vadd.f32 %v242_v38, %v136_v39 }
 0x1fe   :  { %v266_v40 = vpop.f32.mrf.mxu0 }
 0x1ff   :  { %v143_v45 = vmax.f32 %v137_v41, 0.0 }
 0x200   :  { %v139_v42 = vpop.f32.mrf.mxu0 }
 0x201   :  { %v140_v43 = vadd.f32 %v242_v38, %v139_v42 }
 0x202   :  { %v267_v44 = vpop.f32.mrf.mxu0 }
 0x203   :  { %v144_v46 = vmax.f32 %v140_v43, 0.0 }
 0x205   :  { %v153_v47 = vpack.c.bf16 %v144_v46, %v143_v45 }
 0x207   :  { %277 = vmatmul.mubr.msk.bf16.vlgmr.msra.gmra.mxu1 %vm185_vm2, %v153_v47 }
 0x2c7   :  { %v223_v49 = vpop.f32.mrf.mxu1 }
 0x2c8   :  { %v224_v50 = vadd.f32 %v246_v48, %v223_v49 }
 0x2c9   :  { %v278_v51 = vpop.f32.mrf.mxu1 }
 0x2ca   :  { %v230_v52 = vmul.f32 0.5, %v224_v50 }
 0x2cb   :  { %v226_v53 = vpop.f32.mrf.mxu1 }
 0x2cc   :  { %v232_v54 = vadd.f32 %v230_v52, %v337_v0  ;;  %v227_v55 = vadd.f32 %v246_v48, %v226_v53 }
 0x2cd   :  { %v279_v56 = vpop.f32.mrf.mxu1 }
 0x2ce   :  { %234 = vst.msk [vmem:[%s400_s7] sm:$0xff] %vm31_vm0, %v232_v54  ;;  %v231_v57 = vmul.f32 0.5, %v227_v55 }
 0x2d0   :  { %v233_v58 = vadd.f32 %v231_v57, %v342_v1 }
 0x2d2   :  { %235 = vst.msk [vmem:[%s400_s7 + $0x8] sm:$0xff] %vm31_vm0, %v233_v58 }

// kernel: encoder_forward.17
= control target key start
LH: loop header
LB: loop body
LE: loop exit
PB: predicated region body
PF: predicated region fallthrough
CT: control target
= control target key end

     0   :  { %vm28_vm0 = vcmask 261120   ;;  %v330_v14 = vmov 0.0   ;;  %vm331_vm1 = vmmov 0   ;;  %vm150_vm2 = vcmask 60416   ;;  %s335_s17 = smov 56   ;;  %s336_s18 = smov 80   ;;  %s505_s0 = inlined_call_operand.vmem [shape: f32[16,32], index: 0, kind: input, shape index: {}]   ;;  %s506_s3 = inlined_call_operand.vmem [shape: bf16[32,96], index: 3, kind: input, shape index: {}]   ;;  %s507_s1 = inlined_call_operand.vmem [shape: f32[1,32], index: 1, kind: input, shape index: {}]   ;;  %s508_s2 = inlined_call_operand.vmem [shape: f32[1,32], index: 2, kind: input, shape index: {}]   ;;  %s509_s4 = inlined_call_operand.vmem [shape: f32[1,96], index: 4, kind: input, shape index: {}]   ;;  %s510_s5 = inlined_call_operand.vmem [shape: bf16[4,16,8], index: 5, kind: output, shape index: {0}]   ;;  %s511_s7 = inlined_call_operand.vmem [shape: bf16[4,16,8], index: 7, kind: output, shape index: {2}]   ;;  %s512_s6 = inlined_call_operand.vmem [shape: bf16[4,16,8], index: 6, kind: output, shape index: {1}]  }
   0x1   :  { %v24_v0 = vld [vmem:[%s505_s0] sm:$0xff]  ;;  %v25_v1 = vld [vmem:[%s505_s0 + $0x8] sm:$0xff]  ;;  %303 = vmatprep.subr.bf16.mxu0 %v330_v14  ;;  %307 = vmatprep.mubr.msk.bf16.mxu0 %vm331_vm1, %v330_v14  ;;  %s337_s19 = smov 48   ;;  %s338_s20 = smov 72  }
   0x2   :  { %v29_v2 = vsel %vm28_vm0, %v24_v0, 0.0  ;;  %v32_v3 = vsel %vm28_vm0, %v25_v1, 0.0  ;;  %v324_v15 = vld [vmem:[%s506_s3 + $0x8] sm:$0xff]   ;;  %v325_v16 = vld [vmem:[%s506_s3] sm:$0xff]   ;;  %s339_s21 = smov 120   ;;  %s340_s22 = smov 112  }
   0x3   :  { %30 = vadd.xlane.f32.xlu0 %v29_v2  ;;  %304 = vmatpush3.bf16.msra.mxu0 %v324_v15  ;;  %v268_v25 = vld [vmem:[%s507_s1] ss:$0 sm:$0xff]  ;;  %s332_s1 = smov 64   ;;  %s341_s23 = smov 104  }
   0x4   :  { %305 = vmatprep.subr.bf16.mxu0 %v330_v14  ;;  %v269_v29 = vld [vmem:[%s508_s2] ss:$0 sm:$0xff]  ;;  %s333_s2 = smov 96   ;;  %s342_s24 = smov 40  }
   0x5   :  { %v270_v34 = vld [vmem:[%s509_s4] ss:$0 sm:$0xff]  ;;  %s334_s4 = smov 88  }
   0x7   :  { %33 = vadd.xlane.f32.xlu0 %v32_v3  ;;  %306 = vmatpush3.bf16.msra.mxu0 %v325_v16 }
  0x8c   :  { %v31_v4 = vpop.xlane.xlu0 %30 }
  0x8d   :  { %v36_v5 = vmul.f32 0.03125, %v31_v4 }
  0x8f   :  { %v38_v6 = vsub.f32 %v24_v0, %v36_v5 }
  0x90   :  { %v34_v7 = vpop.xlane.xlu0 %33 }
  0x91   :  { %v37_v8 = vmul.f32 0.03125, %v34_v7  ;;  %v40_v9 = vmul.f32 %v38_v6, %v38_v6 }
  0x93   :  { %v39_v10 = vsub.f32 %v25_v1, %v37_v8  ;;  %v42_v11 = vsel %vm28_vm0, %v40_v9, 0.0 }
  0x94   :  { %43 = vadd.xlane.f32.xlu1 %v42_v11 }
  0x95   :  { %v41_v12 = vmul.f32 %v39_v10, %v39_v10 }
  0x97   :  { %v45_v13 = vsel %vm28_vm0, %v41_v12, 0.0 }
  0x98   :  { %46 = vadd.xlane.f32.xlu1 %v45_v13 }
 0x11d   :  { %v44_v17 = vpop.xlane.xlu1 %43 }
 0x11e   :  { %v48_v18 = vmul.f32 0.03125, %v44_v17 }
 0x120   :  { %v50_v19 = vadd.f32 1e-05, %v48_v18 }
 0x121   :  { %v47_v20 = vpop.xlane.xlu1 %46 }
 0x122   :  { %326 = vrsqrt.f32 %v50_v19  ;;  %v49_v21 = vmul.f32 0.03125, %v47_v20 }
 0x124   :  { %v51_v22 = vadd.f32 1e-05, %v49_v21 }
 0x126   :  { %328 = vrsqrt.f32 %v51_v22 }
 0x12f   :  { %v327_v23 = vpop.eup %326 }
 0x130   :  { %v54_v24 = vmul.f32 %v327_v23, %v38_v6 }
 0x132   :  { %v62_v28 = vmul.f32 %v268_v25, %v54_v24 }
 0x133   :  { %v329_v26 = vpop.eup %328 }
 0x134   :  { %v55_v27 = vmul.f32 %v329_v26, %v39_v10  ;;  %v70_v31 = vadd.f32 %v269_v29, %v62_v28 }
 0x136   :  { %v63_v30 = vmul.f32 %v268_v25, %v55_v27 }
 0x138   :  { %v71_v32 = vadd.f32 %v269_v29, %v63_v30 }
 0x13a   :  { %v76_v33 = vpack.c.bf16 %v71_v32, %v70_v31 }
 0x13c   :  { %308 = vmatmul.mubr.msk.bf16.vlgmr.msra.gmra.mxu0 %vm28_vm0, %v76_v33 }
 0x1fc   :  { %v133_v35 = vpop.f32.mrf.mxu0 }
 0x1fd   :  { %v134_v36 = vadd.f32 %v270_v34, %v133_v35 }
 0x1fe   :  { %v309_v37 = vpop.f32.mrf.mxu0 }
 0x1ff   :  { %v140_v38 = vmul.f32 0.35355338, %v134_v36  ;;  %v298_v39 = vpack.c.bf16 %v134_v36, %v134_v36 }
 0x200   :  { %v136_v40 = vpop.f32.mrf.mxu0 }
 0x201   :  { %v296_v41 = vpack.c.bf16 %v140_v38, %v140_v38  ;;  %v137_v42 = vadd.f32 %v270_v34, %v136_v40  ;;  %167 = vrot.lane.b32.xlu1 %v298_v39, %s332_s1  ;;  %159 = vrot.lane.b32.xlu0 %v298_v39, %s333_s2 }
 0x202   :  { %v310_v43 = vpop.f32.mrf.mxu0 }
 0x203   :  { %151 = vst.msk [vmem:[%s510_s5] sm:$0xf] %vm150_vm2, %v296_v41  ;;  %v141_v44 = vmul.f32 0.35355338, %v137_v42  ;;  %v299_v45 = vpack.c.bf16 %v137_v42, %v137_v42 }
 0x205   :  { %v297_v46 = vpack.c.bf16 %v141_v44, %v141_v44  ;;  %184 = vrot.lane.b32.xlu0 %v298_v39, %s334_s4  ;;  %161 = vrot.lane.b32.xlu1 %v299_v45, %s333_s2 }
 0x207   :  { %152 = vst.msk [vmem:[%s510_s5 + $0x4] sm:$0xf] %vm150_vm2, %v297_v46 }
 0x209   :  { %193 = vrot.lane.b32.xlu0 %v298_v39, %s335_s17  ;;  %169 = vrot.lane.b32.xlu1 %v299_v45, %s332_s1 }
 0x20d   :  { %211 = vrot.lane.b32.xlu0 %v298_v39, %s336_s18  ;;  %186 = vrot.lane.b32.xlu1 %v299_v45, %s334_s4 }
 0x211   :  { %220 = vrot.lane.b32.xlu0 %v298_v39, %s337_s19  ;;  %195 = vrot.lane.b32.xlu1 %v299_v45, %s335_s17 }
 0x215   :  { %238 = vrot.lane.b32.xlu0 %v298_v39, %s338_s20  ;;  %213 = vrot.lane.b32.xlu1 %v299_v45, %s336_s18 }
 0x219   :  { %175 = vrot.lane.b32.xlu0 %v296_v41, %s339_s21  ;;  %222 = vrot.lane.b32.xlu1 %v299_v45, %s337_s19 }
 0x21d   :  { %202 = vrot.lane.b32.xlu0 %v296_v41, %s340_s22  ;;  %240 = vrot.lane.b32.xlu1 %v299_v45, %s338_s20 }
 0x221   :  { %229 = vrot.lane.b32.xlu0 %v296_v41, %s341_s23  ;;  %177 = vrot.lane.b32.xlu1 %v297_v46, %s339_s21 }
 0x225   :  { %247 = vrot.lane.b32.xlu0 %v298_v39, %s342_s24  ;;  %204 = vrot.lane.b32.xlu1 %v297_v46, %s340_s22 }
 0x229   :  { %231 = vrot.lane.b32.xlu1 %v297_v46, %s341_s23 }
 0x22d   :  { %249 = vrot.lane.b32.xlu1 %v299_v45, %s342_s24 }
 0x273   :  { %v168_v47 = vpop.permute.xlu1 %167  ;;  %v160_v48 = vpop.permute.xlu0 %159 }
 0x274   :  { %173 = vst.msk [vmem:[%s511_s7] sm:$0xf] %vm150_vm2, %v168_v47  ;;  %165 = vst.msk [vmem:[%s512_s6] sm:$0xf] %vm150_vm2, %v160_v48 }
 0x277   :  { %v185_v49 = vpop.permute.xlu0 %184  ;;  %v162_v50 = vpop.permute.xlu1 %161 }
 0x278   :  { %280 = vst.msk [vmem:[%s512_s6 + $0x8] sm:$0xf] %vm150_vm2, %v185_v49  ;;  %166 = vst.msk [vmem:[%s512_s6 + $0x4] sm:$0xf] %vm150_vm2, %v162_v50 }
 0x27b   :  { %v194_v51 = vpop.permute.xlu0 %193  ;;  %v170_v52 = vpop.permute.xlu1 %169 }
 0x27c   :  { %282 = vst.msk [vmem:[%s511_s7 + $0x8] sm:$0xf] %vm150_vm2, %v194_v51  ;;  %174 = vst.msk [vmem:[%s511_s7 + $0x4] sm:$0xf] %vm150_vm2, %v170_v52 }
 0x27f   :  { %v212_v53 = vpop.permute.xlu0 %211  ;;  %v187_v54 = vpop.permute.xlu1 %186 }
 0x280   :  { %286 = vst.msk [vmem:[%s512_s6 + $0x10] sm:$0xf] %vm150_vm2, %v212_v53  ;;  %281 = vst.msk [vmem:[%s512_s6 + $0xc] sm:$0xf] %vm150_vm2, %v187_v54 }
 0x283   :  { %v221_v55 = vpop.permute.xlu0 %220  ;;  %v196_v56 = vpop.permute.xlu1 %195 }
 0x284   :  { %288 = vst.msk [vmem:[%s511_s7 + $0x10] sm:$0xf] %vm150_vm2, %v221_v55  ;;  %283 = vst.msk [vmem:[%s511_s7 + $0xc] sm:$0xf] %vm150_vm2, %v196_v56 }
 0x287   :  { %v239_v57 = vpop.permute.xlu0 %238  ;;  %v214_v58 = vpop.permute.xlu1 %213 }
 0x288   :  { %292 = vst.msk [vmem:[%s512_s6 + $0x18] sm:$0xf] %vm150_vm2, %v239_v57  ;;  %287 = vst.msk [vmem:[%s512_s6 + $0x14] sm:$0xf] %vm150_vm2, %v214_v58 }
 0x28b   :  { %v176_v59 = vpop.permute.xlu0 %175  ;;  %v223_v60 = vpop.permute.xlu1 %222 }
 0x28c   :  { %278 = vst.msk [vmem:[%s510_s5 + $0x8] sm:$0xf] %vm150_vm2, %v176_v59  ;;  %289 = vst.msk [vmem:[%s511_s7 + $0x14] sm:$0xf] %vm150_vm2, %v223_v60 }
 0x28f   :  { %v203_v61 = vpop.permute.xlu0 %202  ;;  %v241_v62 = vpop.permute.xlu1 %240 }
 0x290   :  { %284 = vst.msk [vmem:[%s510_s5 + $0x10] sm:$0xf] %vm150_vm2, %v203_v61  ;;  %293 = vst.msk [vmem:[%s512_s6 + $0x1c] sm:$0xf] %vm150_vm2, %v241_v62 }
 0x293   :  { %v230_v63 = vpop.permute.xlu0 %229  ;;  %v178_v0 = vpop.permute.xlu1 %177 }
 0x294   :  { %290 = vst.msk [vmem:[%s510_s5 + $0x18] sm:$0xf] %vm150_vm2, %v230_v63  ;;  %279 = vst.msk [vmem:[%s510_s5 + $0xc] sm:$0xf] %vm150_vm2, %v178_v0 }
 0x297   :  { %v248_v1 = vpop.permute.xlu0 %247  ;;  %v205_v2 = vpop.permute.xlu1 %204 }
 0x298   :  { %294 = vst.msk [vmem:[%s511_s7 + $0x18] sm:$0xf] %vm150_vm2, %v248_v1  ;;  %285 = vst.msk [vmem:[%s510_s5 + $0x14] sm:$0xf] %vm150_vm2, %v205_v2 }
 0x29b   :  { %v232_v3 = vpop.permute.xlu1 %231 }
 0x29c   :  { %291 = vst.msk [vmem:[%s510_s5 + $0x1c] sm:$0xf] %vm150_vm2, %v232_v3 }
 0x29f   :  { %v250_v4 = vpop.permute.xlu1 %249 }
 0x2a0   :  { %295 = vst.msk [vmem:[%s511_s7 + $0x1c] sm:$0xf] %vm150_vm2, %v250_v4 }

// kernel: encoder_forward.18
= control target key start
LH: loop header
LB: loop body
LE: loop exit
PB: predicated region body
PF: predicated region fallthrough
CT: control target
= control target key end

     0   :  { %s1786_s27 = smov 0   ;;  %s1788_s28 = smov 0   ;;  %s2028_s0 = inlined_call_operand.vmem [shape: f32[2,8,32], index: 0, kind: input, shape index: {}]   ;;  %s2029_s1 = inlined_call_operand.vmem [shape: bf16[4,2,8,8], index: 1, kind: input, shape index: {}]   ;;  %s2030_s2 = inlined_call_operand.vmem [shape: bf16[4,2,8,8], index: 2, kind: input, shape index: {}]   ;;  %s2031_s3 = inlined_call_operand.vmem [shape: bf16[4,2,8,8], index: 3, kind: input, shape index: {}]   ;;  %s2032_s4 = inlined_call_operand.vmem [shape: f32[2,1,8], index: 4, kind: input, shape index: {}]   ;;  %s2033_s5 = inlined_call_operand.vmem [shape: bf16[1,8,128], index: 5, kind: input, shape index: {}]   ;;  %s2034_s6 = inlined_call_operand.vmem [shape: bf16[32,32], index: 6, kind: input, shape index: {}]   ;;  %s2035_s7 = inlined_call_operand.vmem [shape: f32[1,32], index: 7, kind: input, shape index: {}]   ;;  %s2036_s8 = inlined_call_operand.vmem [shape: f32[2,8,32], index: 8, kind: output, shape index: {}]  }
   0x1   :  { %s1790_s29 = smov 0   ;;  %s1792_s30 = smov 0  }
   0x2   :  { %s1794_s9 = smov 0  }
   0x3 LB: > { %s30_s10 = sadd.s32 1, %s1728_s30  ;;  %p74_p1 = scmp.ne.s32.totalorder %s1720_s28, %s1716_s27  ;;  %s1732_s9 = sphi %s1794_s9, %s18_s9   ;;  %s1728_s30 = sphi %s1792_s30, %s2041_s30   ;;  %s1724_s29 = sphi %s1790_s29, %s2040_s29   ;;  %s1720_s28 = sphi %s1788_s28, %s2039_s28   ;;  %s1716_s27 = sphi %s1786_s27, %s2038_s27  }
   0x4   : > { %p32_p0 = scmp.ge.s32.totalorder %s30_s10, 2  ;;  %p75_p2 = scmp.eq.s32.totalorder %s1732_s9, 0 }
   0x5   : > { %s67_s13 = sadd.s32 1, %s1720_s28  ;;  %p1482_p5 = scmp.ge.s32.totalorder %s1732_s9, 2 }
   0x6   : > { %s2043_s10 = smov (%p32_p0, %s30_s10), 0  ;;  %p1817_p3 = por %p75_p2, %p74_p1 }
   0x7   : > { %s62_s12 = ssub.s32 %s1728_s30, %s2043_s10  ;;  %287 = sbr.rel (%p1482_p5) target bundleno = 30 (0x1e), region = 28 }
   0x8   : > { %p65_p4 = scmp.eq.s32.totalorder %s62_s12, 0 }
   0xa   : > { %s1825_s14 = scalar_select %p65_p4, %s1720_s28, %s67_s13  }
   0xc   : > { %300 = sbr.rel (!%p1817_p3) target bundleno = 18 (0x12), region = 36  ;;  %s302_s15 = sand.u32 (%p1817_p3), 1, %s1720_s28  }
   0xd   : > { %s1484_s16 = sshll.u32 (%p1817_p3), %s1728_s30, 2  ;;  %s1483_s17 = sshll.u32 (%p1817_p3), %s302_s15, 4 }
   0xe   : > { %s307_s20 = scalar_lea.vmem (%p1817_p3), %s2029_s1, %s1484_s16  ;;  %s304_s21 = scalar_lea.vmem (%p1817_p3), [#allocation2], %s1483_s17 }
   0xf   : > { %v324_v0 = vld [vmem:[%s307_s20] sm:$0xf] (%p1817_p3)  ;;  %v326_v1 = vld [vmem:[%s307_s20 + $0x8] sm:$0xf] (%p1817_p3)  ;;  %v328_v2 = vld [vmem:[%s307_s20 + $0x10] sm:$0xf] (%p1817_p3) }
  0x10   : > { %325 = vst [vmem:[%s304_s21] sm:$0xf] (%p1817_p3), %v324_v0  ;;  %327 = vst [vmem:[%s304_s21 + $0x4] sm:$0xf] (%p1817_p3), %v326_v1  ;;  %v330_v3 = vld [vmem:[%s307_s20 + $0x18] sm:$0xf] (%p1817_p3) }
  0x11   : > { %329 = vst [vmem:[%s304_s21 + $0x8] sm:$0xf] %v328_v2  ;;  %331 = vst [vmem:[%s304_s21 + $0xc] sm:$0xf] %v330_v3 }
  0x12 PF: > { %363 = sbr.rel (!%p1817_p3) target bundleno = 24 (0x18), region = 77  ;;  %s365_s22 = sand.u32 (%p1817_p3), 1, %s1720_s28  }
  0x13   : > { %s1486_s23 = sshll.u32 (%p1817_p3), %s1728_s30, 2  ;;  %s1485_s24 = sshll.u32 (%p1817_p3), %s365_s22, 4 }
  0x14   : > { %s369_s12 = scalar_lea.vmem (%p1817_p3), %s2030_s2, %s1486_s23  ;;  %s367_s13 = scalar_lea.vmem (%p1817_p3), [#allocation3], %s1485_s24 }
  0x15   : > { %v386_v4 = vld [vmem:[%s369_s12] sm:$0xf] (%p1817_p3)  ;;  %v388_v5 = vld [vmem:[%s369_s12 + $0x8] sm:$0xf] (%p1817_p3)  ;;  %v390_v6 = vld [vmem:[%s369_s12 + $0x10] sm:$0xf] (%p1817_p3) }
  0x16   : > { %387 = vst [vmem:[%s367_s13] sm:$0xf] (%p1817_p3), %v386_v4  ;;  %389 = vst [vmem:[%s367_s13 + $0x4] sm:$0xf] (%p1817_p3), %v388_v5  ;;  %v392_v7 = vld [vmem:[%s369_s12 + $0x18] sm:$0xf] (%p1817_p3) }
  0x17   : > { %391 = vst [vmem:[%s367_s13 + $0x8] sm:$0xf] %v390_v6  ;;  %393 = vst [vmem:[%s367_s13 + $0xc] sm:$0xf] %v392_v7 }
  0x18 PF: > { %425 = sbr.rel (!%p1817_p3) target bundleno = 30 (0x1e), region = 118  ;;  %s427_s15 = sand.u32 (%p1817_p3), 1, %s1720_s28  }
  0x19   : > { %s1488_s16 = sshll.u32 (%p1817_p3), %s1728_s30, 2  ;;  %s1487_s17 = sshll.u32 (%p1817_p3), %s427_s15, 4 }
  0x1a   : > { %s431_s20 = scalar_lea.vmem (%p1817_p3), %s2031_s3, %s1488_s16  ;;  %s429_s21 = scalar_lea.vmem (%p1817_p3), [#allocation4], %s1487_s17 }
  0x1b   : > { %v448_v8 = vld [vmem:[%s431_s20] sm:$0xf] (%p1817_p3)  ;;  %v450_v9 = vld [vmem:[%s431_s20 + $0x8] sm:$0xf] (%p1817_p3)  ;;  %v452_v10 = vld [vmem:[%s431_s20 + $0x10] sm:$0xf] (%p1817_p3) }
  0x1c   : > { %449 = vst [vmem:[%s429_s21] sm:$0xf] (%p1817_p3), %v448_v8  ;;  %451 = vst [vmem:[%s429_s21 + $0x4] sm:$0xf] (%p1817_p3), %v450_v9  ;;  %v454_v11 = vld [vmem:[%s431_s20 + $0x18] sm:$0xf] (%p1817_p3) }
  0x1d   : > { %453 = vst [vmem:[%s429_s21 + $0x8] sm:$0xf] %v452_v10  ;;  %455 = vst [vmem:[%s429_s21 + $0xc] sm:$0xf] %v454_v11 }
  0x1e PF: > { %p1489_p6 = scmp.ge.s32.totalorder %s1732_s9, 1  ;;  %p492_p7 = scmp.lt.s32.totalorder %s1732_s9, 3 }
  0x20   : > { %p493_p8 = pnand %p1489_p6, %p492_p7 }
  0x21   : > { %s499_s23 = sand.u32 (!%p493_p8), 1, %s1716_s27   ;;  %s1736_s26 = smov (!%p493_p8), 256  }
  0x22   : > { %496 = sbr.rel (%p493_p8) target bundleno = 2737 (0xab1), region = 163  ;;  %s1859_s24 = sshll.u32 (!%p493_p8), %s499_s23, 4 }
  0x23   : > { %s1863_s25 = scalar_lea.vmem (!%p493_p8), [#allocation2], %s1859_s24  ;;  %s1867_s27 = scalar_lea.vmem (!%p493_p8), [#allocation3], %s1859_s24 }
  0x24   : > { %p570_p9 = scmp.lt.s32.totalorder (!%p493_p8), %s1724_s29, 1  ;;  %s1907_s18 = scalar_lea.vmem (!%p493_p8), [#allocation4], %s1859_s24 }
  0x25   : > { %s1738_s22 = smov (!%p493_p8), 16   ;;  %s1739_s23 = smov (!%p493_p8), 8  }
  0x26   : > { %s1740_s12 = smov (!%p493_p8), 24  }
  0x27   : > { %v596_v12 = vld [vmem:[%s2033_s5] sm:$0xf]  ;;  %vm601_vm0 = vcmask 1043456   ;;  %v1734_v13 = vmov 0.0   ;;  %vm1735_vm1 = vmmov 0   ;;  %vm597_vm2 = vcmask 64512  }
  0x28   : > { %1549 = vmatprep.subr.bf16.mxu0 %v1734_v13  ;;  %v603_v14 = vsel %vm601_vm0, %v596_v12, 0  ;;  %1551 = vmatprep.mubr.msk.bf16.mxu0 %vm1735_vm1, %v1734_v13  ;;  %v594_v15 = vld [vmem:[%s1863_s25] sm:$0xf]  ;;  %s2045_s29 = smov (!%p570_p9, %s1724_s29), 1  ;;  %v692_v26 = vlaneseq  ;;  %v1737_v30 = vmov 0   ;;  %vm1248_vm5 = vcmask 130048  }
  0x29   : > { %1550 = vmatpush3.bf16.msra.mxu0 %v603_v14  ;;  %1555 = vmatprep.subr.bf16.mxu1 %v1734_v13  ;;  %v595_v16 = vld [vmem:[%s1867_s27] sm:$0xf]  ;;  %s579_s15 = scalar_lea.vmem %s2032_s4, %s2045_s29  ;;  %v1498_v39 = vld [vmem:[%s1863_s25 + $0x4] sm:$0xf]  ;;  %v1504_v8 = vld [vmem:[%s1863_s25 + $0x8] sm:$0xf] }
  0x2a   : > { %1557 = vmatprep.mubr.msk.bf16.mxu1 %vm1735_vm1, %v1734_v13  ;;  %1561 = vmatprep.subr.bf16.mxu0 %v1734_v13  ;;  %v649_v17 = vsel %vm597_vm2, %v595_v16, 0  ;;  %v592_v27 = vld [vmem:[%s579_s15] sm:$0x1]  ;;  %v693_v28 = vshrl.u32 %v692_v26, 7  ;;  %v1499_v54 = vld [vmem:[%s1867_s27 + $0x4] sm:$0xf] }
  0x2b   : > { %1556 = vmatpush3.bf16.xpose.msra.mxu1 %v649_v17  ;;  %vm593_vm3 = vcmp.eq.f32.partialorder %v592_v27, 0.0  ;;  %v762_v37 = vld [vmem:[%s2033_s5] sm:$0xf]  ;;  %v813_v57 = vsel %vm597_vm2, %v1499_v54, 0  ;;  %vm1250_vm6 = vcmask 195584   ;;  %vm1269_vm7 = vcmask 261120  }
  0x2c   : > { %1552 = vmatmul.mubr.msk.bf16.vlgmr.msra.gmra.mxu0 %vm597_vm2, %v594_v15  ;;  %1567 = vmatprep.subr.bf16.mxu1 %v1734_v13  ;;  %v694_v29 = vsub.s32 0, %v693_v28  ;;  %v691_v31 = vsel %vm593_vm3, 1, %v1737_v30  ;;  %v767_v38 = vsel %vm601_vm0, %v762_v37, 0  ;;  %v711_v45 = vld [vmem:[%s1907_s18] sm:$0xf]  ;;  %s1493_s13 = sshll.u32 %s2045_s29, 3 }
  0x2d   : > { %1563 = vmatprep.mubr.msk.bf16.mxu0 %vm1735_vm1, %v1734_v13  ;;  %v716_v46 = vsel %vm601_vm0, %v711_v45, 0  ;;  %v921_v6 = vld [vmem:[%s2033_s5] sm:$0xf]  ;;  %s576_s17 = scalar_lea.vmem %s2028_s0, %s1493_s13  ;;  %s590_s11 = scalar_lea.vmem %s2036_s8, %s1493_s13 }
  0x2e   : > { %v1890_v32 = vrot.slane %v691_v31, %v694_v29  ;;  %1562 = vmatpush3.bf16.msra.mxu0 %v716_v46  ;;  %v926_v7 = vsel %vm601_vm0, %v921_v6, 0 }
  0x2f   : > { %1573 = vmatprep.subr.bf16.mxu0 %v1734_v13 }
  0x30   : > { %vm696_vm4 = vcmp.eq.s32.totalorder %v1890_v32, 1 }
  0x32   : > { %1558 = vmatmul.mubr.msk.bf16.vlgmr.msra.gmra.mxu1 %vm597_vm2, %v594_v15  ;;  %v1502_v15 = vld [vmem:[%s1907_s18 + $0x4] sm:$0xf] }
  0x33   : > { %1569 = vmatprep.mubr.msk.bf16.mxu1 %vm1735_vm1, %v1734_v13  ;;  %1568 = vmatpush3.bf16.msra.mxu1 %v767_v38  ;;  %v875_v16 = vsel %vm601_vm0, %v1502_v15, 0 }
  0x34   : > { %1579 = vmatprep.subr.bf16.mxu1 %v1734_v13 }
  0x3a   : > { %1570 = vmatmul.mubr.msk.bf16.vlgmr.msra.gmra.mxu1 %vm597_vm2, %v1498_v39 }
  0x3b   : > { %1581 = vmatprep.mubr.msk.bf16.mxu1 %vm1735_vm1, %v1734_v13  ;;  %1580 = vmatpush3.bf16.msra.mxu1 %v875_v16 }
  0x3c   : > { %1591 = vmatprep.subr.bf16.mxu1 %v1734_v13 }
  0xec   : > { %v639_v18 = vpop.f32.mrf.mxu0 }
  0xed   : > { %646 = vrot.lane.b32.xlu0 %v639_v18, %s1736_s26 }
  0xee   : > { %v1553_v19 = vpop.f32.mrf.mxu0 }
  0xf0   : > { %v642_v20 = vpop.f32.mrf.mxu0 }
  0xf2   : > { %v1554_v21 = vpop.f32.mrf.mxu0  ;;  %v685_v22 = vpop.f32.mrf.mxu1 }
  0xf4   : > { %v1559_v23 = vpop.f32.mrf.mxu1 }
  0xf6   : > { %v688_v24 = vpop.f32.mrf.mxu1 }
  0xf7   : > { %v1505_v24 = vld [vmem:[%s1867_s27 + $0x8] sm:$0xf] }
  0xf8   : > { %v1560_v25 = vpop.f32.mrf.mxu1  ;;  %v972_v27 = vsel %vm597_vm2, %v1505_v24, 0  ;;  %v1676_v24 = vld [vmem:[%s2034_s6 + $0x8] sm:$0xff]  }
  0xfa   : > { %v803_v47 = vpop.f32.mrf.mxu1 }
  0xfc   : > { %v1571_v48 = vpop.f32.mrf.mxu1 }
  0xfe   : > { %v806_v49 = vpop.f32.mrf.mxu1 }
  0xff   : > { %v1508_v49 = vld [vmem:[%s1907_s18 + $0x8] sm:$0xf] }
 0x100   : > { %v1572_v50 = vpop.f32.mrf.mxu1 }
 0x101   : > { %v1034_v50 = vsel %vm601_vm0, %v1508_v49, 0 }
 0x15f   : > { %v647_v33 = vpop.permute.xlu0 %646 }
 0x160   : > { %v686_v34 = vadd.f32 %v685_v22, %v647_v33 }
 0x162   : > { %v697_v35 = vsel %vm696_vm4, -3.4028235e+38, %v686_v34 }
 0x163   : > { %v698_v36 = vsel %vm597_vm2, %v697_v35, -inf }
 0x164   : > { %699 = vmax.xlane.f32.xlu0 %v698_v36 }
 0x1ed   : > { %v700_v40 = vpop.xlane.xlu0 %699 }
 0x1ee   : > { %v701_v41 = vsub.f32 %v697_v35, %v700_v40 }
 0x1f0   : > { %v702_v42 = vmul.f32 1.442695, %v701_v41  ;;  %v1080_v41 = vld [vmem:[%s2033_s5] sm:$0xf] }
 0x1f2   : > { %1678 = vpow2.f32 %v702_v42  ;;  %v1085_v42 = vsel %vm601_vm0, %v1080_v41, 0 }
 0x1ff   : > { %v1679_v43 = vpop.eup %1678 }
 0x200   : > { %v704_v44 = vsel %vm597_vm2, %v1679_v43, 0.0 }
 0x201   : > { %705 = vadd.xlane.f32.xlu1 %v704_v44 }
 0x212   : > { %810 = vrot.lane.b32.xlu1 %v803_v47, %s1736_s26 }
 0x28a   : > { %v706_v51 = vpop.xlane.xlu1 %705 }
 0x28b   : > { %1680 = vrcp.f32 %v706_v51 }
 0x28e   : > { %v811_v62 = vpop.permute.xlu1 %810 }
 0x298   : > { %v1681_v52 = vpop.eup %1680 }
 0x299   : > { %v708_v53 = vmul.f32 %v1681_v52, %v1679_v43  ;;  %v1510_v43 = vld [vmem:[%s1863_s25 + $0xc] sm:$0xf] }
 0x29b   : > { %v709_v55 = vsel %vm696_vm4, 0.0, %v708_v53 }
 0x29c   : > { %v710_v56 = vpack.c.bf16 %v709_v55, %v709_v55 }
 0x29e   : > { %1564 = vmatmul.mubr.msk.bf16.vlgmr.msra.gmra.mxu0 %vm597_vm2, %v710_v56 }
 0x29f   : > { %1574 = vmatpush3.bf16.xpose.msra.mxu0 %v813_v57  ;;  %1575 = vmatprep.mubr.msk.bf16.mxu0 %vm1735_vm1, %v1734_v13 }
 0x2a0   : > { %1585 = vmatprep.subr.bf16.mxu0 %v1734_v13 }
 0x2a6   : > { %1576 = vmatmul.mubr.msk.bf16.vlgmr.msra.gmra.mxu0 %vm597_vm2, %v1498_v39 }
 0x2a7   : > { %1587 = vmatprep.mubr.msk.bf16.mxu0 %vm1735_vm1, %v1734_v13  ;;  %1586 = vmatpush3.bf16.msra.mxu0 %v926_v7 }
 0x2a8   : > { %1597 = vmatprep.subr.bf16.mxu0 %v1734_v13 }
 0x2ae   : > { %1588 = vmatmul.mubr.msk.bf16.vlgmr.msra.gmra.mxu0 %vm597_vm2, %v1504_v8 }
 0x2af   : > { %1599 = vmatprep.mubr.msk.bf16.mxu0 %vm1735_vm1, %v1734_v13  ;;  %1598 = vmatpush3.bf16.msra.mxu0 %v1034_v50 }
 0x2b0   : > { %1609 = vmatprep.subr.bf16.mxu0 %v1734_v13 }
 0x35e   : > { %v1924_v58 = vpop.f32.mrf.mxu0 }
 0x360   : > { %v1565_v59 = vpop.f32.mrf.mxu0 }
 0x361   : > { %v1511_v59 = vld [vmem:[%s1867_s27 + $0xc] sm:$0xf] }
 0x362   : > { %v755_v60 = vpop.f32.mrf.mxu0 }
 0x364   : > { %v1566_v61 = vpop.f32.mrf.mxu0 }
 0x366   : > { %v849_v63 = vpop.f32.mrf.mxu0 }
 0x367   : > { %v850_v0 = vadd.f32 %v849_v63, %v811_v62  ;;  %v1131_v62 = vsel %vm597_vm2, %v1511_v59, 0 }
 0x368   : > { %v1577_v1 = vpop.f32.mrf.mxu0 }
 0x369   : > { %v855_v2 = vsel %vm696_vm4, -3.4028235e+38, %v850_v0 }
 0x36a   : > { %v852_v3 = vpop.f32.mrf.mxu0  ;;  %v856_v4 = vsel %vm597_vm2, %v855_v2, -inf }
 0x36b   : > { %857 = vmax.xlane.f32.xlu1 %v856_v4 }
 0x36c   : > { %v1578_v5 = vpop.f32.mrf.mxu0 }
 0x36e   : > { %v962_v17 = vpop.f32.mrf.mxu0 }
 0x370   : > { %v1589_v18 = vpop.f32.mrf.mxu0 }
 0x372   : > { %v965_v19 = vpop.f32.mrf.mxu0 }
 0x374   : > { %v1590_v20 = vpop.f32.mrf.mxu0 }
 0x3f4   : > { %v858_v9 = vpop.xlane.xlu1 %857 }
 0x3f5   : > { %v859_v10 = vsub.f32 %v855_v2, %v858_v9 }
 0x3f7   : > { %v860_v11 = vmul.f32 1.442695, %v859_v10 }
 0x3f9   : > { %1682 = vpow2.f32 %v860_v11 }
 0x406   : > { %v1683_v12 = vpop.eup %1682 }
 0x407   : > { %v862_v14 = vsel %vm597_vm2, %v1683_v12, 0.0 }
 0x408   : > { %863 = vadd.xlane.f32.xlu0 %v862_v14 }
 0x41e   : > { %969 = vrot.lane.b32.xlu0 %v962_v17, %s1736_s26  ;;  %v1514_v17 = vld [vmem:[%s1907_s18 + $0xc] sm:$0xf] }
 0x41f   : > { %v1193_v18 = vsel %vm601_vm0, %v1514_v17, 0 }
 0x491   : > { %v864_v21 = vpop.xlane.xlu0 %863 }
 0x492   : > { %1684 = vrcp.f32 %v864_v21 }
 0x495   : > { %v970_v33 = vpop.permute.xlu0 %969 }
 0x49f   : > { %v1685_v22 = vpop.eup %1684 }
 0x4a0   : > { %v866_v23 = vmul.f32 %v1685_v22, %v1683_v12 }
 0x4a2   : > { %v867_v25 = vsel %vm696_vm4, 0.0, %v866_v23 }
 0x4a3   : > { %v868_v26 = vpack.c.bf16 %v867_v25, %v867_v25  ;;  %v1677_v25 = vld [vmem:[%s2034_s6] sm:$0xff]  }
 0x4a5   : > { %1582 = vmatmul.mubr.msk.bf16.vlgmr.msra.gmra.mxu1 %vm597_vm2, %v868_v26 }
 0x4a6   : > { %1592 = vmatpush3.bf16.xpose.msra.mxu1 %v972_v27  ;;  %1593 = vmatprep.mubr.msk.bf16.mxu1 %vm1735_vm1, %v1734_v13 }
 0x4a7   : > { %1603 = vmatprep.subr.bf16.mxu1 %v1734_v13 }
 0x4ad   : > { %1594 = vmatmul.mubr.msk.bf16.vlgmr.msra.gmra.mxu1 %vm597_vm2, %v1504_v8 }
 0x4ae   : > { %1605 = vmatprep.mubr.msk.bf16.mxu1 %vm1735_vm1, %v1734_v13  ;;  %1604 = vmatpush3.bf16.msra.mxu1 %v1085_v42 }
 0x4af   : > { %1615 = vmatprep.subr.bf16.mxu1 %v1734_v13 }
 0x4b5   : > { %1606 = vmatmul.mubr.msk.bf16.vlgmr.msra.gmra.mxu1 %vm597_vm2, %v1510_v43 }
 0x4b6   : > { %1617 = vmatprep.mubr.msk.bf16.mxu1 %vm1735_vm1, %v1734_v13  ;;  %1616 = vmatpush3.bf16.msra.mxu1 %v1193_v18 }
 0x565   : > { %v1954_v28 = vpop.f32.mrf.mxu1 }
 0x567   : > { %v1583_v29 = vpop.f32.mrf.mxu1 }
 0x569   : > { %v914_v30 = vpop.f32.mrf.mxu1 }
 0x56b   : > { %v1584_v31 = vpop.f32.mrf.mxu1 }
 0x56d   : > { %v1008_v34 = vpop.f32.mrf.mxu1 }
 0x56e   : > { %v1009_v35 = vadd.f32 %v1008_v34, %v970_v33 }
 0x56f   : > { %v1595_v36 = vpop.f32.mrf.mxu1 }
 0x570   : > { %v1014_v37 = vsel %vm696_vm4, -3.4028235e+38, %v1009_v35  ;;  %v1313_v36 = vld [vmem:[%s576_s17] sm:$0xff] }
 0x571   : > { %v1011_v38 = vpop.f32.mrf.mxu1  ;;  %v1015_v39 = vsel %vm597_vm2, %v1014_v37, -inf }
 0x572   : > { %1016 = vmax.xlane.f32.xlu1 %v1015_v39 }
 0x573   : > { %v1596_v40 = vpop.f32.mrf.mxu1 }
 0x575   : > { %v1121_v51 = vpop.f32.mrf.mxu1 }
 0x577   : > { %v1607_v52 = vpop.f32.mrf.mxu1 }
 0x579   : > { %v1124_v53 = vpop.f32.mrf.mxu1 }
 0x57b   : > { %v1608_v54 = vpop.f32.mrf.mxu1 }
 0x583   : > { %1128 = vrot.lane.b32.xlu1 %v1121_v51, %s1736_s26 }
 0x5fb   : > { %v1017_v44 = vpop.xlane.xlu1 %1016 }
 0x5fc   : > { %v1018_v45 = vsub.f32 %v1014_v37, %v1017_v44 }
 0x5fe   : > { %v1019_v46 = vmul.f32 1.442695, %v1018_v45 }
 0x5ff   : > { %v1129_v3 = vpop.permute.xlu1 %1128 }
 0x600   : > { %1686 = vpow2.f32 %v1019_v46 }
 0x60d   : > { %v1687_v47 = vpop.eup %1686 }
 0x60e   : > { %v1021_v48 = vsel %vm597_vm2, %v1687_v47, 0.0 }
 0x60f   : > { %1022 = vadd.xlane.f32.xlu0 %v1021_v48 }
 0x698   : > { %v1023_v55 = vpop.xlane.xlu0 %1022 }
 0x699   : > { %1688 = vrcp.f32 %v1023_v55 }
 0x6a6   : > { %v1689_v56 = vpop.eup %1688 }
 0x6a7   : > { %v1025_v57 = vmul.f32 %v1689_v56, %v1687_v47 }
 0x6a9   : > { %v1026_v60 = vsel %vm696_vm4, 0.0, %v1025_v57 }
 0x6aa   : > { %v1027_v61 = vpack.c.bf16 %v1026_v60, %v1026_v60 }
 0x6ac   : > { %1600 = vmatmul.mubr.msk.bf16.vlgmr.msra.gmra.mxu0 %vm597_vm2, %v1027_v61 }
 0x6ad   : > { %1610 = vmatpush3.bf16.xpose.msra.mxu0 %v1131_v62  ;;  %1611 = vmatprep.mubr.msk.bf16.mxu0 %vm1735_vm1, %v1734_v13 }
 0x6ae   : > { %1621 = vmatprep.subr.bf16.mxu0 %v1734_v13 }
 0x6b4   : > { %1612 = vmatmul.mubr.msk.bf16.vlgmr.msra.gmra.mxu0 %vm597_vm2, %v1510_v43 }
 0x6b5   : > { %1625 = vmatprep.mubr.msk.bf16.mxu0 %vm1735_vm1, %v1734_v13  ;;  %1622 = vmatpush3.bf16.msra.mxu0 %v1676_v24 }
 0x6b6   : > { %1623 = vmatprep.subr.bf16.mxu0 %v1734_v13 }
 0x6b9   : > { %1624 = vmatpush3.bf16.msra.mxu0 %v1677_v25 }
 0x76c   : > { %v1070_v63 = vpop.f32.mrf.mxu0 }
 0x76e   : > { %v1601_v0 = vpop.f32.mrf.mxu0 }
 0x770   : > { %v1073_v1 = vpop.f32.mrf.mxu0 }
 0x772   : > { %v1602_v2 = vpop.f32.mrf.mxu0 }
 0x774   : > { %v1167_v4 = vpop.f32.mrf.mxu0 }
 0x775   : > { %v1168_v5 = vadd.f32 %v1167_v4, %v1129_v3 }
 0x776   : > { %v1613_v6 = vpop.f32.mrf.mxu0 }
 0x777   : > { %v1173_v7 = vsel %vm696_vm4, -3.4028235e+38, %v1168_v5 }
 0x778   : > { %v1170_v8 = vpop.f32.mrf.mxu0  ;;  %v1174_v9 = vsel %vm597_vm2, %v1173_v7, -inf }
 0x779   : > { %1175 = vmax.xlane.f32.xlu1 %v1174_v9 }
 0x77a   : > { %v1614_v10 = vpop.f32.mrf.mxu0 }
 0x78a   : > { %1240 = vrot.lane.b32.xlu1 %v1070_v63, %s1738_s22 }
 0x802   : > { %v1176_v11 = vpop.xlane.xlu1 %1175 }
 0x803   : > { %v1177_v12 = vsub.f32 %v1173_v7, %v1176_v11 }
 0x805   : > { %v1178_v14 = vmul.f32 1.442695, %v1177_v12 }
 0x806   : > { %v1241_v31 = vpop.permute.xlu1 %1240 }
 0x807   : > { %1690 = vpow2.f32 %v1178_v14 }
 0x814   : > { %v1691_v15 = vpop.eup %1690 }
 0x815   : > { %v1180_v16 = vsel %vm597_vm2, %v1691_v15, 0.0 }
 0x816   : > { %1181 = vadd.xlane.f32.xlu0 %v1180_v16 }
 0x82c   : > { %1236 = vrot.lane.b32.xlu0 %v1954_v28, %s1739_s23 }
 0x89f   : > { %v1182_v19 = vpop.xlane.xlu0 %1181 }
 0x8a0   : > { %1692 = vrcp.f32 %v1182_v19 }
 0x8a3   : > { %v1237_v29 = vpop.permute.xlu0 %1236 }
 0x8a4   : > { %v1247_v30 = vsel %vm597_vm2, %v1924_v58, %v1237_v29  ;;  %v1519_v58 = vld [vmem:[%s2035_s7] ss:$0 sm:$0xff] }
 0x8a5   : > { %v1249_v34 = vsel %vm1248_vm5, %v1247_v30, %v1241_v31 }
 0x8ad   : > { %v1693_v20 = vpop.eup %1692 }
 0x8ae   : > { %v1184_v21 = vmul.f32 %v1693_v20, %v1691_v15 }
 0x8b0   : > { %v1185_v22 = vsel %vm696_vm4, 0.0, %v1184_v21 }
 0x8b1   : > { %v1186_v23 = vpack.c.bf16 %v1185_v22, %v1185_v22 }
 0x8b3   : > { %1618 = vmatmul.mubr.msk.bf16.vlgmr.msra.gmra.mxu1 %vm597_vm2, %v1186_v23 }
 0x973   : > { %v1229_v26 = vpop.f32.mrf.mxu1 }
 0x974   : > { %1244 = vrot.lane.b32.xlu0 %v1229_v26, %s1740_s12 }
 0x975   : > { %v1619_v32 = vpop.f32.mrf.mxu1 }
 0x977   : > { %v1232_v27 = vpop.f32.mrf.mxu1 }
 0x979   : > { %v1620_v28 = vpop.f32.mrf.mxu1 }
 0x9e6   : > { %v1245_v33 = vpop.permute.xlu0 %1244 }
 0x9e7   : > { %v1251_v35 = vsel %vm1250_vm6, %v1249_v34, %v1245_v33 }
 0x9e8   : > { %v1252_v13 = vpack.c.bf16 %v1251_v35, %v1251_v35 }
 0x9ea   : > { %1626 = vmatmul.mubr.msk.bf16.vlgmr.msra.gmra.mxu0 %vm1269_vm7, %v1252_v13 }
 0xaaa   : > { %v1307_v37 = vpop.f32.mrf.mxu0 }
 0xaab   : > { %v1314_v38 = vadd.f32 %v1313_v36, %v1307_v37 }
 0xaac   : > { %v1627_v39 = vpop.f32.mrf.mxu0 }
 0xaad   : > { %v1322_v40 = vadd.f32 %v1519_v58, %v1314_v38 }
 0xaae   : > { %v1310_v41 = vpop.f32.mrf.mxu0 }
 0xaaf   : > { %1323 = vst.msk [vmem:[%s590_s11] sm:$0xff] %vm1269_vm7, %v1322_v40 }
 0xab0   : > { %v1628_v42 = vpop.f32.mrf.mxu0 }
 0xab1 PF: > { %s18_s9 = sadd.s32 1, %s1732_s9   ;;  %s2038_s27 = smov %s1720_s28 }
 0xab2   : > { %p15_p10 = scmp.ge.s32.totalorder %s18_s9, 4   ;;  %s2039_s28 = smov %s1825_s14 }
 0xab3   : > { %s2040_s29 = smov %s1728_s30  ;;  %s2041_s30 = smov %s2043_s10 }
 0xab4   :  { %17 = sbr.rel (!%p15_p10) target bundleno = 3 (0x3), region = 244 }

// kernel: encoder_forward.19
= control target key start
LH: loop header
LB: loop body
LE: loop exit
PB: predicated region body
PF: predicated region fallthrough
CT: control target
= control target key end

     0   :  { %s871_s0 = inlined_call_operand.vmem [shape: f32[2,8,32], index: 0, kind: input, shape index: {}]   ;;  %s872_s1 = inlined_call_operand.vmem [shape: f32[1,32], index: 1, kind: input, shape index: {}]   ;;  %s873_s2 = inlined_call_operand.vmem [shape: f32[1,32], index: 2, kind: input, shape index: {}]   ;;  %s874_s3 = inlined_call_operand.vmem [shape: f32[7,32], index: 3, kind: input, shape index: {}]   ;;  %s875_s4 = inlined_call_operand.vmem [shape: f32[1,32], index: 4, kind: input, shape index: {}]   ;;  %s876_s5 = inlined_call_operand.vmem [shape: f32[2], index: 5, kind: input, shape index: {}]   ;;  %s877_s6 = inlined_call_operand.vmem [shape: f32[2], index: 6, kind: input, shape index: {}]   ;;  %s878_s7 = inlined_call_operand.<no memory space> [shape: f32[1], index: 7, kind: input, shape index: {}]   ;;  %s879_s8 = inlined_call_operand.<no memory space> [shape: f32[1], index: 8, kind: input, shape index: {}]   ;;  %s880_s9 = inlined_call_operand.vmem [shape: f32[2,8,32], index: 9, kind: output, shape index: {}]  }
   0x1   :  { %14 = sst [smem:[#allocation2]] %s878_s7 }
   0x2   :  { %15 = sst [smem:[#allocation3]] %s879_s8 }
   0x3   :  { %16 = vsyncpa [#allocation5], 0 }
   0x4   :  { %17 = vsyncpa [#allocation7], 0  ;;  %s770_s13 = smov 0  }
   0x5 LB: > { %s776_s14 = sadd.s32 4294967295, %s710_s13   ;;  %p607_p0 = scmp.ge.s32.totalorder %s710_s13, 1  ;;  %s710_s13 = sphi %s770_s13, %s23_s13  }
   0x6   : > { %p248_p1 = scmp.lt.s32.totalorder %s710_s13, 3  ;;  %s273_s15 = sshll.u32 %s876_s5, 4  ;;  %s274_s15 = int_to_ptr.vmem [resolvable:$true] %s273_s15 }
   0x7   : > { %p881_p3 = scmp.eq.s32.totalorder %s776_s14, 0  ;;  %s284_s19 = sshll.u32 %s877_s6, 4  ;;  %s285_s19 = int_to_ptr.vmem [resolvable:$true] %s284_s19 }
   0x8   : > { %p783_p2 = pnand %p607_p0, %p248_p1  ;;  %s666_s21 = scalar_lea.vmem %s274_s15, 16 }
   0x9   : > { %p667_p6 = scmp.ne.s32.totalorder %s274_s15, %s666_s21  ;;  %p674_p10 = scmp.lt.s32.totalorder %s274_s15, %s274_s15 }
   0xa   : > { %s883_s16 = scalar_select %p783_p2, 1, 0 }
   0xb   : > { %p639_p4 = pneg %p783_p2  ;;  %p675_p11 = scmp.lt.s32.totalorder %s666_s21, %s666_s21 }
   0xd   : > { %p795_p5 = pnand %p881_p3, %p639_p4  ;;  %p676_p12 = por %p675_p11, %p674_p10 }
   0xf   : > { %p668_p7 = pneg %p795_p5 }
  0x11   : > { %p669_p8 = pnand %p668_p7, %p667_p6 }
  0x13   : > { %p670_p9 = pneg %p669_p8 }
  0x15   : > { %p677_p13 = pnand %p676_p12, %p670_p9 }
  0x17   : > { %680 = shalt.err (!%p677_p13)
}
  0x18   : > { %s712_s22 = smov [#allocation4]   ;;  %s681_s23 = scalar_lea.vmem %s285_s19, 16 }
  0x19   : > { %642 = dma.vmem_to_smem (!%p795_p5), %s274_s15, 16, %s712_s22, [#allocation5]  }
  0x1a   : > { %p682_p0 = scmp.ne.s32.totalorder %s285_s19, %s681_s23  ;;  %p689_p3 = scmp.lt.s32.totalorder %s285_s19, %s285_s19 }
  0x1b   : > { %p690_p2 = scmp.lt.s32.totalorder %s681_s23, %s681_s23 }
  0x1c   : > { %p684_p1 = pnand %p682_p0, %p668_p7 }
  0x1d   : > { %p691_p6 = por %p690_p2, %p689_p3 }
  0x1e   : > { %p685_p4 = pneg %p684_p1 }
  0x20   : > { %p692_p8 = pnand %p691_p6, %p685_p4 }
  0x22   : > { %695 = shalt.err (!%p692_p8)
}
  0x23   : > { %s713_s24 = smov [#allocation6]   ;;  %p885_p9 = scmp.ne.s32.totalorder %s883_s16, 0 }
  0x24   : > { %645 = dma.vmem_to_smem (!%p795_p5), %s285_s19, 16, %s713_s24, [#allocation7]  }
  0x25   : > { %310 = sbr.rel (%p885_p9) target bundleno = 429 (0x1ad), region = 56  ;;  %p886_p10 = scmp.eq.s32.totalorder (!%p885_p9), %s776_s14, 0 }
  0x2a   : > { %701 = dma.done.wait (%p886_p10), [#allocation5], 16   ;;  %p887_p11 = pmov %p886_p10 }
  0x2b   : > { %p888_p7 = pmov %p886_p10 }
  0x2c   : > { %703 = vsyncadd (%p887_p11), [#allocation5], 4294967280 }
  0x2d   : > { %705 = dma.done.wait (%p888_p7), [#allocation7], 16   ;;  %p889_p2 = pmov %p888_p7 }
  0x2f   : > { %707 = vsyncadd (%p889_p2), [#allocation7], 4294967280 }
  0x30   : > { %320 = sfence }
  0x31   : > { %p349_p3 = scmp.lt.s32.totalorder %s776_s14, 1  ;;  %vm360_vm0 = vcmask 261120   ;;  %s618_s29 = sld [smem:[#allocation4 + $0x1]]  ;;  %v616_v11 = vld [vmem:[%s872_s1] ss:$0 sm:$0xff]  ;;  %v408_v24 = vlaneseq }
  0x32   : > { %s619_s30 = sld [smem:[#allocation6 + $0x1]]  ;;  %v617_v13 = vld [vmem:[%s873_s2] ss:$0 sm:$0xff]  ;;  %v622_v34 = vld [vmem:[%s874_s3 + $0x1] ss:$0 sm:$0xff] }
  0x33   : > { %s891_s14 = smov (!%p349_p3, %s776_s14), 1  ;;  %s389_s8 = sld [smem:[#allocation4]]  ;;  %v409_v27 = vshrl.u32 %v408_v24, 7  ;;  %v621_v32 = vld [vmem:[%s874_s3] ss:$0 sm:$0xff] }
  0x34   : > { %s614_s25 = sshll.u32 %s891_s14, 3  ;;  %s392_s15 = sld [smem:[#allocation6]]  ;;  %v623_v36 = vld [vmem:[%s874_s3 + $0x2] ss:$0 sm:$0xff]  ;;  %v625_v45 = vld [vmem:[%s874_s3 + $0x4] ss:$0 sm:$0xff] }
  0x35   : > { %s352_s28 = scalar_lea.vmem %s871_s0, %s614_s25  ;;  %v411_v30 = vadd.s32 4294967293, %v409_v27  ;;  %v426_v31 = vadd.s32 4294967294, %v409_v27  ;;  %v441_v35 = vadd.s32 4294967295, %v409_v27  ;;  %v469_v44 = vadd.s32 1, %v409_v27  ;;  %v624_v46 = vld [vmem:[%s874_s3 + $0x3] ss:$0 sm:$0xff]  ;;  %s356_s16 = scalar_lea.vmem %s880_s9, %s614_s25 }
  0x36   : > { %v825_v0 = vld [vmem:[%s352_s28] sm:$0xff]  ;;  %v484_v50 = vadd.s32 2, %v409_v27  ;;  %v499_v56 = vadd.s32 3, %v409_v27  ;;  %s522_s10 = sld [smem:[#allocation2]] }
  0x37   : > { %v361_v1 = vsel %vm360_vm0, %v825_v0, 0.0  ;;  %v396_v15 = vstv %s618_s29  ;;  %vm412_vm1 = vcmp.ge.s32.totalorder %v411_v30, 0  ;;  %vm427_vm2 = vcmp.ge.s32.totalorder %v426_v31, 0  ;;  %v626_v51 = vld [vmem:[%s874_s3 + $0x5] ss:$0 sm:$0xff]  ;;  %s525_s11 = sld [smem:[#allocation3]] }
  0x38   : > { %362 = vadd.xlane.f32.xlu0 %v361_v1  ;;  %v399_v17 = vstv %s619_s30  ;;  %vm442_vm3 = vcmp.ge.s32.totalorder %v441_v35, 0  ;;  %vm471_vm4 = vcmp.lt.s32.totalorder %v469_v44, 8  ;;  %v627_v57 = vld [vmem:[%s874_s3 + $0x6] ss:$0 sm:$0xff]  ;;  %vm486_vm5 = vcmp.lt.s32.totalorder %v484_v50, 8 }
  0x39   : > { %v390_v23 = vstv %s389_s8  ;;  %vm501_vm6 = vcmp.lt.s32.totalorder %v499_v56, 8 }
  0x3a   : > { %v393_v26 = vstv %s392_s15 }
  0xc1   : > { %v363_v2 = vpop.xlane.xlu0 %362 }
  0xc2   : > { %v365_v3 = vmul.f32 0.03125, %v363_v2 }
  0xc4   : > { %v366_v4 = vsub.f32 %v825_v0, %v365_v3 }
  0xc6   : > { %v367_v5 = vmul.f32 %v366_v4, %v366_v4 }
  0xc8   : > { %v368_v6 = vsel %vm360_vm0, %v367_v5, 0.0 }
  0xc9   : > { %369 = vadd.xlane.f32.xlu0 %v368_v6 }
 0x152   : > { %v370_v7 = vpop.xlane.xlu0 %369 }
 0x153   : > { %v371_v8 = vmul.f32 0.03125, %v370_v7 }
 0x155   : > { %v372_v9 = vadd.f32 1e-05, %v371_v8  ;;  %v523_v8 = vstv %s522_s10 }
 0x157   : > { %660 = vrsqrt.f32 %v372_v9 }
 0x164   : > { %v661_v10 = vpop.eup %660 }
 0x165   : > { %v374_v12 = vmul.f32 %v661_v10, %v366_v4  ;;  %v628_v4 = vld [vmem:[%s875_s4] ss:$0 sm:$0xff]  ;;  %v526_v10 = vstv %s525_s11 }
 0x167   : > { %v381_v14 = vmul.f32 %v616_v11, %v374_v12 }
 0x169   : > { %v388_v16 = vadd.f32 %v617_v13, %v381_v14 }
 0x16b   : > { %v397_v18 = vmul.f32 %v396_v15, %v388_v16  ;;  %v391_v25 = vmul.f32 %v390_v23, %v388_v16 }
 0x16d   : > { %v400_v19 = vadd.f32 %v399_v17, %v397_v18  ;;  %v394_v28 = vadd.f32 %v393_v26, %v391_v25 }
 0x16f   : > { %v620_v20 = vmul.f32 -1.442695, %v400_v19 }
 0x171   : > { %662 = vpow2.f32 %v620_v20 }
 0x17e   : > { %v663_v21 = vpop.eup %662 }
 0x17f   : > { %v404_v22 = vadd.f32 1.0, %v663_v21 }
 0x181   : > { %664 = vrcp.f32 %v404_v22 }
 0x18e   : > { %v665_v29 = vpop.eup %664 }
 0x18f   : > { %v407_v33 = vmul.f32 %v665_v29, %v394_v28 }
 0x191   : > { %v410_v37 = vrot.slane %v407_v33, 5  ;;  %v425_v38 = vrot.slane %v407_v33, 6  ;;  %v440_v39 = vrot.slane %v407_v33, 7  ;;  %v468_v43 = vrot.slane %v407_v33, 1 }
 0x192   : > { %v483_v49 = vrot.slane %v407_v33, 2  ;;  %v498_v55 = vrot.slane %v407_v33, 3  ;;  %v463_v59 = vmul.f32 %v624_v46, %v407_v33 }
 0x193   : > { %v420_v40 = vmul.f32 %v621_v32, %v410_v37  ;;  %v435_v41 = vmul.f32 %v622_v34, %v425_v38  ;;  %v450_v42 = vmul.f32 %v623_v36, %v440_v39  ;;  %v478_v54 = vmul.f32 %v625_v45, %v468_v43 }
 0x194   : > { %v493_v60 = vmul.f32 %v626_v51, %v483_v49  ;;  %v508_v63 = vmul.f32 %v627_v57, %v498_v55 }
 0x195   : > { %v423_v47 = vsel %vm412_vm1, %v420_v40, 0.0  ;;  %v438_v48 = vsel %vm427_vm2, %v435_v41, 0.0  ;;  %v453_v53 = vsel %vm442_vm3, %v450_v42, 0.0  ;;  %v481_v62 = vsel %vm471_vm4, %v478_v54, 0.0 }
 0x196   : > { %v439_v52 = vadd.f32 %v438_v48, %v423_v47  ;;  %v496_v2 = vsel %vm486_vm5, %v493_v60, 0.0  ;;  %v511_v5 = vsel %vm501_vm6, %v508_v63, 0.0 }
 0x198   : > { %v454_v58 = vadd.f32 %v453_v53, %v439_v52 }
 0x19a   : > { %v467_v61 = vadd.f32 %v463_v59, %v454_v58 }
 0x19c   : > { %v482_v1 = vadd.f32 %v481_v62, %v467_v61 }
 0x19e   : > { %v497_v3 = vadd.f32 %v496_v2, %v482_v1 }
 0x1a0   : > { %v512_v6 = vadd.f32 %v511_v5, %v497_v3 }
 0x1a2   : > { %v520_v7 = vadd.f32 %v628_v4, %v512_v6 }
 0x1a4   : > { %v521_v9 = vmax.f32 %v520_v7, 0.0 }
 0x1a6   : > { %v524_v11 = vmul.f32 %v523_v8, %v521_v9 }
 0x1a8   : > { %v527_v12 = vadd.f32 %v526_v10, %v524_v11 }
 0x1aa   : > { %v528_v13 = vadd.f32 %v527_v12, %v825_v0 }
 0x1ac   : > { %529 = vst.msk [vmem:[%s356_s16] sm:$0xff] %vm360_vm0, %v528_v13 }
 0x1ad PF: > { %s23_s13 = sadd.s32 1, %s710_s13  }
 0x1ae   : > { %p20_p5 = scmp.ge.s32.totalorder %s23_s13, 4  }
 0x1b0   :  { %22 = sbr.rel (!%p20_p5) target bundleno = 5 (0x5), region = 95 }
 0x1b5   :  { %549 = vsyncpa [#allocation5], 1 }
 0x1b6   :  { %551 = vsyncpa [#allocation5 + $0x1], 1 }
 0x1b7   :  { %552 = vsyncpa [#allocation7], 1 }

// kernel: encoder_forward.20
= control target key start
LH: loop header
LB: loop body
LE: loop exit
PB: predicated region body
PF: predicated region fallthrough
CT: control target
= control target key end

     0   :  { %vm37_vm0 = vcmask 261120   ;;  %v348_v14 = vmov 0.0   ;;  %vm349_vm1 = vmmov 0   ;;  %vm191_vm2 = vcmask 523264   ;;  %s469_s0 = inlined_call_operand.vmem [shape: f32[16,32], index: 0, kind: input, shape index: {}]   ;;  %s470_s3 = inlined_call_operand.vmem [shape: bf16[32,64], index: 3, kind: input, shape index: {}]   ;;  %s471_s5 = inlined_call_operand.vmem [shape: bf16[64,32], index: 5, kind: input, shape index: {}]   ;;  %s472_s1 = inlined_call_operand.vmem [shape: f32[1,32], index: 1, kind: input, shape index: {}]   ;;  %s473_s2 = inlined_call_operand.vmem [shape: f32[1,32], index: 2, kind: input, shape index: {}]   ;;  %s474_s4 = inlined_call_operand.vmem [shape: f32[1,64], index: 4, kind: input, shape index: {}]   ;;  %s475_s6 = inlined_call_operand.vmem [shape: f32[1,32], index: 6, kind: input, shape index: {}]   ;;  %s476_s7 = inlined_call_operand.vmem [shape: f32[1,32], index: 7, kind: input, shape index: {}]   ;;  %s477_s8 = inlined_call_operand.vmem [shape: f32[1,32], index: 8, kind: input, shape index: {}]   ;;  %s478_s9 = inlined_call_operand.vmem [shape: f32[16,32], index: 9, kind: output, shape index: {}]  }
   0x1   :  { %v403_v0 = vld [vmem:[%s469_s0] sm:$0xff]  ;;  %v408_v1 = vld [vmem:[%s469_s0 + $0x8] sm:$0xff]  ;;  %312 = vmatprep.subr.bf16.mxu0 %v348_v14  ;;  %316 = vmatprep.mubr.msk.bf16.mxu0 %vm349_vm1, %v348_v14  ;;  %v336_v17 = vld [vmem:[%s471_s5 + $0x18] sm:$0xff]  }
   0x2   :  { %v38_v2 = vsel %vm37_vm0, %v403_v0, 0.0  ;;  %v41_v3 = vsel %vm37_vm0, %v408_v1, 0.0  ;;  %v334_v15 = vld [vmem:[%s470_s3 + $0x8] sm:$0xff]   ;;  %320 = vmatprep.subr.bf16.mxu1 %v348_v14  ;;  %328 = vmatprep.mubr.msk.bf16.mxu1 %vm349_vm1, %v348_v14  ;;  %v335_v16 = vld [vmem:[%s470_s3] sm:$0xff]   ;;  %v337_v35 = vld [vmem:[%s471_s5 + $0x10] sm:$0xff]  }
   0x3   :  { %39 = vadd.xlane.f32.xlu0 %v38_v2  ;;  %313 = vmatpush3.bf16.msra.mxu0 %v334_v15  ;;  %v290_v26 = vld [vmem:[%s472_s1] ss:$0 sm:$0xff]  ;;  %v338_v36 = vld [vmem:[%s471_s5 + $0x8] sm:$0xff]  }
   0x4   :  { %314 = vmatprep.subr.bf16.mxu0 %v348_v14  ;;  %321 = vmatpush3.bf16.msra.mxu1 %v336_v17  ;;  %v291_v30 = vld [vmem:[%s473_s2] ss:$0 sm:$0xff] }
   0x5   :  { %322 = vmatprep.subr.bf16.mxu1 %v348_v14  ;;  %v339_v37 = vld [vmem:[%s471_s5] sm:$0xff]  }
   0x6   :  { %v292_v38 = vld [vmem:[%s474_s4] ss:$0 sm:$0xff] }
   0x7   :  { %42 = vadd.xlane.f32.xlu0 %v41_v3  ;;  %315 = vmatpush3.bf16.msra.mxu0 %v335_v16  ;;  %v296_v48 = vld [vmem:[%s475_s6] ss:$0 sm:$0xff] }
   0x8   :  { %323 = vmatpush3.bf16.msra.mxu1 %v337_v35  ;;  %v303_v16 = vld [vmem:[%s477_s8] ss:$0 sm:$0xff] }
   0x9   :  { %324 = vmatprep.subr.bf16.mxu1 %v348_v14 }
   0xc   :  { %325 = vmatpush3.bf16.msra.mxu1 %v338_v36 }
   0xd   :  { %326 = vmatprep.subr.bf16.mxu1 %v348_v14  ;;  %v302_v14 = vld [vmem:[%s476_s7] ss:$0 sm:$0xff] }
  0x10   :  { %327 = vmatpush3.bf16.msra.mxu1 %v339_v37 }
  0x8c   :  { %v40_v4 = vpop.xlane.xlu0 %39 }
  0x8d   :  { %v45_v5 = vmul.f32 0.03125, %v40_v4 }
  0x8f   :  { %v47_v6 = vsub.f32 %v403_v0, %v45_v5 }
  0x90   :  { %v43_v7 = vpop.xlane.xlu0 %42 }
  0x91   :  { %v46_v8 = vmul.f32 0.03125, %v43_v7  ;;  %v49_v9 = vmul.f32 %v47_v6, %v47_v6 }
  0x93   :  { %v48_v10 = vsub.f32 %v408_v1, %v46_v8  ;;  %v51_v11 = vsel %vm37_vm0, %v49_v9, 0.0 }
  0x94   :  { %52 = vadd.xlane.f32.xlu1 %v51_v11 }
  0x95   :  { %v50_v12 = vmul.f32 %v48_v10, %v48_v10 }
  0x97   :  { %v54_v13 = vsel %vm37_vm0, %v50_v12, 0.0 }
  0x98   :  { %55 = vadd.xlane.f32.xlu1 %v54_v13 }
 0x11d   :  { %v53_v18 = vpop.xlane.xlu1 %52 }
 0x11e   :  { %v57_v19 = vmul.f32 0.03125, %v53_v18 }
 0x120   :  { %v59_v20 = vadd.f32 1e-05, %v57_v19 }
 0x121   :  { %v56_v21 = vpop.xlane.xlu1 %55 }
 0x122   :  { %340 = vrsqrt.f32 %v59_v20  ;;  %v58_v22 = vmul.f32 0.03125, %v56_v21 }
 0x124   :  { %v60_v23 = vadd.f32 1e-05, %v58_v22 }
 0x126   :  { %342 = vrsqrt.f32 %v60_v23 }
 0x12f   :  { %v341_v24 = vpop.eup %340 }
 0x130   :  { %v63_v25 = vmul.f32 %v341_v24, %v47_v6 }
 0x132   :  { %v71_v29 = vmul.f32 %v290_v26, %v63_v25 }
 0x133   :  { %v343_v27 = vpop.eup %342 }
 0x134   :  { %v64_v28 = vmul.f32 %v343_v27, %v48_v10  ;;  %v79_v32 = vadd.f32 %v291_v30, %v71_v29 }
 0x136   :  { %v72_v31 = vmul.f32 %v290_v26, %v64_v28 }
 0x138   :  { %v80_v33 = vadd.f32 %v291_v30, %v72_v31 }
 0x13a   :  { %v85_v34 = vpack.c.bf16 %v80_v33, %v79_v32 }
 0x13c   :  { %317 = vmatmul.mubr.msk.bf16.vlgmr.msra.gmra.mxu0 %vm37_vm0, %v85_v34 }
 0x1fc   :  { %v142_v39 = vpop.f32.mrf.mxu0 }
 0x1fd   :  { %v143_v41 = vadd.f32 %v292_v38, %v142_v39 }
 0x1fe   :  { %v318_v40 = vpop.f32.mrf.mxu0 }
 0x1ff   :  { %v149_v45 = vmax.f32 %v143_v41, 0.0 }
 0x200   :  { %v145_v42 = vpop.f32.mrf.mxu0 }
 0x201   :  { %v146_v43 = vadd.f32 %v292_v38, %v145_v42 }
 0x202   :  { %v319_v44 = vpop.f32.mrf.mxu0 }
 0x203   :  { %v150_v46 = vmax.f32 %v146_v43, 0.0 }
 0x205   :  { %v159_v47 = vpack.c.bf16 %v150_v46, %v149_v45 }
 0x207   :  { %329 = vmatmul.mubr.msk.bf16.vlgmr.msra.gmra.mxu1 %vm191_vm2, %v159_v47 }
 0x2c7   :  { %v229_v49 = vpop.f32.mrf.mxu1 }
 0x2c8   :  { %v230_v50 = vadd.f32 %v296_v48, %v229_v49 }
 0x2c9   :  { %v330_v51 = vpop.f32.mrf.mxu1 }
 0x2ca   :  { %v236_v52 = vmul.f32 0.5, %v230_v50 }
 0x2cb   :  { %v232_v53 = vpop.f32.mrf.mxu1 }
 0x2cc   :  { %v233_v54 = vadd.f32 %v296_v48, %v232_v53  ;;  %v238_v55 = vadd.f32 %v236_v52, %v403_v0 }
 0x2cd   :  { %v331_v56 = vpop.f32.mrf.mxu1 }
 0x2ce   :  { %v237_v57 = vmul.f32 0.5, %v233_v54  ;;  %v242_v58 = vsel %vm37_vm0, %v238_v55, 0.0 }
 0x2cf   :  { %243 = vadd.xlane.f32.xlu0 %v242_v58 }
 0x2d0   :  { %v239_v59 = vadd.f32 %v237_v57, %v408_v1 }
 0x2d2   :  { %v245_v60 = vsel %vm37_vm0, %v239_v59, 0.0 }
 0x2d3   :  { %246 = vadd.xlane.f32.xlu1 %v245_v60 }
 0x358   :  { %v244_v61 = vpop.xlane.xlu0 %243 }
 0x359   :  { %v248_v62 = vmul.f32 0.03125, %v244_v61 }
 0x35b   :  { %v250_v63 = vsub.f32 %v238_v55, %v248_v62 }
 0x35c   :  { %v247_v2 = vpop.xlane.xlu1 %246 }
 0x35d   :  { %v249_v3 = vmul.f32 0.03125, %v247_v2  ;;  %v252_v4 = vmul.f32 %v250_v63, %v250_v63 }
 0x35f   :  { %v251_v5 = vsub.f32 %v239_v59, %v249_v3  ;;  %v254_v6 = vsel %vm37_vm0, %v252_v4, 0.0 }
 0x360   :  { %255 = vadd.xlane.f32.xlu0 %v254_v6 }
 0x361   :  { %v253_v0 = vmul.f32 %v251_v5, %v251_v5 }
 0x363   :  { %v257_v7 = vsel %vm37_vm0, %v253_v0, 0.0 }
 0x364   :  { %258 = vadd.xlane.f32.xlu1 %v257_v7 }
 0x3e9   :  { %v256_v8 = vpop.xlane.xlu0 %255 }
 0x3ea   :  { %v260_v9 = vmul.f32 0.03125, %v256_v8 }
 0x3ec   :  { %v262_v1 = vadd.f32 1e-05, %v260_v9 }
 0x3ed   :  { %v259_v10 = vpop.xlane.xlu1 %258 }
 0x3ee   :  { %344 = vrsqrt.f32 %v262_v1  ;;  %v261_v11 = vmul.f32 0.03125, %v259_v10 }
 0x3f0   :  { %v263_v12 = vadd.f32 1e-05, %v261_v11 }
 0x3f2   :  { %346 = vrsqrt.f32 %v263_v12 }
 0x3fb   :  { %v345_v13 = vpop.eup %344 }
 0x3fc   :  { %v266_v15 = vmul.f32 %v345_v13, %v250_v63 }
 0x3fe   :  { %v274_v17 = vmul.f32 %v302_v14, %v266_v15 }
 0x3ff   :  { %v347_v18 = vpop.eup %346 }
 0x400   :  { %v282_v19 = vadd.f32 %v303_v16, %v274_v17  ;;  %v267_v20 = vmul.f32 %v347_v18, %v251_v5 }
 0x402   :  { %284 = vst.msk [vmem:[%s478_s9] sm:$0xff] %vm37_vm0, %v282_v19  ;;  %v275_v21 = vmul.f32 %v302_v14, %v267_v20 }
 0x404   :  { %v283_v22 = vadd.f32 %v303_v16, %v275_v21 }
 0x406   :  { %285 = vst.msk [vmem:[%s478_s9 + $0x8] sm:$0xff] %vm37_vm0, %v283_v22 }

// kernel: encoder_forward.25
= control target key start
LH: loop header
LB: loop body
LE: loop exit
PB: predicated region body
PF: predicated region fallthrough
CT: control target
= control target key end

     0   :  { %vm38_vm0 = vcmask 261120   ;;  %s507_s0 = inlined_call_operand.vmem [shape: f32[16,32], index: 0, kind: input, shape index: {}]   ;;  %s508_s1 = inlined_call_operand.vmem [shape: f32[1,32], index: 1, kind: input, shape index: {}]   ;;  %s509_s2 = inlined_call_operand.vmem [shape: f32[1,32], index: 2, kind: input, shape index: {}]   ;;  %s510_s3 = inlined_call_operand.vmem [shape: bf16[32,64], index: 3, kind: input, shape index: {}]   ;;  %s511_s4 = inlined_call_operand.vmem [shape: f32[1,64], index: 4, kind: input, shape index: {}]   ;;  %s512_s5 = inlined_call_operand.vmem [shape: bf16[64,32], index: 5, kind: input, shape index: {}]   ;;  %s513_s6 = inlined_call_operand.vmem [shape: f32[1,32], index: 6, kind: input, shape index: {}]   ;;  %s514_s7 = inlined_call_operand.vmem [shape: f32[1,32], index: 7, kind: input, shape index: {}]   ;;  %s515_s8 = inlined_call_operand.vmem [shape: f32[1,32], index: 8, kind: input, shape index: {}]   ;;  %s516_s9 = inlined_call_operand.hbm [shape: f32[16,32], index: 9, kind: output, shape index: {}]  }
   0x1   :  { %v444_v0 = vld [vmem:[%s507_s0] sm:$0xff]  ;;  %v449_v1 = vld [vmem:[%s507_s0 + $0x8] sm:$0xff] }
   0x2   :  { %v39_v2 = vsel %vm38_vm0, %v444_v0, 0.0  ;;  %v42_v3 = vsel %vm38_vm0, %v449_v1, 0.0 }
   0x3   :  { %40 = vadd.xlane.f32.xlu0 %v39_v2 }
   0x4   :  { %14 = vsyncpa [#allocation3], 0  ;;  %v350_v14 = vld [vmem:[%s510_s3 + $0x8] sm:$0xff]   ;;  %v386_v15 = vmov 0.0   ;;  %vm387_vm1 = vmmov 0   ;;  %v351_v16 = vld [vmem:[%s510_s3] sm:$0xff]  }
   0x5   :  { %325 = vmatprep.subr.bf16.mxu0 %v386_v15  ;;  %329 = vmatprep.mubr.msk.bf16.mxu0 %vm387_vm1, %v386_v15  ;;  %v352_v17 = vld [vmem:[%s512_s5 + $0x18] sm:$0xff]   ;;  %v303_v26 = vld [vmem:[%s508_s1] ss:$0 sm:$0xff]  ;;  %v353_v35 = vld [vmem:[%s512_s5 + $0x10] sm:$0xff]   ;;  %vm192_vm2 = vcmask 523264   ;;  %s388_s30 = smov [#allocation2]  }
   0x6   :  { %326 = vmatpush3.bf16.msra.mxu0 %v350_v14  ;;  %333 = vmatprep.subr.bf16.mxu1 %v386_v15  ;;  %v304_v30 = vld [vmem:[%s509_s2] ss:$0 sm:$0xff]  ;;  %v354_v36 = vld [vmem:[%s512_s5 + $0x8] sm:$0xff]   ;;  %s292_s10 = sshll.u32 %s388_s30, 4  ;;  %s293_s10 = int_to_ptr.vmem [resolvable:$true] %s292_s10 }
   0x7   :  { %43 = vadd.xlane.f32.xlu0 %v42_v3  ;;  %327 = vmatprep.subr.bf16.mxu0 %v386_v15  ;;  %v355_v37 = vld [vmem:[%s512_s5] sm:$0xff]   ;;  %s364_s11 = scalar_lea.vmem %s293_s10, 256  ;;  %p369_p1 = scmp.lt.s32.totalorder %s293_s10, %s293_s10 }
   0x8   :  { %341 = vmatprep.mubr.msk.bf16.mxu1 %vm387_vm1, %v386_v15  ;;  %334 = vmatpush3.bf16.msra.mxu1 %v352_v17  ;;  %v305_v38 = vld [vmem:[%s511_s4] ss:$0 sm:$0xff]  ;;  %p365_p0 = scmp.ne.s32.totalorder %s293_s10, %s364_s11  ;;  %p370_p2 = scmp.lt.s32.totalorder %s364_s11, %s364_s11 }
   0x9   :  { %335 = vmatprep.subr.bf16.mxu1 %v386_v15  ;;  %v309_v48 = vld [vmem:[%s513_s6] ss:$0 sm:$0xff] }
   0xa   :  { %328 = vmatpush3.bf16.msra.mxu0 %v351_v16  ;;  %v315_v14 = vld [vmem:[%s514_s7] ss:$0 sm:$0xff]  ;;  %p371_p3 = por %p370_p2, %p369_p1 }
   0xb   :  { %v316_v16 = vld [vmem:[%s515_s8] ss:$0 sm:$0xff] }
   0xc   :  { %336 = vmatpush3.bf16.msra.mxu1 %v353_v35  ;;  %p372_p4 = pnand %p371_p3, %p365_p0 }
   0xd   :  { %337 = vmatprep.subr.bf16.mxu1 %v386_v15 }
  0x10   :  { %338 = vmatpush3.bf16.msra.mxu1 %v354_v36 }
  0x11   :  { %339 = vmatprep.subr.bf16.mxu1 %v386_v15 }
  0x14   :  { %340 = vmatpush3.bf16.msra.mxu1 %v355_v37 }
  0x8c   :  { %v41_v4 = vpop.xlane.xlu0 %40 }
  0x8d   :  { %v46_v5 = vmul.f32 0.03125, %v41_v4 }
  0x8f   :  { %v48_v6 = vsub.f32 %v444_v0, %v46_v5 }
  0x90   :  { %v44_v7 = vpop.xlane.xlu0 %43 }
  0x91   :  { %v47_v8 = vmul.f32 0.03125, %v44_v7  ;;  %v50_v9 = vmul.f32 %v48_v6, %v48_v6 }
  0x93   :  { %v49_v10 = vsub.f32 %v449_v1, %v47_v8  ;;  %v52_v11 = vsel %vm38_vm0, %v50_v9, 0.0 }
  0x94   :  { %53 = vadd.xlane.f32.xlu1 %v52_v11 }
  0x95   :  { %v51_v12 = vmul.f32 %v49_v10, %v49_v10 }
  0x97   :  { %v55_v13 = vsel %vm38_vm0, %v51_v12, 0.0 }
  0x98   :  { %56 = vadd.xlane.f32.xlu1 %v55_v13 }
 0x11d   :  { %v54_v18 = vpop.xlane.xlu1 %53 }
 0x11e   :  { %v58_v19 = vmul.f32 0.03125, %v54_v18 }
 0x120   :  { %v60_v20 = vadd.f32 1e-05, %v58_v19 }
 0x121   :  { %v57_v21 = vpop.xlane.xlu1 %56 }
 0x122   :  { %356 = vrsqrt.f32 %v60_v20  ;;  %v59_v22 = vmul.f32 0.03125, %v57_v21 }
 0x124   :  { %v61_v23 = vadd.f32 1e-05, %v59_v22 }
 0x126   :  { %358 = vrsqrt.f32 %v61_v23 }
 0x12f   :  { %v357_v24 = vpop.eup %356 }
 0x130   :  { %v64_v25 = vmul.f32 %v357_v24, %v48_v6 }
 0x132   :  { %v72_v29 = vmul.f32 %v303_v26, %v64_v25 }
 0x133   :  { %v359_v27 = vpop.eup %358 }
 0x134   :  { %v65_v28 = vmul.f32 %v359_v27, %v49_v10  ;;  %v80_v32 = vadd.f32 %v304_v30, %v72_v29 }
 0x136   :  { %v73_v31 = vmul.f32 %v303_v26, %v65_v28 }
 0x138   :  { %v81_v33 = vadd.f32 %v304_v30, %v73_v31 }
 0x13a   :  { %v86_v34 = vpack.c.bf16 %v81_v33, %v80_v32 }
 0x13c   :  { %330 = vmatmul.mubr.msk.bf16.vlgmr.msra.gmra.mxu0 %vm38_vm0, %v86_v34 }
 0x1fc   :  { %v143_v39 = vpop.f32.mrf.mxu0 }
 0x1fd   :  { %v144_v41 = vadd.f32 %v305_v38, %v143_v39 }
 0x1fe   :  { %v331_v40 = vpop.f32.mrf.mxu0 }
 0x1ff   :  { %v150_v45 = vmax.f32 %v144_v41, 0.0 }
 0x200   :  { %v146_v42 = vpop.f32.mrf.mxu0 }
 0x201   :  { %v147_v43 = vadd.f32 %v305_v38, %v146_v42 }
 0x202   :  { %v332_v44 = vpop.f32.mrf.mxu0 }
 0x203   :  { %v151_v46 = vmax.f32 %v147_v43, 0.0 }
 0x205   :  { %v160_v47 = vpack.c.bf16 %v151_v46, %v150_v45 }
 0x207   :  { %342 = vmatmul.mubr.msk.bf16.vlgmr.msra.gmra.mxu1 %vm192_vm2, %v160_v47 }
 0x2c7   :  { %v230_v49 = vpop.f32.mrf.mxu1 }
 0x2c8   :  { %v231_v50 = vadd.f32 %v309_v48, %v230_v49 }
 0x2c9   :  { %v343_v51 = vpop.f32.mrf.mxu1 }
 0x2ca   :  { %v237_v52 = vmul.f32 0.5, %v231_v50 }
 0x2cb   :  { %v233_v53 = vpop.f32.mrf.mxu1 }
 0x2cc   :  { %v234_v54 = vadd.f32 %v309_v48, %v233_v53  ;;  %v239_v55 = vadd.f32 %v237_v52, %v444_v0 }
 0x2cd   :  { %v344_v56 = vpop.f32.mrf.mxu1 }
 0x2ce   :  { %v238_v57 = vmul.f32 0.5, %v234_v54  ;;  %v243_v58 = vsel %vm38_vm0, %v239_v55, 0.0 }
 0x2cf   :  { %244 = vadd.xlane.f32.xlu0 %v243_v58 }
 0x2d0   :  { %v240_v59 = vadd.f32 %v238_v57, %v449_v1 }
 0x2d2   :  { %v246_v60 = vsel %vm38_vm0, %v240_v59, 0.0 }
 0x2d3   :  { %247 = vadd.xlane.f32.xlu1 %v246_v60 }
 0x358   :  { %v245_v61 = vpop.xlane.xlu0 %244 }
 0x359   :  { %v249_v62 = vmul.f32 0.03125, %v245_v61 }
 0x35b   :  { %v251_v63 = vsub.f32 %v239_v55, %v249_v62 }
 0x35c   :  { %v248_v2 = vpop.xlane.xlu1 %247 }
 0x35d   :  { %v250_v3 = vmul.f32 0.03125, %v248_v2  ;;  %v253_v4 = vmul.f32 %v251_v63, %v251_v63 }
 0x35f   :  { %v252_v5 = vsub.f32 %v240_v59, %v250_v3  ;;  %v255_v6 = vsel %vm38_vm0, %v253_v4, 0.0 }
 0x360   :  { %256 = vadd.xlane.f32.xlu0 %v255_v6 }
 0x361   :  { %v254_v0 = vmul.f32 %v252_v5, %v252_v5 }
 0x363   :  { %v258_v7 = vsel %vm38_vm0, %v254_v0, 0.0 }
 0x364   :  { %259 = vadd.xlane.f32.xlu1 %v258_v7 }
 0x3e9   :  { %v257_v8 = vpop.xlane.xlu0 %256 }
 0x3ea   :  { %v261_v9 = vmul.f32 0.03125, %v257_v8 }
 0x3ec   :  { %v263_v1 = vadd.f32 1e-05, %v261_v9 }
 0x3ed   :  { %v260_v10 = vpop.xlane.xlu1 %259 }
 0x3ee   :  { %360 = vrsqrt.f32 %v263_v1  ;;  %v262_v11 = vmul.f32 0.03125, %v260_v10 }
 0x3f0   :  { %v264_v12 = vadd.f32 1e-05, %v262_v11 }
 0x3f2   :  { %362 = vrsqrt.f32 %v264_v12 }
 0x3fb   :  { %v361_v13 = vpop.eup %360 }
 0x3fc   :  { %v267_v15 = vmul.f32 %v361_v13, %v251_v63 }
 0x3fe   :  { %v275_v17 = vmul.f32 %v315_v14, %v267_v15 }
 0x3ff   :  { %v363_v18 = vpop.eup %362 }
 0x400   :  { %v268_v19 = vmul.f32 %v363_v18, %v252_v5  ;;  %v283_v20 = vadd.f32 %v316_v16, %v275_v17 }
 0x402   :  { %v276_v21 = vmul.f32 %v315_v14, %v268_v19  ;;  %285 = vst.msk [vmem:[#allocation2] sm:$0xff] %vm38_vm0, %v283_v20 }
 0x404   :  { %v284_v22 = vadd.f32 %v316_v16, %v276_v21 }
 0x406   :  { %286 = vst.msk [vmem:[#allocation2 + $0x8] sm:$0xff] %vm38_vm0, %v284_v22 }
 0x407   :  { %375 = shalt.err (!%p372_p4)
}
 0x408   :  { %s389_s7 = smov 128   ;;  %s390_s8 = smov 8  }
 0x409   :  { %298 = dma.vmem_to_hbm [thread:$0]  %s293_s10, 256, %s516_s9, [#allocation3], %s389_s7, %s389_s7, %s390_s8  }
 0x40a   :  { %384 = dma.done.wait [#allocation3], 256  }
 0x40b   :  { %385 = vsyncadd [#allocation3], 4294967040 }
 0x40c   :  { %302 = vsyncpa [#allocation3], 1 }

</bundles_post_ra>
